<compile_context>
chip_gen: v5e
topology: v5e:2x2
jax: 0.10.0
libtpu: 0.0.40
codegen_flags: <defaults>
</compile_context>

<pallas_src>
import math

import jax
import jax.numpy as jnp
from jax.experimental import pallas as pl
from jax.experimental.pallas import tpu as pltpu

F32 = jnp.float32
BF16 = jnp.bfloat16
LN_EPS = 1e-5   # nn.LayerNorm default


# --------------------------------- kernel ------------------------------------

def ffb_kernel(x_ref, g_ref, beta_ref, w1_ref, b1_ref, w2_ref, b2_ref, o_ref):
    """Fused LayerNorm -> Linear -> SiLU -> Linear for one token tile
    (alpha is pre-folded into w2 / b2)."""
    x = x_ref[...]                                              # (tn, Din) f32
    # Single-pass LayerNorm statistics: var = E[x^2] - mu^2.
    mu = jnp.mean(x, axis=-1, keepdims=True)
    ms = jnp.mean(x * x, axis=-1, keepdims=True)
    var = ms - mu * mu
    h = (x - mu) * jax.lax.rsqrt(var + LN_EPS) * g_ref[...] + beta_ref[...]
    # Linear 1: bf16 MXU inputs, f32 accumulation.
    h = jnp.dot(h.astype(w1_ref.dtype), w1_ref[...],
                preferred_element_type=F32) + b1_ref[...]       # (tn, Dh) f32
    # SiLU on the largest intermediate in bf16 (halves VALU/EUP work on
    # v6e/v7x; the second matmul consumes bf16 anyway).
    hb = h.astype(BF16)
    hb = hb * jax.nn.sigmoid(hb)
    # Linear 2 (alpha already folded into the weights): bf16 MXU, f32 acc.
    o_ref[...] = jnp.dot(hb, w2_ref[...],
                         preferred_element_type=F32) + b2_ref[...]


# ------------------------------ pallas_call glue ------------------------------

def _round_up(v, m):
    return -(-v // m) * m


def _nbytes(shape, dtype):
    n = jnp.dtype(dtype).itemsize
    for s in shape:
        n *= s
    return n


def feed_forward_block(params, x, *, block_n=256):
    """x: (tokens, in_features) f32 -> (tokens, out_features) f32."""
    n, in_f = x.shape
    hid = params["w1"].shape[1]
    out_f = params["w2"].shape[1]

    # Lane-dense output: pad out_features up to a multiple of 128 with zero
    # columns (no masked vst partial stores) and slice them off afterwards.
    out_fp = _round_up(out_f, 128)
    w2, b2 = params["w2"], params["b2"]
    if out_fp != out_f:
        w2 = jnp.pad(w2, ((0, 0), (0, out_fp - out_f)))
        b2 = jnp.pad(b2, ((0, 0), (0, out_fp - out_f)))

    # Token tile: large enough to fill the 256-wide MXU and amortize the
    # ~0.35us per-step overhead, but keep >=2 grid steps so the "parallel"
    # axis can shard across v7x's two TensorCores.
    block_n = max(8, min(block_n, n))
    if pl.cdiv(n, block_n) < 2 and n > 8:
        block_n = max(8, _round_up(pl.cdiv(n, 2), 8))
    grid = (pl.cdiv(n, block_n),)

    def const_spec(shape):
        # Resident operand: identical block every step -> single-buffer it.
        return pl.BlockSpec(shape, lambda i: (0, 0), pipeline_mode=pl.Buffered(1))

    # Scoped-VMEM budget: streamed tiles double-buffered, resident weights
    # single-buffered, plus the (block_n, hidden) intermediates; ~50% headroom.
    vmem_bytes = (
        2 * _nbytes((block_n, in_f), F32)            # x tile (double-buffered)
        + 2 * _nbytes((block_n, out_fp), F32)        # out tile (double-buffered)
        + _nbytes((in_f, hid), BF16)                 # W1
        + _nbytes((hid, out_fp), BF16)               # W2
        + 2 * _nbytes((1, in_f), F32)                # gamma, beta
        + _nbytes((1, hid), F32)                     # b1
        + _nbytes((1, out_fp), F32)                  # b2
        + 3 * _nbytes((block_n, hid), F32))          # f32/bf16 intermediates
    vmem_limit = min(int(vmem_bytes * 1.5) + (2 << 20), 64 << 20)

    cost = pl.CostEstimate(
        flops=2 * n * (in_f * hid + hid * out_fp) + 10 * n * in_f,
        transcendentals=n * hid + n,
        bytes_accessed=(_nbytes((n, in_f), F32) + _nbytes((n, out_fp), F32)
                        + _nbytes((in_f, hid), BF16)
                        + _nbytes((hid, out_fp), BF16)),
    )

    # TODO(synk): for in_features/hidden too large for full-weight VMEM
    # residency (esp. v7x's 64 MiB), add a trailing "arbitrary" reduction grid
    # axis over the hidden dim with an f32 VMEM accumulator + pl.when
    # init/finalize instead of keeping both weight matrices resident.

    out = pl.pallas_call(
        ffb_kernel,
        out_shape=jax.ShapeDtypeStruct((n, out_fp), F32),
        grid=grid,
        in_specs=[
            pl.BlockSpec((block_n, in_f), lambda i: (i, 0)),    # x token tile
            const_spec((1, in_f)),                              # LN gamma
            const_spec((1, in_f)),                              # LN beta
            const_spec((in_f, hid)),                            # W1 (in, hidden) bf16
            const_spec((1, hid)),                               # b1
            const_spec((hid, out_fp)),                          # alpha*W2 (hidden, out) bf16
            const_spec((1, out_fp)),                            # alpha*b2
        ],
        out_specs=pl.BlockSpec((block_n, out_fp), lambda i: (i, 0)),
        compiler_params=pltpu.CompilerParams(
            dimension_semantics=("parallel",),                  # v7x dual-TC sharding
            vmem_limit_bytes=vmem_limit),
        cost_estimate=cost,
    )(x, params["gamma"], params["beta"], params["w1"], params["b1"], w2, b2)

    return out[:, :out_f] if out_fp != out_f else out


# ------------------------------ pure-JAX reference -----------------------------

def feed_forward_block_ref(params, x):
    mu = jnp.mean(x, axis=-1, keepdims=True)
    var = jnp.mean(x * x, axis=-1, keepdims=True) - mu * mu
    h = (x - mu) * jax.lax.rsqrt(var + LN_EPS) * params["gamma"] + params["beta"]
    h = jnp.dot(h.astype(BF16), params["w1"], preferred_element_type=F32) + params["b1"]
    hb = h.astype(BF16)
    hb = hb * jax.nn.sigmoid(hb)
    return jnp.dot(hb, params["w2"], preferred_element_type=F32) + params["b2"]


# ------------------------------- parameter init --------------------------------

def init_params(key, in_features, out_features, alpha=0.1, mlp_expansion=4,
                bottleneck_selection=max):
    hidden = bottleneck_selection(in_features, out_features) * mlp_expansion
    k1, k2 = jax.random.split(key, 2)

    def xavier(k, fan_in, fan_out):
        lim = math.sqrt(6.0 / (fan_in + fan_out))
        # PyTorch weight is (out, in); store pre-transposed (in, out).
        return jax.random.uniform(k, (fan_in, fan_out), F32, -lim, lim)

    # alpha is a static inference scalar: fold it into the second linear once
    # (alpha*(h@W2 + b2) == h@(alpha*W2) + alpha*b2), removing a VPU pass and a
    # kernel argument.
    w1 = xavier(k1, in_features, hidden).astype(BF16)
    w2 = (xavier(k2, hidden, out_features) * alpha).astype(BF16)
    b2 = jnp.zeros((1, out_features), F32) * alpha

    return dict(
        gamma=jnp.ones((1, in_features), F32),
        beta=jnp.zeros((1, in_features), F32),
        w1=w1,
        b1=jnp.zeros((1, hidden), F32),
        w2=w2,
        b2=b2,
    )


# ----------------------------------- main --------------------------------------

if __name__ == "__main__":
    in_features = 128
    out_features = 128
    n_tokens = 512           # block_n=256 -> grid=(2,), "parallel" (both v7x TCs)

    root = jax.random.PRNGKey(0)
    pk, xk = jax.random.split(root, 2)
    params = init_params(pk, in_features, out_features)   # hidden = 512
    x = jax.random.normal(xk, (n_tokens, in_features), F32)

    out = feed_forward_block(params, x, block_n=256)
    out = jax.block_until_ready(out)

    ref = feed_forward_block_ref(params, x)
    ref = jax.block_until_ready(ref)

    assert out.shape == (n_tokens, out_features), out.shape
    assert bool(jnp.all(jnp.isfinite(out)))
    assert bool(jnp.allclose(out, ref, atol=1e-2, rtol=1e-2)), \
        float(jnp.max(jnp.abs(out - ref)))
    print("KERNEL_OK")
</pallas_src>

<mosaic_0001>
module attributes {stable_mosaic.version = 11 : i64} {
  func.func @ffb_kernel(%arg0: i32, %arg1: memref<256x128xf32, #tpu.memory_space<vmem>>, %arg2: memref<1x128xf32, #tpu.memory_space<vmem>>, %arg3: memref<1x128xf32, #tpu.memory_space<vmem>>, %arg4: memref<128x512xbf16, #tpu.memory_space<vmem>>, %arg5: memref<1x512xf32, #tpu.memory_space<vmem>>, %arg6: memref<512x128xbf16, #tpu.memory_space<vmem>>, %arg7: memref<1x128xf32, #tpu.memory_space<vmem>>, %arg8: memref<256x128xf32, #tpu.memory_space<vmem>>) attributes {dimension_semantics = [#tpu.dimension_semantics<parallel>], iteration_bounds = array<i64: 2>, scalar_prefetch = 0 : i64, scratch_operands = 0 : i64, tpu.core_type = #tpu.core_type<tc>, window_params = [{transform_indices = @transform_0, window_bounds = array<i64: 256, 128>}, {pipeline_mode = #tpu.pipeline_mode<synchronous>, transform_indices = @transform_1, window_bounds = array<i64: 1, 128>}, {pipeline_mode = #tpu.pipeline_mode<synchronous>, transform_indices = @transform_2, window_bounds = array<i64: 1, 128>}, {pipeline_mode = #tpu.pipeline_mode<synchronous>, transform_indices = @transform_3, window_bounds = array<i64: 128, 512>}, {pipeline_mode = #tpu.pipeline_mode<synchronous>, transform_indices = @transform_4, window_bounds = array<i64: 1, 512>}, {pipeline_mode = #tpu.pipeline_mode<synchronous>, transform_indices = @transform_5, window_bounds = array<i64: 512, 128>}, {pipeline_mode = #tpu.pipeline_mode<synchronous>, transform_indices = @transform_6, window_bounds = array<i64: 1, 128>}, {transform_indices = @transform_7, window_bounds = array<i64: 256, 128>}]} {
    %c0 = arith.constant 0 : index
    %c0_0 = arith.constant 0 : index
    %0 = vector.load %arg1[%c0, %c0_0] : memref<256x128xf32, #tpu.memory_space<vmem>>, vector<256x128xf32>
    %cst = arith.constant dense<0.000000e+00> : vector<256xf32>
    %1 = vector.multi_reduction <add>, %0, %cst [1] : vector<256x128xf32> to vector<256xf32>
    %2 = vector.shape_cast %1 : vector<256xf32> to vector<256x1xf32>
    %cst_1 = arith.constant 1.280000e+02 : f32
    %3 = vector.broadcast %cst_1 : f32 to vector<256x1xf32>
    %4 = arith.divf %2, %3 : vector<256x1xf32>
    %5 = arith.mulf %0, %0 : vector<256x128xf32>
    %cst_2 = arith.constant dense<0.000000e+00> : vector<256xf32>
    %6 = vector.multi_reduction <add>, %5, %cst_2 [1] : vector<256x128xf32> to vector<256xf32>
    %7 = vector.shape_cast %6 : vector<256xf32> to vector<256x1xf32>
    %cst_3 = arith.constant 1.280000e+02 : f32
    %8 = vector.broadcast %cst_3 : f32 to vector<256x1xf32>
    %9 = arith.divf %7, %8 : vector<256x1xf32>
    %10 = arith.mulf %4, %4 : vector<256x1xf32>
    %11 = arith.subf %9, %10 : vector<256x1xf32>
    %12 = vector.broadcast %4 : vector<256x1xf32> to vector<256x128xf32>
    %13 = arith.subf %0, %12 : vector<256x128xf32>
    %cst_4 = arith.constant 9.99999974E-6 : f32
    %14 = vector.broadcast %cst_4 : f32 to vector<256x1xf32>
    %15 = arith.addf %11, %14 : vector<256x1xf32>
    %16 = math.rsqrt %15 : vector<256x1xf32>
    %17 = vector.broadcast %16 : vector<256x1xf32> to vector<256x128xf32>
    %18 = arith.mulf %13, %17 : vector<256x128xf32>
    %c0_5 = arith.constant 0 : index
    %c0_6 = arith.constant 0 : index
    %19 = vector.load %arg2[%c0_5, %c0_6] : memref<1x128xf32, #tpu.memory_space<vmem>>, vector<1x128xf32>
    %20 = vector.broadcast %19 : vector<1x128xf32> to vector<256x128xf32>
    %21 = arith.mulf %18, %20 : vector<256x128xf32>
    %c0_7 = arith.constant 0 : index
    %c0_8 = arith.constant 0 : index
    %22 = vector.load %arg3[%c0_7, %c0_8] : memref<1x128xf32, #tpu.memory_space<vmem>>, vector<1x128xf32>
    %23 = vector.broadcast %22 : vector<1x128xf32> to vector<256x128xf32>
    %24 = arith.addf %21, %23 : vector<256x128xf32>
    %25 = arith.truncf %24 : vector<256x128xf32> to vector<256x128xbf16>
    %c0_9 = arith.constant 0 : index
    %c0_10 = arith.constant 0 : index
    %26 = vector.load %arg4[%c0_9, %c0_10] : memref<128x512xbf16, #tpu.memory_space<vmem>>, vector<128x512xbf16>
    %cst_11 = arith.constant dense<0.000000e+00> : vector<256x512xf32>
    %27 = tpu.matmul %25, %26, %cst_11 {dimension_numbers = #tpu.dot_dimension_numbers<[1], [0], [0], [1], [0, 0, 1, 1], [], []>} : vector<256x128xbf16>, vector<128x512xbf16>, vector<256x512xf32> -> vector<256x512xf32>
    %c0_12 = arith.constant 0 : index
    %c0_13 = arith.constant 0 : index
    %28 = vector.load %arg5[%c0_12, %c0_13] : memref<1x512xf32, #tpu.memory_space<vmem>>, vector<1x512xf32>
    %29 = vector.broadcast %28 : vector<1x512xf32> to vector<256x512xf32>
    %30 = arith.addf %27, %29 : vector<256x512xf32>
    %31 = arith.truncf %30 : vector<256x512xf32> to vector<256x512xbf16>
    %32 = arith.negf %31 : vector<256x512xbf16>
    %33 = math.exp %32 : vector<256x512xbf16>
    %cst_14 = arith.constant 1.000000e+00 : bf16
    %34 = vector.broadcast %cst_14 : bf16 to vector<256x512xbf16>
    %35 = arith.addf %34, %33 : vector<256x512xbf16>
    %36 = arith.divf %34, %35 : vector<256x512xbf16>
    %37 = arith.mulf %31, %36 : vector<256x512xbf16>
    %c0_15 = arith.constant 0 : index
    %c0_16 = arith.constant 0 : index
    %38 = vector.load %arg6[%c0_15, %c0_16] : memref<512x128xbf16, #tpu.memory_space<vmem>>, vector<512x128xbf16>
    %cst_17 = arith.constant dense<0.000000e+00> : vector<256x128xf32>
    %39 = tpu.matmul %37, %38, %cst_17 {dimension_numbers = #tpu.dot_dimension_numbers<[1], [0], [0], [1], [0, 0, 1, 1], [], []>} : vector<256x512xbf16>, vector<512x128xbf16>, vector<256x128xf32> -> vector<256x128xf32>
    %c0_18 = arith.constant 0 : index
    %c0_19 = arith.constant 0 : index
    %40 = vector.load %arg7[%c0_18, %c0_19] : memref<1x128xf32, #tpu.memory_space<vmem>>, vector<1x128xf32>
    %41 = vector.broadcast %40 : vector<1x128xf32> to vector<256x128xf32>
    %42 = arith.addf %39, %41 : vector<256x128xf32>
    %c0_20 = arith.constant 0 : index
    %c0_21 = arith.constant 0 : index
    %43 = vector.load %arg8[%c0_20, %c0_21] : memref<256x128xf32, #tpu.memory_space<vmem>>, vector<256x128xf32>
    tpu.vector_store %arg8[%c0_20, %c0_21], %42 {strides = array<i32>} : memref<256x128xf32, #tpu.memory_space<vmem>>, vector<256x128xf32>,
    return
  }
  func.func @transform_0(%arg0: i32) -> (i32, i32) {
    %c0_i32 = arith.constant 0 : i32
    %c0_i32_0 = arith.constant 0 : i32
    return %arg0, %c0_i32 : i32, i32
  }
  func.func @transform_1(%arg0: i32) -> (i32, i32) {
    %c0_i32 = arith.constant 0 : i32
    %c0_i32_0 = arith.constant 0 : i32
    %c0_i32_1 = arith.constant 0 : i32
    return %c0_i32, %c0_i32_0 : i32, i32
  }
  func.func @transform_2(%arg0: i32) -> (i32, i32) {
    %c0_i32 = arith.constant 0 : i32
    %c0_i32_0 = arith.constant 0 : i32
    %c0_i32_1 = arith.constant 0 : i32
    return %c0_i32, %c0_i32_0 : i32, i32
  }
  func.func @transform_3(%arg0: i32) -> (i32, i32) {
    %c0_i32 = arith.constant 0 : i32
    %c0_i32_0 = arith.constant 0 : i32
    %c0_i32_1 = arith.constant 0 : i32
    return %c0_i32, %c0_i32_0 : i32, i32
  }
  func.func @transform_4(%arg0: i32) -> (i32, i32) {
    %c0_i32 = arith.constant 0 : i32
    %c0_i32_0 = arith.constant 0 : i32
    %c0_i32_1 = arith.constant 0 : i32
    return %c0_i32, %c0_i32_0 : i32, i32
  }
  func.func @transform_5(%arg0: i32) -> (i32, i32) {
    %c0_i32 = arith.constant 0 : i32
    %c0_i32_0 = arith.constant 0 : i32
    %c0_i32_1 = arith.constant 0 : i32
    return %c0_i32, %c0_i32_0 : i32, i32
  }
  func.func @transform_6(%arg0: i32) -> (i32, i32) {
    %c0_i32 = arith.constant 0 : i32
    %c0_i32_0 = arith.constant 0 : i32
    %c0_i32_1 = arith.constant 0 : i32
    return %c0_i32, %c0_i32_0 : i32, i32
  }
  func.func @transform_7(%arg0: i32) -> (i32, i32) {
    %c0_i32 = arith.constant 0 : i32
    %c0_i32_0 = arith.constant 0 : i32
    return %arg0, %c0_i32 : i32, i32
  }
}

</mosaic_0001>

<bundles_post_ra>
// kernel: tpu_custom_call.1
= control target key start
LH: loop header
LB: loop body
LE: loop exit
PB: predicated region body
PF: predicated region fallthrough
CT: control target
= control target key end

     0   :  { %s8386_s0 = inlined_call_operand.hbm [shape: f32[512,128], index: 0, kind: input, shape index: {}]   ;;  %s8387_s1 = inlined_call_operand.hbm [shape: f32[1,128], index: 1, kind: input, shape index: {}]   ;;  %s8388_s2 = inlined_call_operand.vmem [shape: f32[1,128], index: 2, kind: input, shape index: {}]   ;;  %s8389_s3 = inlined_call_operand.hbm [shape: bf16[128,512], index: 3, kind: input, shape index: {}]   ;;  %s8390_s4 = inlined_call_operand.hbm [shape: f32[1,512], index: 4, kind: input, shape index: {}]   ;;  %s8391_s5 = inlined_call_operand.hbm [shape: bf16[512,128], index: 5, kind: input, shape index: {}]   ;;  %s8392_s6 = inlined_call_operand.vmem [shape: f32[1,128], index: 6, kind: input, shape index: {}]   ;;  %s8393_s7 = inlined_call_operand.hbm [shape: f32[512,128], index: 7, kind: output, shape index: {}]  }
   0x1   :  { %8514 = sst [smem:[#allocation85_spill]] %s8387_s1 }
   0x2   :  { %12 = vsyncpa [#allocation3], 0 }
   0x3   :  { %14 = vsyncpa [#allocation3 + $0x1], 0 }
   0x4   :  { %15 = vsyncpa [#allocation6], 0 }
   0x5   :  { %16 = vsyncpa [#allocation9], 0 }
   0x6   :  { %17 = vsyncpa [#allocation4], 0 }
   0x7   :  { %19 = vsyncpa [#allocation4 + $0x1], 0  ;;  %s5653_s24 = smov 0   ;;  %s5655_s25 = smov 0  }
   0x8   :  { %s5657_s26 = smov 0   ;;  %s5659_s27 = smov 0  }
   0x9 LB: > { %s5674_s28 = sadd.s32 4294967295, %s5597_s27   ;;  %s4322_s29 = sadd.s32 4294967294, %s5597_s27   ;;  %s5597_s27 = sphi %s5659_s27, %s8926_s27   ;;  %s5593_s26 = sphi %s5657_s26, %s8925_s26   ;;  %s5589_s25 = sphi %s5655_s25, %s8924_s25   ;;  %s5585_s24 = sphi %s5653_s24, %s8923_s24  }
   0xa   : > { %p45_p0 = scmp.ne.s32.totalorder %s5589_s25, %s5585_s24  ;;  %p46_p1 = scmp.eq.s32.totalorder %s5674_s28, 0 }
   0xb   : > { %p195_p2 = scmp.eq.s32.totalorder %s5674_s28, 1  ;;  %p201_p3 = scmp.eq.s32.totalorder %s4322_s29, 1 }
   0xc   : > { %p5683_p4 = por %p46_p1, %p45_p0  ;;  %p4323_p5 = scmp.ge.s32.totalorder %s5597_s27, 1 }
   0xd   : > { %p5688_p6 = por %p201_p3, %p45_p0  ;;  %p208_p7 = scmp.lt.s32.totalorder %s5597_s27, 3 }
   0xe   : > { %s8517_s1 = sld [smem:[#allocation85_spill]]  ;;  %s5599_s13 = smov [#allocation5]  }
   0xf   : > { %p5696_p8 = pnand %p4323_p5, %p208_p7  ;;  %s222_s14 = sshll.u32 %s5599_s13, 4  ;;  %s223_s14 = int_to_ptr.vmem [resolvable:$true] %s222_s14 }
  0x10   : > { %s249_s17 = sshll.u32 %s8390_s4, 4  ;;  %s234_s21 = sshll.u32 %s8389_s3, 4  ;;  %s250_s17 = int_to_ptr.hbm [resolvable:$true] %s249_s17  ;;  %s235_s21 = int_to_ptr.hbm [resolvable:$true] %s234_s21 }
  0x11   : > { %p4686_p10 = pneg %p5696_p8  ;;  %s5600_s22 = smov [#allocation8]  }
  0x12   : > { %s251_s23 = sshll.u32 %s5600_s22, 4  ;;  %s5601_s29 = smov [#allocation7]   ;;  %s252_s23 = int_to_ptr.vmem [resolvable:$true] %s251_s23 }
  0x13   : > { %p5708_p11 = pnand %p4686_p10, %p46_p1  ;;  %s236_s9 = sshll.u32 %s5601_s29, 4  ;;  %s237_s9 = int_to_ptr.vmem [resolvable:$true] %s236_s9 }
  0x14   : > { %s220_s11 = sshll.u32 %s8517_s1, 4  ;;  %s260_s15 = sshll.u32 %s8391_s5, 4  ;;  %s221_s11 = int_to_ptr.hbm [resolvable:$true] %s220_s11  ;;  %s261_s15 = int_to_ptr.hbm [resolvable:$true] %s260_s15 }
  0x15   : > { %4689 = dma.hbm_to_vmem [thread:$0]  (!%p5708_p11), %s221_s11, 16, %s223_s14, [#allocation6]  }
  0x16   : > { %4695 = dma.hbm_to_vmem [thread:$0]  (!%p5708_p11), %s250_s17, 64, %s252_s23, [#allocation9]  }
  0x17   : > { %s5602_s16 = smov 256   ;;  %s5603_s11 = smov 16  }
  0x18   : > { %4692 = dma.hbm_to_vmem [thread:$0]  (!%p5708_p11), %s235_s21, 4096, %s237_s9, [#allocation6], %s5602_s16, %s5602_s16, %s5603_s11  }
  0x19   : > { %s5604_s14 = smov [#allocation10]   ;;  %s5605_s19 = smov 64  }
  0x1a   : > { %s262_s17 = sshll.u32 %s5604_s14, 4  ;;  %s5606_s20 = smov 4   ;;  %s263_s17 = int_to_ptr.vmem [resolvable:$true] %s262_s17 }
  0x1b   : > { %4698 = dma.hbm_to_vmem [thread:$0]  (!%p5708_p11), %s261_s15, 4096, %s263_s17, [#allocation9], %s5605_s19, %s5605_s19, %s5606_s20  }
  0x1c   : > { %s5727_s22 = sadd.s32 1, %s5597_s27   ;;  %s32_s29 = sadd.s32 1, %s5593_s26 }
  0x1d   : > { %s29_s23 = ssub.s32 %s5597_s27, %s5727_s22  ;;  %p39_p13 = scmp.ne.s32.totalorder %s5593_s26, %s5589_s25 }
  0x1e   : > { %p30_p12 = scmp.eq.s32.totalorder %s29_s23, 0  ;;  %p40_p0 = scmp.eq.s32.totalorder %s5597_s27, 0 }
  0x1f   : > { %p5740_p5 = por %p195_p2, %p39_p13  ;;  %p4711_p7 = scmp.lt.s32.totalorder %s5597_s27, 2 }
  0x20   : > { %s5736_s21 = scalar_select %p30_p12, %s5593_s26, %s32_s29  }
  0x21   : > { %p41_p3 = por %p40_p0, %p39_p13  ;;  %s279_s10 = sand.u32 1, %s5593_s26  }
  0x22   : > { %s4329_s18 = sshll.u32 %s279_s10, 8  ;;  %s4600_s13 = sshll.u32 %s5597_s27, 8 }
  0x23   : > { %s288_s11 = scalar_lea.hbm %s8386_s0, %s4600_s13  ;;  %s283_s14 = scalar_lea.vmem [#allocation2], %s4329_s18 }
  0x24   : > { %s291_s17 = sshll.u32 %s283_s14, 4  ;;  %s289_s19 = sshll.u32 %s288_s11, 4  ;;  %s292_s17 = int_to_ptr.vmem [resolvable:$true] %s291_s17  ;;  %s290_s19 = int_to_ptr.hbm [resolvable:$true] %s289_s19 }
  0x25   : > { %p5750_p10 = pnand %p4711_p7, %p41_p3  ;;  %s280_s23 = scalar_lea.sflag [#allocation3], %s279_s10 }
  0x26   : > { %s5493_s29 = sshra.s32 %s290_s19, 4  ;;  %s5500_s15 = scalar_lea.hbm %s8386_s0, 512  ;;  %s5494_s29 = int_to_ptr.hbm [resolvable:$true] %s5493_s29 }
  0x27   : > { %s5495_s1 = scalar_lea.hbm %s5494_s29, 256  ;;  %p5497_p11 = pneg %p5750_p10 }
  0x28   : > { %p5496_p2 = scmp.ne.s32.totalorder %s5494_s29, %s5495_s1  ;;  %p5501_p0 = scmp.lt.s32.totalorder %s5494_s29, %s8386_s0 }
  0x29   : > { %p5502_p3 = scmp.lt.s32.totalorder %s5500_s15, %s5495_s1 }
  0x2a   : > { %p5498_p12 = pnand %p5497_p11, %p5496_p2 }
  0x2b   : > { %p5503_p7 = por %p5502_p3, %p5501_p0 }
  0x2c   : > { %p5499_p13 = pneg %p5498_p12 }
  0x2e   : > { %p5504_p9 = pnand %p5503_p7, %p5499_p13 }
  0x30   : > { %5507 = shalt.err (!%p5504_p9)
}
  0x31   : > { %s5607_s10 = smov 128   ;;  %s5608_s14 = smov 8  }
  0x32   : > { %4702 = dma.hbm_to_vmem [thread:$0]  (!%p5750_p10), %s290_s19, 4096, %s292_s17, %s280_s23, %s5607_s10, %s5607_s10, %s5608_s14  }
  0x33   : > { %303 = sbr.rel (%p5696_p8) target bundleno = 1036 (0x40c), region = 48 }
  0x38   : > { %s5767_s13 = sand.u32 1, %s5589_s25  }
  0x39   : > { %s4333_s29 = sshll.u32 %s5767_s13, 8  ;;  %s306_s1 = scalar_lea.sflag [#allocation3], %s5767_s13 }
  0x3a   : > { %s5773_s18 = scalar_lea.vmem [#allocation2], %s4333_s29 }
  0x3b   : > { %5568 = dma.done.wait (%p5683_p4), %s306_s1, 4096  }
  0x3c   : > { %5570 = vsyncadd (%p5683_p4), %s306_s1, 4294963200 }
  0x3d   : > { %5572 = dma.done.wait (%p46_p1), [#allocation6], 4112  }
  0x3e   : > { %5574 = vsyncadd (%p46_p1), [#allocation6], 4294963184 }
  0x3f   : > { %5576 = dma.done.wait (%p46_p1), [#allocation9], 4160  }
  0x40   : > { %5578 = vsyncadd (%p46_p1), [#allocation9], 4294963136  ;;  %v5788_v0 = vld [vmem:[%s5773_s18] sm:$0xff]  ;;  %v5791_v1 = vld [vmem:[%s5773_s18 + $0x10] sm:$0xff]  ;;  %v5609_v36 = vmov 128.0   ;;  %s8001_s11 = scalar_lea.vmem [#allocation11], %s4333_s29 }
  0x41   : > { %396 = vadd.xlane.f32.xlu0 %v5788_v0  ;;  %400 = vadd.xlane.f32.xlu2 %v5791_v1  ;;  %v499_v2 = vmul.f32 %v5788_v0, %v5788_v0  ;;  %v5798_v3 = vld [vmem:[%s5773_s18 + $0x8] sm:$0xff]  ;;  %v5801_v4 = vld [vmem:[%s5773_s18 + $0x18] sm:$0xff]  ;;  %v501_v6 = vmul.f32 %v5791_v1, %v5791_v1  ;;  %v5810_v7 = vld [vmem:[%s5773_s18 + $0x20] sm:$0xff]  ;;  %4766 = vrcp.f32 %v5609_v36  ;;  %s4665_s29 = sshll.u32 %s5674_s28, 8  ;;  %s4208_s12 = sshll.u32 %s8001_s11, 4  ;;  %s4209_s12 = int_to_ptr.vmem [resolvable:$true] %s4208_s12 }
  0x42   : > { %v500_v5 = vmul.f32 %v5798_v3, %v5798_v3  ;;  %v502_v8 = vmul.f32 %v5801_v4, %v5801_v4  ;;  %v5816_v9 = vld [vmem:[%s5773_s18 + $0x28] sm:$0xff]  ;;  %v503_v11 = vmul.f32 %v5810_v7, %v5810_v7  ;;  %v5824_v12 = vld [vmem:[%s5773_s18 + $0x30] sm:$0xff]  ;;  %v5829_v14 = vld [vmem:[%s5773_s18 + $0x38] sm:$0xff]  ;;  %s4207_s30 = scalar_lea.hbm %s8393_s7, %s4665_s29  ;;  %s4196_s28 = scalar_lea.sflag [#allocation4], %s5767_s13 }
  0x43   : > { %531 = vadd.xlane.f32.xlu1 %v499_v2  ;;  %v504_v10 = vmul.f32 %v5816_v9, %v5816_v9  ;;  %v505_v13 = vmul.f32 %v5824_v12, %v5824_v12  ;;  %v506_v15 = vmul.f32 %v5829_v14, %v5829_v14  ;;  %v373_v16 = vld [vmem:[%s5773_s18 + $0x48] sm:$0xff]  ;;  %v372_v17 = vld [vmem:[%s5773_s18 + $0x40] sm:$0xff]  ;;  %v374_v19 = vld [vmem:[%s5773_s18 + $0x50] sm:$0xff]  ;;  %s4210_s17 = sshll.u32 %s4207_s30, 4  ;;  %s5543_s16 = scalar_lea.hbm %s8393_s7, 512  ;;  %s4211_s17 = int_to_ptr.hbm [resolvable:$true] %s4210_s17 }
  0x44   : > { %v507_v18 = vmul.f32 %v372_v17, %v372_v17  ;;  %v508_v20 = vmul.f32 %v373_v16, %v373_v16  ;;  %v375_v21 = vld [vmem:[%s5773_s18 + $0x58] sm:$0xff]  ;;  %v509_v23 = vmul.f32 %v374_v19, %v374_v19  ;;  %v376_v24 = vld [vmem:[%s5773_s18 + $0x60] sm:$0xff]  ;;  %v377_v26 = vld [vmem:[%s5773_s18 + $0x68] sm:$0xff]  ;;  %s5537_s19 = sshra.s32 %s4211_s17, 4  ;;  %s5538_s19 = int_to_ptr.hbm [resolvable:$true] %s5537_s19 }
  0x45   : > { %v510_v22 = vmul.f32 %v375_v21, %v375_v21  ;;  %v511_v25 = vmul.f32 %v376_v24, %v376_v24  ;;  %v512_v27 = vmul.f32 %v377_v26, %v377_v26  ;;  %v379_v28 = vld [vmem:[%s5773_s18 + $0x78] sm:$0xff]  ;;  %v378_v29 = vld [vmem:[%s5773_s18 + $0x70] sm:$0xff]  ;;  %v380_v31 = vld [vmem:[%s5773_s18 + $0x80] sm:$0xff]  ;;  %s5539_s20 = scalar_lea.hbm %s5538_s19, 256  ;;  %p5544_p9 = scmp.lt.s32.totalorder %s5538_s19, %s8393_s7 }
  0x46   : > { %v513_v30 = vmul.f32 %v378_v29, %v378_v29  ;;  %v514_v32 = vmul.f32 %v379_v28, %v379_v28  ;;  %v381_v33 = vld [vmem:[%s5773_s18 + $0x88] sm:$0xff]  ;;  %v515_v35 = vmul.f32 %v380_v31, %v380_v31  ;;  %v382_v37 = vld [vmem:[%s5773_s18 + $0x90] sm:$0xff]  ;;  %v4453_v40 = vld [vmem:[#allocation7 + $0xe0] sm:$0xf]  ;;  %p5540_p1 = scmp.ne.s32.totalorder %s5538_s19, %s5539_s20  ;;  %p5545_p10 = scmp.lt.s32.totalorder %s5543_s16, %s5539_s20 }
  0x47   : > { %v516_v34 = vmul.f32 %v381_v33, %v381_v33  ;;  %v5846_v38 = vpop.eup %4766  ;;  %v517_v39 = vmul.f32 %v382_v37, %v382_v37  ;;  %v4631_v41 = vld [vmem:[#allocation7 + $0xec] sm:$0xf0]  ;;  %v4629_v42 = vld [vmem:[#allocation7 + $0xe4] sm:$0xf]  ;;  %v4455_v44 = vld [vmem:[#allocation7 + $0xf0] sm:$0xf0] }
  0x48   : > { %v4454_v43 = vor.u32 %v4631_v41, %v4453_v40  ;;  %v4461_v45 = vld [vmem:[#allocation7 + $0xe8] sm:$0xf]  ;;  %v4632_v46 = vld [vmem:[#allocation7 + $0xf4] sm:$0xf0]  ;;  %v4458_v48 = vor.u32 %v4629_v42, %v4455_v44  ;;  %v4630_v50 = vld [vmem:[#allocation7 + $0xec] sm:$0xf]  ;;  %vm465_vm0 = vweird.f32 %v5846_v38  ;;  %p5541_p4 = pnand %p5540_p1, %p5740_p5  ;;  %p5546_p2 = por %p5545_p10, %p5544_p9 }
  0x49   : > { %398 = vadd.xlane.f32.xlu0 %v5798_v3  ;;  %402 = vadd.xlane.f32.xlu2 %v5801_v4  ;;  %v383_v47 = vld [vmem:[%s5773_s18 + $0x98] sm:$0xff]  ;;  %v4462_v49 = vor.u32 %v4632_v46, %v4461_v45  ;;  %v461_v52 = vmul.f32 128.0, %v5846_v38  ;;  %v4437_v54 = vld [vmem:[#allocation7 + $0xc0] sm:$0xf]  ;;  %v4627_v55 = vld [vmem:[#allocation7 + $0xcc] sm:$0xf0] }
  0x4a   : > { %v4463_v51 = vld [vmem:[#allocation7 + $0xf8] sm:$0xf0]  ;;  %1397 = vmatpush.bf16.msra.mxu0 %v4454_v43  ;;  %1486 = vmatpush.bf16.msra.mxu1 %v4458_v48  ;;  %v4625_v56 = vld [vmem:[#allocation7 + $0xc4] sm:$0xf]  ;;  %v4438_v57 = vor.u32 %v4627_v55, %v4437_v54  ;;  %v4439_v58 = vld [vmem:[#allocation7 + $0xd0] sm:$0xf0]  ;;  %p5542_p8 = pneg %p5541_p4 }
  0x4b   : > { %533 = vadd.xlane.f32.xlu1 %v500_v5  ;;  %v4466_v53 = vor.u32 %v4630_v50, %v4463_v51  ;;  %1575 = vmatpush.bf16.msra.mxu2 %v4462_v49  ;;  %v4445_v59 = vld [vmem:[#allocation7 + $0xc8] sm:$0xf]  ;;  %v4628_v60 = vld [vmem:[#allocation7 + $0xd4] sm:$0xf0]  ;;  %v4442_v61 = vor.u32 %v4625_v56, %v4439_v58  ;;  %v4626_v63 = vld [vmem:[#allocation7 + $0xcc] sm:$0xf] }
  0x4c   : > { %v4446_v62 = vor.u32 %v4628_v60, %v4445_v59  ;;  %v4447_v2 = vld [vmem:[#allocation7 + $0xd8] sm:$0xf0]  ;;  %v462_v5 = vsub.f32 1.0, %v461_v52  ;;  %v4389_v42 = vld [vmem:[#allocation7 + $0x60] sm:$0xf]  ;;  %p5547_p11 = pnand %p5546_p2, %p5542_p8 }
  0x4d   : > { %1664 = vmatpush.bf16.msra.mxu3 %v4466_v53  ;;  %v4415_v36 = vld [vmem:[#allocation7 + $0x98] sm:$0xf0]  ;;  %v4615_v43 = vld [vmem:[#allocation7 + $0x6c] sm:$0xf0]  ;;  %v4613_v44 = vld [vmem:[#allocation7 + $0x64] sm:$0xf] }
  0x4e   : > { %1398 = vmatpush.bf16.msra.mxu0 %v4438_v57  ;;  %1487 = vmatpush.bf16.msra.mxu1 %v4442_v61  ;;  %v4390_v46 = vor.u32 %v4615_v43, %v4389_v42  ;;  %v4397_v48 = vld [vmem:[#allocation7 + $0x68] sm:$0xf]  ;;  %v4616_v49 = vld [vmem:[#allocation7 + $0x74] sm:$0xf0]  ;;  %v4614_v52 = vld [vmem:[#allocation7 + $0x6c] sm:$0xf] }
  0x4f   : > { %1576 = vmatpush.bf16.msra.mxu2 %v4446_v62  ;;  %v4398_v51 = vor.u32 %v4616_v49, %v4397_v48  ;;  %v4399_v53 = vld [vmem:[#allocation7 + $0x78] sm:$0xf0]  ;;  %v4373_v56 = vld [vmem:[#allocation7 + $0x40] sm:$0xf]  ;;  %v4611_v57 = vld [vmem:[#allocation7 + $0x4c] sm:$0xf0] }
  0x50   : > { %v4402_v54 = vor.u32 %v4614_v52, %v4399_v53  ;;  %v4609_v58 = vld [vmem:[#allocation7 + $0x44] sm:$0xf]  ;;  %v4374_v59 = vor.u32 %v4611_v57, %v4373_v56  ;;  %v4375_v60 = vld [vmem:[#allocation7 + $0x50] sm:$0xf0]  ;;  %v4381_v61 = vld [vmem:[#allocation7 + $0x48] sm:$0xf] }
  0x51   : > { %535 = vadd.xlane.f32.xlu0 %v501_v6  ;;  %404 = vadd.xlane.f32.xlu2 %v5810_v7  ;;  %v518_v6 = vmul.f32 %v383_v47, %v383_v47  ;;  %v4612_v62 = vld [vmem:[#allocation7 + $0x54] sm:$0xf0] }
  0x52   : > { %v387_v49 = vld [vmem:[%s5773_s18 + $0xb8] sm:$0xff] }
  0x53   : > { %537 = vadd.xlane.f32.xlu1 %v502_v8  ;;  %v4450_v8 = vor.u32 %v4626_v63, %v4447_v2  ;;  %v522_v53 = vmul.f32 %v387_v49, %v387_v49 }
  0x55   : > { %1665 = vmatpush.bf16.msra.mxu3 %v4450_v8  ;;  %v4610_v8 = vld [vmem:[#allocation7 + $0x4c] sm:$0xf] }
  0x59   : > { %406 = vadd.xlane.f32.xlu0 %v5816_v9  ;;  %541 = vadd.xlane.f32.xlu2 %v504_v10  ;;  %v4421_v10 = vld [vmem:[#allocation7 + $0xa0] sm:$0xf] }
  0x5b   : > { %539 = vadd.xlane.f32.xlu1 %v503_v11  ;;  %v4623_v11 = vld [vmem:[#allocation7 + $0xac] sm:$0xf0] }
  0x61   : > { %408 = vadd.xlane.f32.xlu0 %v5824_v12  ;;  %543 = vadd.xlane.f32.xlu2 %v505_v13  ;;  %v4621_v13 = vld [vmem:[#allocation7 + $0xa4] sm:$0xf] }
  0x63   : > { %410 = vadd.xlane.f32.xlu1 %v5829_v14 }
  0x69   : > { %545 = vadd.xlane.f32.xlu0 %v506_v15  ;;  %414 = vadd.xlane.f32.xlu2 %v373_v16  ;;  %v384_v15 = vld [vmem:[%s5773_s18 + $0xa0] sm:$0xff]  ;;  %v4422_v16 = vor.u32 %v4623_v11, %v4421_v10 }
  0x6a   : > { %v519_v41 = vmul.f32 %v384_v15, %v384_v15 }
  0x6b   : > { %412 = vadd.xlane.f32.xlu1 %v372_v17  ;;  %v4423_v17 = vld [vmem:[#allocation7 + $0xb0] sm:$0xf0]  ;;  %1399 = vmatpush.bf16.msra.mxu0 %v4422_v16 }
  0x71   : > { %547 = vadd.xlane.f32.xlu0 %v507_v18  ;;  %416 = vadd.xlane.f32.xlu2 %v374_v19  ;;  %v4429_v18 = vld [vmem:[#allocation7 + $0xa8] sm:$0xf]  ;;  %v4426_v19 = vor.u32 %v4621_v13, %v4423_v17  ;;  %v4357_v17 = vld [vmem:[#allocation7 + $0x20] sm:$0xf] }
  0x73   : > { %549 = vadd.xlane.f32.xlu1 %v508_v20  ;;  %v4624_v20 = vld [vmem:[#allocation7 + $0xb4] sm:$0xf0]  ;;  %1488 = vmatpush.bf16.msra.mxu1 %v4426_v19  ;;  %v4605_v19 = vld [vmem:[#allocation7 + $0x24] sm:$0xf] }
  0x79   : > { %418 = vadd.xlane.f32.xlu0 %v375_v21  ;;  %553 = vadd.xlane.f32.xlu2 %v510_v22  ;;  %v4622_v21 = vld [vmem:[#allocation7 + $0xac] sm:$0xf]  ;;  %v4431_v22 = vld [vmem:[#allocation7 + $0xb8] sm:$0xf0] }
  0x7b   : > { %551 = vadd.xlane.f32.xlu1 %v509_v23  ;;  %v4430_v23 = vor.u32 %v4624_v20, %v4429_v18  ;;  %v4607_v18 = vld [vmem:[#allocation7 + $0x2c] sm:$0xf0] }
  0x7c   : > { %v386_v20 = vld [vmem:[%s5773_s18 + $0xb0] sm:$0xff] }
  0x7d   : > { %1577 = vmatpush.bf16.msra.mxu2 %v4430_v23  ;;  %v4365_v23 = vld [vmem:[#allocation7 + $0x28] sm:$0xf] }
  0x81   : > { %420 = vadd.xlane.f32.xlu0 %v376_v24  ;;  %555 = vadd.xlane.f32.xlu2 %v511_v25  ;;  %v4434_v24 = vor.u32 %v4622_v21, %v4431_v22  ;;  %v463_v25 = vmul.f32 %v5846_v38, %v462_v5  ;;  %v4378_v5 = vor.u32 %v4609_v58, %v4375_v60  ;;  %v4359_v22 = vld [vmem:[#allocation7 + $0x30] sm:$0xf0] }
  0x82   : > { %v4358_v21 = vor.u32 %v4607_v18, %v4357_v17 }
  0x83   : > { %422 = vadd.xlane.f32.xlu1 %v377_v26  ;;  %v4405_v26 = vld [vmem:[#allocation7 + $0x80] sm:$0xf]  ;;  %1666 = vmatpush.bf16.msra.mxu3 %v4434_v24  ;;  %v464_v40 = vadd.f32 %v5846_v38, %v463_v25  ;;  %v4362_v25 = vor.u32 %v4605_v19, %v4359_v22 }
  0x85   : > { %v5856_v55 = vsel %vm465_vm0, %v5846_v38, %v464_v40  ;;  %v4383_v38 = vld [vmem:[#allocation7 + $0x58] sm:$0xf0]  ;;  %v4343_v40 = vld [vmem:[#allocation7 + $0x10] sm:$0xf0] }
  0x86   : > { %v4386_v11 = vor.u32 %v4610_v8, %v4383_v38 }
  0x89   : > { %557 = vadd.xlane.f32.xlu0 %v512_v27  ;;  %426 = vadd.xlane.f32.xlu2 %v379_v28  ;;  %v4619_v27 = vld [vmem:[#allocation7 + $0x8c] sm:$0xf0]  ;;  %v4617_v28 = vld [vmem:[#allocation7 + $0x84] sm:$0xf] }
  0x8b   : > { %424 = vadd.xlane.f32.xlu1 %v378_v29  ;;  %v4406_v29 = vor.u32 %v4619_v27, %v4405_v26  ;;  %v4608_v26 = vld [vmem:[#allocation7 + $0x34] sm:$0xf0]  ;;  %v4606_v27 = vld [vmem:[#allocation7 + $0x2c] sm:$0xf] }
  0x8d   : > { %1400 = vmatpush.bf16.msra.mxu0 %v4406_v29  ;;  %v4366_v29 = vor.u32 %v4608_v26, %v4365_v23 }
  0x91   : > { %559 = vadd.xlane.f32.xlu0 %v513_v30  ;;  %428 = vadd.xlane.f32.xlu2 %v380_v31  ;;  %v4407_v30 = vld [vmem:[#allocation7 + $0x90] sm:$0xf0]  ;;  %v4413_v31 = vld [vmem:[#allocation7 + $0x88] sm:$0xf] }
  0x92   : > { %1401 = vmatpush.bf16.msra.mxu0 %v4390_v46  ;;  %v4351_v46 = vld [vmem:[#allocation7 + $0x18] sm:$0xf0] }
  0x93   : > { %561 = vadd.xlane.f32.xlu1 %v514_v32  ;;  %v4620_v32 = vld [vmem:[#allocation7 + $0x94] sm:$0xf0] }
  0x96   : > { %1402 = vmatpush.bf16.msra.mxu0 %v4374_v59 }
  0x99   : > { %430 = vadd.xlane.f32.xlu0 %v381_v33  ;;  %565 = vadd.xlane.f32.xlu2 %v516_v34  ;;  %v4410_v33 = vor.u32 %v4617_v28, %v4407_v30  ;;  %v4414_v34 = vor.u32 %v4620_v32, %v4413_v31  ;;  %v4367_v28 = vld [vmem:[#allocation7 + $0x38] sm:$0xf0] }
  0x9a   : > { %1403 = vmatpush.bf16.msra.mxu0 %v4358_v21  ;;  %v4370_v30 = vor.u32 %v4606_v27, %v4367_v28 }
  0x9b   : > { %563 = vadd.xlane.f32.xlu1 %v515_v35  ;;  %v4618_v35 = vld [vmem:[#allocation7 + $0x8c] sm:$0xf]  ;;  %1489 = vmatpush.bf16.msra.mxu1 %v4410_v33 }
  0x9c   : > { %1578 = vmatpush.bf16.msra.mxu2 %v4414_v34  ;;  %v4341_v34 = vld [vmem:[#allocation7] sm:$0xf] }
  0xa0   : > { %1579 = vmatpush.bf16.msra.mxu2 %v4398_v51 }
  0xa1   : > { %432 = vadd.xlane.f32.xlu0 %v382_v37  ;;  %567 = vadd.xlane.f32.xlu2 %v517_v39  ;;  %v4418_v37 = vor.u32 %v4618_v35, %v4415_v36  ;;  %v385_v39 = vld [vmem:[%s5773_s18 + $0xa8] sm:$0xff]  ;;  %v4603_v35 = vld [vmem:[#allocation7 + $0xc] sm:$0xf0] }
  0xa2   : > { %v520_v45 = vmul.f32 %v385_v39, %v385_v39 }
  0xa3   : > { %434 = vadd.xlane.f32.xlu1 %v383_v47  ;;  %v4391_v47 = vld [vmem:[#allocation7 + $0x70] sm:$0xf0]  ;;  %1667 = vmatpush.bf16.msra.mxu3 %v4418_v37  ;;  %v4342_v37 = vor.u32 %v4603_v35, %v4341_v34 }
  0xa4   : > { %v4394_v50 = vor.u32 %v4613_v44, %v4391_v47  ;;  %v4604_v44 = vld [vmem:[#allocation7 + $0x14] sm:$0xf0] }
  0xa5   : > { %1404 = vmatpush.bf16.msra.mxu0 %v4342_v37 }
  0xa6   : > { %1490 = vmatpush.bf16.msra.mxu1 %v4394_v50 }
  0xa7   : > { %1668 = vmatpush.bf16.msra.mxu3 %v4402_v54  ;;  %v521_v54 = vmul.f32 %v386_v20, %v386_v20 }
  0xa9   : > { %569 = vadd.xlane.f32.xlu0 %v518_v6  ;;  %438 = vadd.xlane.f32.xlu2 %v385_v39  ;;  %v4382_v6 = vor.u32 %v4612_v62, %v4381_v61  ;;  %v4601_v39 = vld [vmem:[#allocation7 + $0x4] sm:$0xf] }
  0xaa   : > { %1491 = vmatpush.bf16.msra.mxu1 %v4378_v5  ;;  %v4346_v43 = vor.u32 %v4601_v39, %v4343_v40 }
  0xab   : > { %436 = vadd.xlane.f32.xlu1 %v384_v15  ;;  %1580 = vmatpush.bf16.msra.mxu2 %v4382_v6 }
  0xac   : > { %1669 = vmatpush.bf16.msra.mxu3 %v4386_v11 }
  0xae   : > { %1492 = vmatpush.bf16.msra.mxu1 %v4362_v25 }
  0xaf   : > { %1581 = vmatpush.bf16.msra.mxu2 %v4366_v29 }
  0xb0   : > { %1670 = vmatpush.bf16.msra.mxu3 %v4370_v30 }
  0xb1   : > { %571 = vadd.xlane.f32.xlu0 %v519_v41  ;;  %440 = vadd.xlane.f32.xlu2 %v386_v20  ;;  %v4349_v41 = vld [vmem:[#allocation7 + $0x8] sm:$0xf] }
  0xb2   : > { %1493 = vmatpush.bf16.msra.mxu1 %v4346_v43  ;;  %v4350_v51 = vor.u32 %v4604_v44, %v4349_v41 }
  0xb3   : > { %573 = vadd.xlane.f32.xlu1 %v520_v45  ;;  %v4602_v45 = vld [vmem:[#allocation7 + $0xc] sm:$0xf] }
  0xb4   : > { %v397_v63 = vpop.xlane.xlu0 %396  ;;  %v401_v2 = vpop.xlane.xlu2 %400  ;;  %v4354_v52 = vor.u32 %v4602_v45, %v4351_v46  ;;  %1582 = vmatpush.bf16.msra.mxu2 %v4350_v51 }
  0xb5   : > { %v5859_v10 = vmul.f32 %v5856_v55, %v397_v63  ;;  %v5872_v47 = vmul.f32 %v5856_v55, %v401_v2 }
  0xb6   : > { %v532_v13 = vpop.xlane.xlu1 %531  ;;  %1671 = vmatpush.bf16.msra.mxu3 %v4354_v52 }
  0xb7   : > { %v627_v15 = vmul.f32 %v5859_v10, %v5859_v10  ;;  %v595_v16 = vmul.f32 %v532_v13, %v5856_v55  ;;  %v629_v58 = vmul.f32 %v5872_v47, %v5872_v47  ;;  %v691_v43 = vsub.f32 %v5788_v0, %v5859_v10 }
  0xb9   : > { %v659_v24 = vsub.f32 %v595_v16, %v627_v15  ;;  %442 = vadd.xlane.f32.xlu0 %v387_v49  ;;  %577 = vadd.xlane.f32.xlu2 %v522_v53  ;;  %v388_v16 = vld [vmem:[%s5773_s18 + $0xc0] sm:$0xff] }
  0xba   : > { %v523_v37 = vmul.f32 %v388_v16, %v388_v16 }
  0xbb   : > { %v5865_v31 = vadd.f32 1e-05, %v659_v24  ;;  %575 = vadd.xlane.f32.xlu1 %v521_v54  ;;  %v5932_v54 = vld [vmem:[#allocation5] ss:$0 sm:$0xff] }
  0xbc   : > { %v399_v32 = vpop.xlane.xlu0 %398  ;;  %v403_v33 = vpop.xlane.xlu2 %402 }
  0xbd   : > { %v5868_v36 = vmul.f32 %v5856_v55, %v399_v32  ;;  %4768 = vrsqrt.f32 %v5865_v31  ;;  %v5879_v56 = vmul.f32 %v5856_v55, %v403_v33  ;;  %vm761_vm2 = vweird.f32 %v5865_v31  ;;  %v389_v33 = vld [vmem:[%s5773_s18 + $0xc8] sm:$0xff] }
  0xbe   : > { %v534_v42 = vpop.xlane.xlu1 %533  ;;  %v524_v39 = vmul.f32 %v389_v33, %v389_v33 }
  0xbf   : > { %v628_v48 = vmul.f32 %v5868_v36, %v5868_v36  ;;  %v596_v50 = vmul.f32 %v534_v42, %v5856_v55  ;;  %v630_v5 = vmul.f32 %v5879_v56, %v5879_v56 }
  0xc1   : > { %v660_v57 = vsub.f32 %v596_v50, %v628_v48  ;;  %444 = vadd.xlane.f32.xlu0 %v388_v16  ;;  %579 = vadd.xlane.f32.xlu2 %v523_v37 }
  0xc3   : > { %v4769_v59 = vpop.eup %4768  ;;  %v5883_v60 = vadd.f32 1e-05, %v660_v57  ;;  %446 = vadd.xlane.f32.xlu1 %v389_v33 }
  0xc4   : > { %v536_v61 = vpop.xlane.xlu0 %535  ;;  %v405_v62 = vpop.xlane.xlu2 %404  ;;  %v756_v63 = vmul.f32 %v4769_v59, %v5865_v31  ;;  %vm762_vm1 = vweird.f32 %v4769_v59 }
  0xc5   : > { %v597_v2 = vmul.f32 %v536_v61, %v5856_v55  ;;  %4770 = vrsqrt.f32 %v5883_v60  ;;  %v5895_v17 = vmul.f32 %v5856_v55, %v405_v62  ;;  %vm5912_vm3 = vmor %vm761_vm2, %vm762_vm1  ;;  %vm771_vm5 = vweird.f32 %v5883_v60 }
  0xc6   : > { %v538_v6 = vpop.xlane.xlu1 %537  ;;  %v757_v8 = vmul.f32 %v4769_v59, %v756_v63 }
  0xc7   : > { %v661_v38 = vsub.f32 %v597_v2, %v629_v58  ;;  %v598_v11 = vmul.f32 %v538_v6, %v5856_v55  ;;  %v631_v27 = vmul.f32 %v5895_v17, %v5895_v17  ;;  %v692_v58 = vsub.f32 %v5798_v3, %v5868_v36  ;;  %v4664_v6 = vld [vmem:[#allocation10 + $0xf8] sm:$0xff] }
  0xc8   : > { %v758_v13 = vmul.f32 0.5, %v757_v8  ;;  %v5950_v36 = vld [vmem:[%s8388_s2] ss:$0 sm:$0xff]  ;;  %4074 = vmatpush.bf16.msrb.mxu3 %v4664_v6 }
  0xc9   : > { %v5891_v15 = vadd.f32 1e-05, %v661_v38  ;;  %v662_v18 = vsub.f32 %v598_v11, %v630_v5  ;;  %581 = vadd.xlane.f32.xlu0 %v524_v39  ;;  %v4640_v5 = vld [vmem:[#allocation10 + $0x38] sm:$0xff] }
  0xca   : > { %v759_v19 = vsub.f32 1.5, %v758_v13  ;;  %v4648_v11 = vld [vmem:[#allocation10 + $0x78] sm:$0xff]  ;;  %3807 = vmatpush.bf16.msrb.mxu0 %v4640_v5 }
  0xcb   : > { %4772 = vrsqrt.f32 %v5891_v15  ;;  %v4771_v20 = vpop.eup %4770  ;;  %v5898_v21 = vadd.f32 1e-05, %v662_v18  ;;  %3896 = vmatpush.bf16.msrb.mxu1 %v4648_v11  ;;  %vm781_vm11 = vweird.f32 %v5891_v15 }
  0xcc   : > { %v407_v22 = vpop.xlane.xlu0 %406  ;;  %v542_v23 = vpop.xlane.xlu2 %541  ;;  %v760_v24 = vmul.f32 %v4769_v59, %v759_v19  ;;  %v766_v25 = vmul.f32 %v4771_v20, %v5883_v60  ;;  %vm772_vm4 = vweird.f32 %v4771_v20  ;;  %v4656_v60 = vld [vmem:[#allocation10 + $0xb8] sm:$0xff] }
  0xcd   : > { %v5902_v26 = vmul.f32 %v5856_v55, %v407_v22  ;;  %4774 = vrsqrt.f32 %v5898_v21  ;;  %v600_v28 = vmul.f32 %v542_v23, %v5856_v55  ;;  %vm773_vm6 = vmor %vm771_vm5, %vm772_vm4  ;;  %3985 = vmatpush.bf16.msrb.mxu2 %v4656_v60  ;;  %v390_v22 = vld [vmem:[%s5773_s18 + $0xd0] sm:$0xff]  ;;  %vm791_vm8 = vweird.f32 %v5898_v21 }
  0xce   : > { %v540_v29 = vpop.xlane.xlu1 %539  ;;  %v767_v30 = vmul.f32 %v4771_v20, %v766_v25  ;;  %v764_v41 = vsel %vm5912_vm3, %v4769_v59, %v760_v24  ;;  %448 = vadd.xlane.f32.xlu1 %v390_v22 }
  0xcf   : > { %v632_v32 = vmul.f32 %v5902_v26, %v5902_v26  ;;  %v599_v35 = vmul.f32 %v540_v29, %v5856_v55  ;;  %v1075_v50 = vmul.f32 %v764_v41, %v691_v43 }
  0xd0   : > { %v768_v31 = vmul.f32 0.5, %v767_v30 }
  0xd1   : > { %v5917_v40 = vpop.eup %4772  ;;  %v664_v42 = vsub.f32 %v600_v28, %v632_v32  ;;  %v663_v45 = vsub.f32 %v599_v35, %v631_v27  ;;  %v1111_v3 = vmul.f32 %v5932_v54, %v1075_v50 }
  0xd2   : > { %v776_v44 = vmul.f32 %v5917_v40, %v5891_v15  ;;  %v769_v46 = vsub.f32 1.5, %v768_v31  ;;  %vm782_vm7 = vweird.f32 %v5917_v40  ;;  %v391_v15 = vld [vmem:[%s5773_s18 + $0xd8] sm:$0xff] }
  0xd3   : > { %v5925_v48 = vadd.f32 1e-05, %v664_v42  ;;  %v5927_v49 = vpop.eup %4774  ;;  %v5930_v52 = vadd.f32 1e-05, %v663_v45  ;;  %v1147_v30 = vadd.f32 %v5950_v36, %v1111_v3  ;;  %vm5993_vm12 = vmor %vm781_vm11, %vm782_vm7  ;;  %450 = vadd.xlane.f32.xlu2 %v391_v15 }
  0xd4   : > { %v777_v51 = vmul.f32 %v5917_v40, %v776_v44  ;;  %v409_v53 = vpop.xlane.xlu0 %408  ;;  %v770_v0 = vmul.f32 %v4771_v20, %v769_v46  ;;  %v786_v10 = vmul.f32 %v5927_v49, %v5898_v21  ;;  %v544_v57 = vpop.xlane.xlu2 %543  ;;  %vm792_vm9 = vweird.f32 %v5927_v49 }
  0xd5   : > { %4776 = vrsqrt.f32 %v5925_v48  ;;  %v5943_v2 = vmul.f32 %v5856_v55, %v409_v53  ;;  %v601_v38 = vmul.f32 %v544_v57, %v5856_v55  ;;  %vm5978_vm10 = vmor %vm791_vm8, %vm792_vm9  ;;  %v694_v21 = vsub.f32 %v5801_v4, %v5879_v56 }
  0xd6   : > { %v778_v59 = vmul.f32 0.5, %v777_v51  ;;  %4778 = vrsqrt.f32 %v5930_v52  ;;  %v411_v61 = vpop.xlane.xlu1 %410  ;;  %v774_v62 = vsel %vm773_vm6, %v4771_v20, %v770_v0  ;;  %v787_v63 = vmul.f32 %v5927_v49, %v786_v10 }
  0xd7   : > { %v1076_v8 = vmul.f32 %v774_v62, %v692_v58  ;;  %v633_v18 = vmul.f32 %v5943_v2, %v5943_v2  ;;  %v5955_v19 = vmul.f32 %v5856_v55, %v411_v61  ;;  %v693_v4 = vsub.f32 %v5791_v1, %v5872_v47 }
  0xd8   : > { %v779_v13 = vsub.f32 1.5, %v778_v59  ;;  %v788_v16 = vmul.f32 0.5, %v787_v63  ;;  %v525_v59 = vmul.f32 %v390_v22, %v390_v22  ;;  %v526_v62 = vmul.f32 %v391_v15, %v391_v15 }
  0xd9   : > { %v1112_v20 = vmul.f32 %v5932_v54, %v1076_v8  ;;  %v665_v28 = vsub.f32 %v601_v38, %v633_v18  ;;  %v634_v37 = vmul.f32 %v5955_v19, %v5955_v19  ;;  %vm811_vm13 = vweird.f32 %v5925_v48  ;;  %v4639_v18 = vld [vmem:[#allocation10 + $0x30] sm:$0xff] }
  0xda   : > { %v789_v24 = vsub.f32 1.5, %v788_v16  ;;  %v780_v33 = vmul.f32 %v5917_v40, %v779_v13  ;;  %583 = vadd.xlane.f32.xlu0 %v525_v59  ;;  %585 = vadd.xlane.f32.xlu1 %v526_v62  ;;  %v4655_v16 = vld [vmem:[#allocation10 + $0xb0] sm:$0xff]  ;;  %vm801_vm0 = vweird.f32 %v5930_v52 }
  0xdb   : > { %v5959_v23 = vpop.eup %4776  ;;  %v1148_v32 = vadd.f32 %v5950_v36, %v1112_v20  ;;  %v5997_v51 = vadd.f32 1e-05, %v665_v28  ;;  %v4663_v20 = vld [vmem:[#allocation10 + $0xf0] sm:$0xff]  ;;  %3986 = vmatpush.bf16.msrb.mxu2 %v4655_v16  ;;  %3808 = vmatpush.bf16.msrb.mxu0 %v4639_v18 }
  0xdc   : > { %v5964_v25 = vpop.eup %4778  ;;  %v806_v27 = vmul.f32 %v5959_v23, %v5925_v48  ;;  %v546_v29 = vpop.xlane.xlu0 %545  ;;  %v790_v34 = vmul.f32 %v5927_v49, %v789_v24  ;;  %vm812_vm14 = vweird.f32 %v5959_v23  ;;  %4075 = vmatpush.bf16.msrb.mxu3 %v4663_v20  ;;  %v5344_v20 = vld [vmem:[%s5773_s18 + $0x48] sm:$0xff] }
  0xdd   : > { %v796_v35 = vmul.f32 %v5964_v25, %v5930_v52  ;;  %v415_v39 = vpop.xlane.xlu2 %414  ;;  %v602_v42 = vmul.f32 %v546_v29, %v5856_v55  ;;  %v1179_v44 = vpack.c.bf16 %v1148_v32, %v1147_v30  ;;  %4780 = vrsqrt.f32 %v5997_v51  ;;  %v392_v29 = vld [vmem:[%s5773_s18 + $0xe0] sm:$0xff]  ;;  %vm6036_vm15 = vmor %vm811_vm13, %vm812_vm14 }
  0xde   : > { %v807_v31 = vmul.f32 %v5959_v23, %v806_v27  ;;  %v413_v43 = vpop.xlane.xlu1 %412  ;;  %v794_v45 = vsel %vm5978_vm10, %v5927_v49, %v790_v34  ;;  %v784_v49 = vsel %vm5993_vm12, %v5917_v40, %v780_v33  ;;  %v6006_v10 = vmul.f32 %v5856_v55, %v415_v39  ;;  %452 = vadd.xlane.f32.xlu2 %v392_v29 }
  0xdf   : > { %v797_v46 = vmul.f32 %v5964_v25, %v796_v35  ;;  %1405 = vmatmul.bf16.vlgmr.msra.gmra.mxu0 %v1179_v44  ;;  %1494 = vmatmul.bf16.vlgmr.msra.gmra.mxu1 %v1179_v44  ;;  %v666_v53 = vsub.f32 %v602_v42, %v634_v37  ;;  %v1078_v56 = vmul.f32 %v794_v45, %v694_v21  ;;  %vm802_vm1 = vweird.f32 %v5964_v25 }
  0xe0   : > { %1583 = vmatmul.bf16.vlgmr.msra.gmra.mxu2 %v1179_v44  ;;  %1672 = vmatmul.bf16.vlgmr.msra.gmra.mxu3 %v1179_v44  ;;  %v808_v0 = vmul.f32 0.5, %v807_v31  ;;  %v1077_v61 = vmul.f32 %v784_v49, %v693_v4  ;;  %v6012_v40 = vmul.f32 %v5856_v55, %v413_v43  ;;  %v636_v63 = vmul.f32 %v6006_v10, %v6006_v10  ;;  %vm6051_vm2 = vmor %vm801_vm0, %vm802_vm1  ;;  %v393_v49 = vld [vmem:[%s5773_s18 + $0xe8] sm:$0xff] }
  0xe1   : > { %v798_v57 = vmul.f32 0.5, %v797_v46  ;;  %v6008_v58 = vadd.f32 1e-05, %v666_v53  ;;  %v1114_v5 = vmul.f32 %v5932_v54, %v1078_v56  ;;  %v696_v45 = vsub.f32 %v5816_v9, %v5902_v26 }
  0xe2   : > { %v809_v47 = vsub.f32 1.5, %v808_v0  ;;  %v635_v38 = vmul.f32 %v6012_v40, %v6012_v40  ;;  %v1113_v13 = vmul.f32 %v5932_v54, %v1077_v61  ;;  %454 = vadd.xlane.f32.xlu0 %v393_v49  ;;  %vm821_vm5 = vweird.f32 %v5997_v51 }
  0xe3   : > { %4782 = vrsqrt.f32 %v6008_v58  ;;  %v799_v6 = vsub.f32 1.5, %v798_v57  ;;  %v6025_v22 = vpop.eup %4780  ;;  %v1150_v28 = vadd.f32 %v5950_v36, %v1114_v5  ;;  %vm831_vm3 = vweird.f32 %v6008_v58 }
  0xe4   : > { %v548_v1 = vpop.xlane.xlu0 %547  ;;  %v810_v24 = vmul.f32 %v5959_v23, %v809_v47  ;;  %v1149_v37 = vadd.f32 %v5950_v36, %v1113_v13  ;;  %v816_v48 = vmul.f32 %v6025_v22, %v5997_v51  ;;  %vm822_vm6 = vweird.f32 %v6025_v22 }
  0xe5   : > { %v417_v8 = vpop.xlane.xlu2 %416  ;;  %v603_v3 = vmul.f32 %v548_v1, %v5856_v55  ;;  %v800_v33 = vmul.f32 %v5964_v25, %v799_v6  ;;  %v4647_v1 = vld [vmem:[#allocation10 + $0x70] sm:$0xff]  ;;  %vm6110_vm8 = vmor %vm821_vm5, %vm822_vm6 }
  0xe6   : > { %v550_v60 = vpop.xlane.xlu1 %549  ;;  %v814_v41 = vsel %vm6036_vm15, %v5959_v23, %v810_v24  ;;  %v1180_v43 = vpack.c.bf16 %v1150_v28, %v1149_v37  ;;  %v695_v23 = vsub.f32 %v5810_v7, %v5895_v17  ;;  %v6068_v50 = vmul.f32 %v5856_v55, %v417_v8  ;;  %3897 = vmatpush.bf16.msrb.mxu1 %v4647_v1  ;;  %v394_v28 = vld [vmem:[%s5773_s18 + $0xf0] sm:$0xff] }
  0xe7   : > { %v604_v11 = vmul.f32 %v550_v60, %v5856_v55  ;;  %v667_v35 = vsub.f32 %v603_v3, %v635_v38  ;;  %v804_v46 = vsel %vm6051_vm2, %v5964_v25, %v800_v33  ;;  %v1080_v53 = vmul.f32 %v814_v41, %v696_v45 }
  0xe8   : > { %v817_v9 = vmul.f32 %v6025_v22, %v816_v48  ;;  %v528_v25 = vmul.f32 %v393_v49, %v393_v49  ;;  %v1079_v4 = vmul.f32 %v804_v46, %v695_v23  ;;  %v527_v17 = vmul.f32 %v392_v29, %v392_v29 }
  0xe9   : > { %v668_v27 = vsub.f32 %v604_v11, %v636_v63  ;;  %v6030_v30 = vpop.eup %4782  ;;  %v6065_v21 = vadd.f32 1e-05, %v667_v35  ;;  %v637_v59 = vmul.f32 %v6068_v50, %v6068_v50  ;;  %v1116_v60 = vmul.f32 %v5932_v54, %v1080_v53 }
  0xea   : > { %v826_v34 = vmul.f32 %v6030_v30, %v6008_v58  ;;  %589 = vadd.xlane.f32.xlu2 %v528_v25  ;;  %587 = vadd.xlane.f32.xlu1 %v527_v17  ;;  %v818_v57 = vmul.f32 0.5, %v817_v9  ;;  %v1115_v63 = vmul.f32 %v5932_v54, %v1079_v4  ;;  %vm832_vm4 = vweird.f32 %v6030_v30 }
  0xeb   : > { %v6056_v42 = vadd.f32 1e-05, %v668_v27  ;;  %v1152_v18 = vadd.f32 %v5950_v36, %v1116_v60  ;;  %vm6096_vm7 = vmor %vm831_vm3, %vm832_vm4  ;;  %456 = vadd.xlane.f32.xlu0 %v394_v28  ;;  %v529_v53 = vmul.f32 %v394_v28, %v394_v28  ;;  %vm841_vm11 = vweird.f32 %v6065_v21 }
  0xec   : > { %v419_v39 = vpop.xlane.xlu0 %418  ;;  %v827_v31 = vmul.f32 %v6030_v30, %v826_v34  ;;  %v819_v38 = vsub.f32 1.5, %v818_v57  ;;  %v1151_v16 = vadd.f32 %v5950_v36, %v1115_v63 }
  0xed   : > { %v6071_v15 = vmul.f32 %v5856_v55, %v419_v39  ;;  %v554_v26 = vpop.xlane.xlu2 %553  ;;  %4784 = vrsqrt.f32 %v6056_v42  ;;  %v698_v39 = vsub.f32 %v5829_v14, %v5955_v19  ;;  %v4638_v14 = vld [vmem:[#allocation10 + $0x28] sm:$0xff]  ;;  %vm851_vm9 = vweird.f32 %v6056_v42 }
  0xee   : > { %v552_v44 = vpop.xlane.xlu1 %551  ;;  %v828_v7 = vmul.f32 0.5, %v827_v31  ;;  %4786 = vrsqrt.f32 %v6065_v21  ;;  %v606_v0 = vmul.f32 %v554_v26, %v5856_v55  ;;  %v820_v29 = vmul.f32 %v6025_v22, %v819_v38  ;;  %v4662_v19 = vld [vmem:[#allocation10 + $0xe8] sm:$0xff]  ;;  %3809 = vmatpush.bf16.msrb.mxu0 %v4638_v14 }
  0xef   : > { %1410 = vmatmul.bf16.gmra.mxu0 %v1180_v43  ;;  %1499 = vmatmul.bf16.gmra.mxu1 %v1180_v43  ;;  %v638_v56 = vmul.f32 %v6071_v15, %v6071_v15  ;;  %v605_v61 = vmul.f32 %v552_v44, %v5856_v55  ;;  %v1181_v37 = vpack.c.bf16 %v1152_v18, %v1151_v16  ;;  %v5347_v16 = vld [vmem:[%s5773_s18 + $0x58] sm:$0xff] }
  0xf0   : > { %1588 = vmatmul.bf16.gmra.mxu2 %v1180_v43  ;;  %1677 = vmatmul.bf16.gmra.mxu3 %v1180_v43  ;;  %v829_v47 = vsub.f32 1.5, %v828_v7  ;;  %v697_v31 = vsub.f32 %v5824_v12, %v5943_v2  ;;  %v4654_v43 = vld [vmem:[#allocation10 + $0xa8] sm:$0xff]  ;;  %v824_v44 = vsel %vm6110_vm8, %v6025_v22, %v820_v29 }
  0xf1   : > { %v670_v8 = vsub.f32 %v606_v0, %v638_v56  ;;  %v669_v3 = vsub.f32 %v605_v61, %v637_v59  ;;  %3987 = vmatpush.bf16.msrb.mxu2 %v4654_v43  ;;  %4076 = vmatpush.bf16.msrb.mxu3 %v4662_v19 }
  0xf2   : > { %v830_v13 = vmul.f32 %v6030_v30, %v829_v47  ;;  %v1081_v9 = vmul.f32 %v824_v44, %v697_v31  ;;  %591 = vadd.xlane.f32.xlu2 %v529_v53  ;;  %v4646_v47 = vld [vmem:[#allocation10 + $0x68] sm:$0xff] }
  0xf3   : > { %v6085_v6 = vpop.eup %4784  ;;  %v6102_v27 = vadd.f32 1e-05, %v670_v8  ;;  %v6108_v51 = vadd.f32 1e-05, %v669_v3  ;;  %3898 = vmatpush.bf16.msrb.mxu1 %v4646_v47 }
  0xf4   : > { %v421_v62 = vpop.xlane.xlu0 %420  ;;  %v6089_v11 = vpop.eup %4786  ;;  %v846_v58 = vmul.f32 %v6085_v6, %v6056_v42  ;;  %v834_v34 = vsel %vm6096_vm7, %v6030_v30, %v830_v13  ;;  %v395_v30 = vld [vmem:[%s5773_s18 + $0xf8] sm:$0xff]  ;;  %vm852_vm10 = vweird.f32 %v6085_v6 }
  0xf5   : > { %v556_v24 = vpop.xlane.xlu2 %555  ;;  %v836_v32 = vmul.f32 %v6089_v11, %v6065_v21  ;;  %v6118_v35 = vmul.f32 %v5856_v55, %v421_v62  ;;  %4788 = vrsqrt.f32 %v6102_v27  ;;  %v1082_v45 = vmul.f32 %v834_v34, %v698_v39  ;;  %458 = vadd.xlane.f32.xlu1 %v395_v30  ;;  %vm6161_vm13 = vmor %vm851_vm9, %vm852_vm10  ;;  %v5345_v39 = vld [vmem:[%s5773_s18 + $0x40] sm:$0xff] }
  0xf6   : > { %v423_v5 = vpop.xlane.xlu1 %422  ;;  %v847_v41 = vmul.f32 %v6085_v6, %v846_v58  ;;  %4790 = vrsqrt.f32 %v6108_v51  ;;  %v607_v23 = vmul.f32 %v556_v24, %v5856_v55  ;;  %v530_v26 = vmul.f32 %v395_v30, %v395_v30 }
  0xf7   : > { %v837_v46 = vmul.f32 %v6089_v11, %v836_v32  ;;  %v639_v12 = vmul.f32 %v6118_v35, %v6118_v35  ;;  %v6137_v2 = vmul.f32 %v5856_v55, %v423_v5  ;;  %v1118_v0 = vmul.f32 %v5932_v54, %v1082_v45 }
  0xf8   : > { %v848_v22 = vmul.f32 0.5, %v847_v41  ;;  %593 = vadd.xlane.f32.xlu0 %v530_v26  ;;  %v1117_v62 = vmul.f32 %v5932_v54, %v1081_v9  ;;  %vm842_vm12 = vweird.f32 %v6089_v11  ;;  %v700_v58 = vsub.f32 %v5344_v20, %v6006_v10 }
  0xf9   : > { %v838_v25 = vmul.f32 0.5, %v837_v46  ;;  %v640_v7 = vmul.f32 %v6137_v2, %v6137_v2  ;;  %v671_v17 = vsub.f32 %v607_v23, %v639_v12  ;;  %v1154_v3 = vadd.f32 %v5950_v36, %v1118_v0  ;;  %vm6174_vm14 = vmor %vm841_vm11, %vm842_vm12 }
  0xfa   : > { %v849_v59 = vsub.f32 1.5, %v848_v22  ;;  %v1153_v18 = vadd.f32 %v5950_v36, %v1117_v62  ;;  %v699_v41 = vsub.f32 %v5345_v39, %v6012_v40  ;;  %vm871_vm15 = vweird.f32 %v6102_v27  ;;  %v4653_v39 = vld [vmem:[#allocation10 + $0xa0] sm:$0xff] }
  0xfb   : > { %v6140_v4 = vpop.eup %4788  ;;  %v839_v63 = vsub.f32 1.5, %v838_v25  ;;  %v6155_v8 = vadd.f32 1e-05, %v671_v17  ;;  %vm861_vm1 = vweird.f32 %v6108_v51  ;;  %3988 = vmatpush.bf16.msrb.mxu2 %v4653_v39 }
  0xfc   : > { %v558_v52 = vpop.xlane.xlu0 %557  ;;  %v6146_v57 = vpop.eup %4790  ;;  %v866_v60 = vmul.f32 %v6140_v4, %v6102_v27  ;;  %v850_v42 = vmul.f32 %v6085_v6, %v849_v59  ;;  %v1182_v34 = vpack.c.bf16 %v1154_v3, %v1153_v18  ;;  %vm872_vm0 = vweird.f32 %v6140_v4 }
  0xfd   : > { %v427_v49 = vpop.xlane.xlu2 %426  ;;  %v608_v56 = vmul.f32 %v558_v52, %v5856_v55  ;;  %v856_v5 = vmul.f32 %v6146_v57, %v6108_v51  ;;  %v840_v24 = vmul.f32 %v6089_v11, %v839_v63  ;;  %4792 = vrsqrt.f32 %v6155_v8  ;;  %vm6218_vm3 = vmor %vm871_vm15, %vm872_vm0 }
  0xfe   : > { %v6120_v48 = vpop.xlane.xlu1 %424  ;;  %v867_v28 = vmul.f32 %v6140_v4, %v866_v60  ;;  %v854_v10 = vsel %vm6161_vm13, %v6085_v6, %v850_v42  ;;  %vm862_vm2 = vweird.f32 %v6146_v57  ;;  %v5346_v42 = vld [vmem:[%s5773_s18 + $0x50] sm:$0xff]  ;;  %v702_v18 = vsub.f32 %v5347_v16, %v6071_v15 }
  0xff   : > { %1415 = vmatmul.bf16.gmra.mxu0 %v1181_v37  ;;  %1504 = vmatmul.bf16.gmra.mxu1 %v1181_v37  ;;  %v672_v38 = vsub.f32 %v608_v56, %v640_v7  ;;  %v6172_v21 = vmul.f32 %v5856_v55, %v6120_v48  ;;  %v857_v32 = vmul.f32 %v6146_v57, %v856_v5  ;;  %vm6227_vm4 = vmor %vm861_vm1, %vm862_vm2  ;;  %vm881_vm5 = vweird.f32 %v6155_v8 }
 0x100   : > { %1593 = vmatmul.bf16.gmra.mxu2 %v1181_v37  ;;  %1682 = vmatmul.bf16.gmra.mxu3 %v1181_v37  ;;  %v6186_v37 = vmul.f32 %v5856_v55, %v427_v49  ;;  %v844_v31 = vsel %vm6174_vm14, %v6089_v11, %v840_v24  ;;  %v1084_v43 = vmul.f32 %v854_v10, %v700_v58  ;;  %v868_v44 = vmul.f32 0.5, %v867_v28 }
 0x101   : > { %v6180_v33 = vadd.f32 1e-05, %v672_v38  ;;  %v641_v30 = vmul.f32 %v6172_v21, %v6172_v21  ;;  %v858_v45 = vmul.f32 0.5, %v857_v32  ;;  %v1083_v11 = vmul.f32 %v844_v31, %v699_v41  ;;  %v4637_v41 = vld [vmem:[#allocation10 + $0x20] sm:$0xff] }
 0x102   : > { %v642_v40 = vmul.f32 %v6186_v37, %v6186_v37  ;;  %v869_v23 = vsub.f32 1.5, %v868_v44  ;;  %v1120_v49 = vmul.f32 %v5932_v54, %v1084_v43  ;;  %v4661_v31 = vld [vmem:[#allocation10 + $0xe0] sm:$0xff]  ;;  %3810 = vmatpush.bf16.msrb.mxu0 %v4637_v41 }
 0x103   : > { %4794 = vrsqrt.f32 %v6180_v33  ;;  %v6200_v14 = vpop.eup %4792  ;;  %v859_v22 = vsub.f32 1.5, %v858_v45  ;;  %v1119_v7 = vmul.f32 %v5932_v54, %v1083_v11  ;;  %v4645_v43 = vld [vmem:[#allocation10 + $0x60] sm:$0xff]  ;;  %4077 = vmatpush.bf16.msrb.mxu3 %v4661_v31  ;;  %vm891_vm8 = vweird.f32 %v6180_v33 }
 0x104   : > { %v560_v61 = vpop.xlane.xlu0 %559  ;;  %v876_v53 = vmul.f32 %v6200_v14, %v6155_v8  ;;  %v870_v0 = vmul.f32 %v6140_v4, %v869_v23  ;;  %v1156_v62 = vadd.f32 %v5950_v36, %v1120_v49  ;;  %3899 = vmatpush.bf16.msrb.mxu1 %v4645_v43  ;;  %vm882_vm6 = vweird.f32 %v6200_v14 }
 0x105   : > { %v429_v13 = vpop.xlane.xlu2 %428  ;;  %v609_v6 = vmul.f32 %v560_v61, %v5856_v55  ;;  %v860_v51 = vmul.f32 %v6146_v57, %v859_v22  ;;  %v1155_v5 = vadd.f32 %v5950_v36, %v1119_v7  ;;  %vm6283_vm7 = vmor %vm881_vm5, %vm882_vm6 }
 0x106   : > { %v562_v1 = vpop.xlane.xlu1 %561  ;;  %v6224_v61 = vmul.f32 %v5856_v55, %v429_v13  ;;  %v877_v47 = vmul.f32 %v6200_v14, %v876_v53  ;;  %v701_v13 = vsub.f32 %v5346_v42, %v6068_v50  ;;  %v874_v58 = vsel %vm6218_vm3, %v6140_v4, %v870_v0 }
 0x107   : > { %v610_v46 = vmul.f32 %v562_v1, %v5856_v55  ;;  %v673_v19 = vsub.f32 %v609_v6, %v641_v30  ;;  %v864_v24 = vsel %vm6227_vm4, %v6146_v57, %v860_v51  ;;  %v1183_v29 = vpack.c.bf16 %v1156_v62, %v1155_v5 }
 0x108   : > { %v643_v28 = vmul.f32 %v6224_v61, %v6224_v61  ;;  %v878_v32 = vmul.f32 0.5, %v877_v47  ;;  %v1086_v30 = vmul.f32 %v874_v58, %v702_v18  ;;  %v1085_v6 = vmul.f32 %v864_v24, %v701_v13  ;;  %v5348_v13 = vld [vmem:[%s5773_s18 + $0x60] sm:$0xff] }
 0x109   : > { %v674_v9 = vsub.f32 %v610_v46, %v642_v40  ;;  %v6207_v25 = vpop.eup %4794  ;;  %v6215_v56 = vadd.f32 1e-05, %v673_v19  ;;  %v703_v16 = vsub.f32 %v5348_v13, %v6118_v35 }
 0x10a   : > { %v886_v63 = vmul.f32 %v6207_v25, %v6180_v33  ;;  %v879_v44 = vsub.f32 1.5, %v878_v32  ;;  %vm892_vm9 = vweird.f32 %v6207_v25 }
 0x10b   : > { %v6234_v60 = vadd.f32 1e-05, %v674_v9  ;;  %4796 = vrsqrt.f32 %v6215_v56  ;;  %v1121_v9 = vmul.f32 %v5932_v54, %v1085_v6  ;;  %vm6308_vm10 = vmor %vm891_vm8, %vm892_vm9  ;;  %vm901_vm11 = vweird.f32 %v6215_v56 }
 0x10c   : > { %v431_v48 = vpop.xlane.xlu0 %430  ;;  %v887_v50 = vmul.f32 %v6207_v25, %v886_v63  ;;  %v880_v7 = vmul.f32 %v6200_v14, %v879_v44 }
 0x10d   : > { %v566_v12 = vpop.xlane.xlu2 %565  ;;  %v6213_v17 = vmul.f32 %v5856_v55, %v431_v48  ;;  %4798 = vrsqrt.f32 %v6234_v60  ;;  %vm911_vm13 = vweird.f32 %v6234_v60 }
 0x10e   : > { %v564_v52 = vpop.xlane.xlu1 %563  ;;  %v612_v3 = vmul.f32 %v566_v12, %v5856_v55  ;;  %v888_v45 = vmul.f32 0.5, %v887_v50  ;;  %v884_v33 = vsel %vm6283_vm7, %v6200_v14, %v880_v7 }
 0x10f   : > { %1420 = vmatmul.bf16.gmra.mxu0 %v1182_v34  ;;  %1509 = vmatmul.bf16.gmra.mxu1 %v1182_v34  ;;  %v644_v38 = vmul.f32 %v6213_v17, %v6213_v17  ;;  %v611_v15 = vmul.f32 %v564_v52, %v5856_v55  ;;  %v1087_v41 = vmul.f32 %v884_v33, %v703_v16 }
 0x110   : > { %1598 = vmatmul.bf16.gmra.mxu2 %v1182_v34  ;;  %1687 = vmatmul.bf16.gmra.mxu3 %v1182_v34 }
 0x111   : > { %v676_v34 = vsub.f32 %v612_v3, %v644_v38  ;;  %v6262_v52 = vpop.eup %4796  ;;  %v675_v40 = vsub.f32 %v611_v15, %v643_v28  ;;  %v1157_v38 = vadd.f32 %v5950_v36, %v1121_v9 }
 0x112   : > { %v896_v53 = vmul.f32 %v6262_v52, %v6215_v56  ;;  %vm902_vm12 = vweird.f32 %v6262_v52 }
 0x113   : > { %v6264_v46 = vadd.f32 1e-05, %v676_v34  ;;  %v6269_v12 = vpop.eup %4798  ;;  %v6281_v8 = vadd.f32 1e-05, %v675_v40  ;;  %v5349_v34 = vld [vmem:[%s5773_s18 + $0x68] sm:$0xff]  ;;  %vm6370_vm15 = vmor %vm901_vm11, %vm902_vm12 }
 0x114   : > { %v433_v26 = vpop.xlane.xlu0 %432  ;;  %v906_v59 = vmul.f32 %v6269_v12, %v6234_v60  ;;  %v897_v5 = vmul.f32 %v6262_v52, %v896_v53  ;;  %vm912_vm14 = vweird.f32 %v6269_v12 }
 0x115   : > { %v568_v20 = vpop.xlane.xlu2 %567  ;;  %v6257_v4 = vmul.f32 %v5856_v55, %v433_v26  ;;  %v1122_v26 = vmul.f32 %v5932_v54, %v1086_v30  ;;  %4800 = vrsqrt.f32 %v6264_v46  ;;  %vm6384_vm0 = vmor %vm911_vm13, %vm912_vm14  ;;  %vm931_vm1 = vweird.f32 %v6264_v46 }
 0x116   : > { %v435_v27 = vpop.xlane.xlu1 %434  ;;  %v613_v19 = vmul.f32 %v568_v20, %v5856_v55  ;;  %4802 = vrsqrt.f32 %v6281_v8  ;;  %v907_v58 = vmul.f32 %v6269_v12, %v906_v59  ;;  %vm921_vm4 = vweird.f32 %v6281_v8 }
 0x117   : > { %v6260_v57 = vmul.f32 %v5856_v55, %v435_v27  ;;  %v645_v11 = vmul.f32 %v6257_v4, %v6257_v4  ;;  %v889_v27 = vsub.f32 1.5, %v888_v45  ;;  %v1158_v3 = vadd.f32 %v5950_v36, %v1122_v26 }
 0x118   : > { %v908_v30 = vmul.f32 0.5, %v907_v58 }
 0x119   : > { %v646_v23 = vmul.f32 %v6260_v57, %v6260_v57  ;;  %v677_v51 = vsub.f32 %v613_v19, %v645_v11  ;;  %v890_v18 = vmul.f32 %v6207_v25, %v889_v27  ;;  %v1184_v39 = vpack.c.bf16 %v1158_v3, %v1157_v38  ;;  %v5350_v38 = vld [vmem:[%s5773_s18 + $0x70] sm:$0xff] }
 0x11a   : > { %v1123_v11 = vmul.f32 %v5932_v54, %v1087_v41  ;;  %v705_v3 = vsub.f32 %v5350_v38, %v6172_v21 }
 0x11b   : > { %v6313_v24 = vadd.f32 1e-05, %v677_v51  ;;  %v6323_v15 = vpop.eup %4800  ;;  %v894_v31 = vsel %vm6308_vm10, %v6207_v25, %v890_v18 }
 0x11c   : > { %v570_v48 = vpop.xlane.xlu0 %569  ;;  %v6331_v43 = vpop.eup %4802  ;;  %v926_v44 = vmul.f32 %v6323_v15, %v6264_v46  ;;  %v1159_v13 = vadd.f32 %v5950_v36, %v1123_v11  ;;  %vm932_vm2 = vweird.f32 %v6323_v15 }
 0x11d   : > { %v614_v22 = vmul.f32 %v570_v48, %v5856_v55  ;;  %v439_v49 = vpop.xlane.xlu2 %438  ;;  %v898_v48 = vmul.f32 0.5, %v897_v5  ;;  %4804 = vrsqrt.f32 %v6313_v24  ;;  %vm6417_vm3 = vmor %vm931_vm1, %vm932_vm2  ;;  %vm922_vm5 = vweird.f32 %v6331_v43 }
 0x11e   : > { %v437_v10 = vpop.xlane.xlu1 %436  ;;  %v6296_v47 = vmul.f32 %v5856_v55, %v439_v49  ;;  %v927_v9 = vmul.f32 %v6323_v15, %v926_v44  ;;  %vm941_vm6 = vweird.f32 %v6313_v24  ;;  %vm6444_vm7 = vmor %vm921_vm4, %vm922_vm5 }
 0x11f   : > { %1425 = vmatmul.bf16.gmra.mxu0 %v1183_v29  ;;  %1514 = vmatmul.bf16.gmra.mxu1 %v1183_v29  ;;  %v6291_v62 = vmul.f32 %v5856_v55, %v437_v10  ;;  %v678_v1 = vsub.f32 %v614_v22, %v646_v23  ;;  %v704_v10 = vsub.f32 %v5349_v34, %v6137_v2  ;;  %v899_v40 = vsub.f32 1.5, %v898_v48 }
 0x120   : > { %1603 = vmatmul.bf16.gmra.mxu2 %v1183_v29  ;;  %1692 = vmatmul.bf16.gmra.mxu3 %v1183_v29  ;;  %v648_v14 = vmul.f32 %v6296_v47, %v6296_v47  ;;  %v909_v23 = vsub.f32 1.5, %v908_v30  ;;  %v916_v22 = vmul.f32 %v6331_v43, %v6281_v8  ;;  %v928_v20 = vmul.f32 0.5, %v927_v9 }
 0x121   : > { %v647_v28 = vmul.f32 %v6291_v62, %v6291_v62  ;;  %v6318_v29 = vadd.f32 1e-05, %v678_v1  ;;  %v1088_v45 = vmul.f32 %v894_v31, %v704_v10  ;;  %v900_v27 = vmul.f32 %v6262_v52, %v899_v40 }
 0x122   : > { %v910_v33 = vmul.f32 %v6269_v12, %v909_v23  ;;  %v917_v18 = vmul.f32 %v6331_v43, %v916_v22  ;;  %v929_v41 = vsub.f32 1.5, %v928_v20 }
 0x123   : > { %4806 = vrsqrt.f32 %v6318_v29  ;;  %v6354_v7 = vpop.eup %4804  ;;  %v1124_v0 = vmul.f32 %v5932_v54, %v1088_v45  ;;  %vm951_vm9 = vweird.f32 %v6318_v29 }
 0x124   : > { %v572_v63 = vpop.xlane.xlu0 %571  ;;  %v936_v58 = vmul.f32 %v6354_v7, %v6313_v24  ;;  %v914_v48 = vsel %vm6384_vm0, %v6269_v12, %v910_v33  ;;  %v918_v31 = vmul.f32 0.5, %v917_v18  ;;  %v930_v12 = vmul.f32 %v6323_v15, %v929_v41 }
 0x125   : > { %v615_v35 = vmul.f32 %v572_v63, %v5856_v55  ;;  %v441_v50 = vpop.xlane.xlu2 %440  ;;  %v1160_v60 = vadd.f32 %v5950_v36, %v1124_v0  ;;  %vm942_vm8 = vweird.f32 %v6354_v7 }
 0x126   : > { %v574_v42 = vpop.xlane.xlu1 %573  ;;  %v6337_v25 = vmul.f32 %v5856_v55, %v441_v50  ;;  %v5351_v50 = vld [vmem:[%s5773_s18 + $0x78] sm:$0xff]  ;;  %v919_v11 = vsub.f32 1.5, %v918_v31  ;;  %vm6475_vm11 = vmor %vm941_vm6, %vm942_vm8 }
 0x127   : > { %v616_v32 = vmul.f32 %v574_v42, %v5856_v55  ;;  %v679_v6 = vsub.f32 %v615_v35, %v647_v28  ;;  %v904_v35 = vsel %vm6370_vm15, %v6262_v52, %v900_v27  ;;  %v706_v34 = vsub.f32 %v5351_v50, %v6186_v37 }
 0x128   : > { %v649_v59 = vmul.f32 %v6337_v25, %v6337_v25  ;;  %v937_v52 = vmul.f32 %v6354_v7, %v936_v58  ;;  %v1185_v44 = vpack.c.bf16 %v1160_v60, %v1159_v13  ;;  %v934_v42 = vsel %vm6417_vm3, %v6323_v15, %v930_v12 }
 0x129   : > { %v680_v2 = vsub.f32 %v616_v32, %v648_v14  ;;  %v6344_v49 = vadd.f32 1e-05, %v679_v6  ;;  %v6362_v5 = vpop.eup %4806  ;;  %v1090_v40 = vmul.f32 %v914_v48, %v706_v34  ;;  %v920_v8 = vmul.f32 %v6331_v43, %v919_v11 }
 0x12a   : > { %v946_v14 = vmul.f32 %v6362_v5, %v6318_v29  ;;  %vm952_vm10 = vweird.f32 %v6362_v5 }
 0x12b   : > { %v6352_v26 = vadd.f32 1e-05, %v680_v2  ;;  %4808 = vrsqrt.f32 %v6344_v49  ;;  %v1126_v0 = vmul.f32 %v5932_v54, %v1090_v40  ;;  %vm6480_vm12 = vmor %vm951_vm9, %vm952_vm10  ;;  %v5355_v40 = vld [vmem:[%s5773_s18 + $0x98] sm:$0xff]  ;;  %vm961_vm13 = vweird.f32 %v6344_v49 }
 0x12c   : > { %v443_v19 = vpop.xlane.xlu0 %442  ;;  %v947_v6 = vmul.f32 %v6362_v5, %v946_v14  ;;  %v710_v12 = vsub.f32 %v5355_v40, %v6260_v57 }
 0x12d   : > { %v6347_v53 = vmul.f32 %v5856_v55, %v443_v19  ;;  %v578_v1 = vpop.xlane.xlu2 %577  ;;  %4810 = vrsqrt.f32 %v6352_v26  ;;  %v938_v19 = vmul.f32 0.5, %v937_v52  ;;  %v1162_v15 = vadd.f32 %v5950_v36, %v1126_v0 }
 0x12e   : > { %v576_v63 = vpop.xlane.xlu1 %575  ;;  %v618_v16 = vmul.f32 %v578_v1, %v5856_v55  ;;  %v948_v46 = vmul.f32 0.5, %v947_v6  ;;  %vm971_vm15 = vweird.f32 %v6352_v26 }
 0x12f   : > { %1430 = vmatmul.bf16.gmra.mxu0 %v1184_v39  ;;  %1519 = vmatmul.bf16.gmra.mxu1 %v1184_v39  ;;  %v650_v51 = vmul.f32 %v6347_v53, %v6347_v53  ;;  %v617_v21 = vmul.f32 %v576_v63, %v5856_v55  ;;  %v5353_v63 = vld [vmem:[%s5773_s18 + $0x88] sm:$0xff] }
 0x130   : > { %1608 = vmatmul.bf16.gmra.mxu2 %v1184_v39  ;;  %1697 = vmatmul.bf16.gmra.mxu3 %v1184_v39  ;;  %v1089_v39 = vmul.f32 %v904_v35, %v705_v3  ;;  %v708_v38 = vsub.f32 %v5353_v63, %v6213_v17  ;;  %v949_v33 = vsub.f32 1.5, %v948_v46 }
 0x131   : > { %v682_v28 = vsub.f32 %v618_v16, %v650_v51  ;;  %v681_v32 = vsub.f32 %v617_v21, %v649_v59  ;;  %v6405_v30 = vpop.eup %4808  ;;  %v5352_v51 = vld [vmem:[%s5773_s18 + $0x80] sm:$0xff] }
 0x132   : > { %v1125_v23 = vmul.f32 %v5932_v54, %v1089_v39  ;;  %v956_v9 = vmul.f32 %v6405_v30, %v6344_v49  ;;  %v707_v1 = vsub.f32 %v5352_v51, %v6224_v61  ;;  %v939_v61 = vsub.f32 1.5, %v938_v19  ;;  %v5358_v49 = vld [vmem:[%s5773_s18 + $0xa8] sm:$0xff] }
 0x133   : > { %v6399_v10 = vadd.f32 1e-05, %v682_v28  ;;  %v6408_v2 = vadd.f32 1e-05, %v681_v32  ;;  %v6410_v37 = vpop.eup %4810  ;;  %v1092_v28 = vmul.f32 %v934_v42, %v708_v38  ;;  %v950_v39 = vmul.f32 %v6362_v5, %v949_v33  ;;  %v5357_v33 = vld [vmem:[%s5773_s18 + $0xa0] sm:$0xff] }
 0x134   : > { %v445_v45 = vpop.xlane.xlu0 %444  ;;  %v966_v27 = vmul.f32 %v6410_v37, %v6352_v26  ;;  %v1161_v13 = vadd.f32 %v5950_v36, %v1125_v23  ;;  %v957_v17 = vmul.f32 %v6405_v30, %v956_v9  ;;  %v924_v36 = vsel %vm6444_vm7, %v6331_v43, %v920_v8  ;;  %v6541_v26 = vld [vmem:[%s8388_s2] ss:$0 sm:$0xff] }
 0x135   : > { %4812 = vrsqrt.f32 %v6399_v10  ;;  %v6430_v59 = vmul.f32 %v5856_v55, %v445_v45  ;;  %v580_v14 = vpop.xlane.xlu2 %579  ;;  %v940_v34 = vmul.f32 %v6354_v7, %v939_v61  ;;  %v5354_v45 = vld [vmem:[%s5773_s18 + $0x90] sm:$0xff]  ;;  %v1091_v23 = vmul.f32 %v924_v36, %v707_v1  ;;  %v6509_v1 = vld [vmem:[#allocation5] ss:$0 sm:$0xff] }
 0x136   : > { %4814 = vrsqrt.f32 %v6408_v2  ;;  %v967_v18 = vmul.f32 %v6410_v37, %v966_v27  ;;  %v447_v21 = vpop.xlane.xlu1 %446  ;;  %v619_v50 = vmul.f32 %v580_v14, %v5856_v55  ;;  %v958_v43 = vmul.f32 0.5, %v957_v17 }
 0x137   : > { %v651_v56 = vmul.f32 %v6430_v59, %v6430_v59  ;;  %v6455_v20 = vmul.f32 %v5856_v55, %v447_v21  ;;  %v709_v24 = vsub.f32 %v5354_v45, %v6257_v4  ;;  %v1186_v11 = vpack.c.bf16 %v1162_v15, %v1161_v13 }
 0x138   : > { %v968_v41 = vmul.f32 0.5, %v967_v18  ;;  %v1128_v22 = vmul.f32 %v5932_v54, %v1092_v28  ;;  %v944_v27 = vsel %vm6475_vm11, %v6354_v7, %v940_v34  ;;  %v954_v4 = vsel %vm6480_vm12, %v6362_v5, %v950_v39 }
 0x139   : > { %v652_v32 = vmul.f32 %v6455_v20, %v6455_v20  ;;  %v683_v6 = vsub.f32 %v619_v50, %v651_v56  ;;  %v959_v0 = vsub.f32 1.5, %v958_v43  ;;  %vm962_vm14 = vweird.f32 %v6405_v30  ;;  %v6536_v56 = vld [vmem:[#allocation8] sm:$0xf] }
 0x13a   : > { %v969_v57 = vsub.f32 1.5, %v968_v41  ;;  %vm972_vm0 = vweird.f32 %v6410_v37  ;;  %v1093_v5 = vmul.f32 %v944_v27, %v709_v24  ;;  %v1094_v51 = vmul.f32 %v954_v4, %v710_v12  ;;  %vm6517_vm1 = vmor %vm961_vm13, %vm962_vm14  ;;  %v5361_v27 = vld [vmem:[%s5773_s18 + $0xb8] sm:$0xff] }
 0x13b   : > { %v6436_v3 = vpop.eup %4812  ;;  %v6492_v46 = vadd.f32 1e-05, %v683_v6  ;;  %v1127_v63 = vmul.f32 %v6509_v1, %v1091_v23  ;;  %v960_v38 = vmul.f32 %v6405_v30, %v959_v0  ;;  %vm6526_vm2 = vmor %vm971_vm15, %vm972_vm0  ;;  %v711_v17 = vsub.f32 %v5357_v33, %v6291_v62  ;;  %v6622_v33 = vld [vmem:[%s5773_s18 + $0xc0] sm:$0xff] }
 0x13c   : > { %v6457_v58 = vpop.eup %4814  ;;  %v986_v35 = vmul.f32 %v6436_v3, %v6399_v10  ;;  %v582_v60 = vpop.xlane.xlu0 %581  ;;  %v970_v8 = vmul.f32 %v6410_v37, %v969_v57  ;;  %v712_v18 = vsub.f32 %v5358_v49, %v6296_v47  ;;  %v1129_v14 = vmul.f32 %v6509_v1, %v1093_v5 }
 0x13d   : > { %v620_v29 = vmul.f32 %v582_v60, %v5856_v55  ;;  %v976_v52 = vmul.f32 %v6457_v58, %v6408_v2  ;;  %4816 = vrsqrt.f32 %v6492_v46  ;;  %v1163_v28 = vadd.f32 %v6541_v26, %v1127_v63 }
 0x13e   : > { %v987_v19 = vmul.f32 %v6436_v3, %v986_v35  ;;  %v1164_v35 = vadd.f32 %v6541_v26, %v1128_v22  ;;  %v1130_v62 = vmul.f32 %v6509_v1, %v1094_v51  ;;  %v964_v47 = vsel %vm6517_vm1, %v6405_v30, %v960_v38  ;;  %v5360_v22 = vld [vmem:[%s5773_s18 + $0xb0] sm:$0xff] }
 0x13f   : > { %1435 = vmatmul.bf16.gmra.mxu0 %v1185_v44  ;;  %1524 = vmatmul.bf16.gmra.mxu1 %v1185_v44  ;;  %v977_v54 = vmul.f32 %v6457_v58, %v976_v52  ;;  %v974_v36 = vsel %vm6526_vm2, %v6410_v37, %v970_v8  ;;  %vm991_vm3 = vweird.f32 %v6399_v10  ;;  %vm992_vm4 = vweird.f32 %v6436_v3 }
 0x140   : > { %1613 = vmatmul.bf16.gmra.mxu2 %v1185_v44  ;;  %1702 = vmatmul.bf16.gmra.mxu3 %v1185_v44  ;;  %v684_v44 = vsub.f32 %v620_v29, %v652_v32  ;;  %v988_v7 = vmul.f32 0.5, %v987_v19  ;;  %vm981_vm5 = vweird.f32 %v6408_v2  ;;  %vm982_vm6 = vweird.f32 %v6457_v58  ;;  %vm6579_vm7 = vmor %vm991_vm3, %vm992_vm4 }
 0x141   : > { %v449_v13 = vpop.xlane.xlu1 %448  ;;  %v978_v61 = vmul.f32 0.5, %v977_v54  ;;  %v6568_v37 = vperm.slane %v6536_v56, 0  ;;  %v1095_v6 = vmul.f32 %v964_v47, %v711_v17  ;;  %v6584_v24 = vperm.slane %v6536_v56, 1  ;;  %vm6600_vm8 = vmor %vm981_vm5, %vm982_vm6 }
 0x142   : > { %v6494_v9 = vadd.f32 1e-05, %v684_v44  ;;  %v989_v21 = vsub.f32 1.5, %v988_v7  ;;  %v6562_v34 = vmul.f32 %v5856_v55, %v449_v13  ;;  %v1096_v44 = vmul.f32 %v974_v36, %v712_v18 }
 0x143   : > { %v6534_v15 = vpop.eup %4816  ;;  %v979_v50 = vsub.f32 1.5, %v978_v61  ;;  %v1165_v40 = vadd.f32 %v6541_v26, %v1129_v14  ;;  %v713_v10 = vsub.f32 %v5360_v22, %v6337_v25  ;;  %v714_v4 = vsub.f32 %v5361_v27, %v6347_v53 }
 0x144   : > { %4818 = vrsqrt.f32 %v6494_v9  ;;  %v996_v32 = vmul.f32 %v6534_v15, %v6492_v46  ;;  %v990_v30 = vmul.f32 %v6436_v3, %v989_v21  ;;  %v653_v31 = vmul.f32 %v6562_v34, %v6562_v34 }
 0x145   : > { %v980_v12 = vmul.f32 %v6457_v58, %v979_v50  ;;  %v1187_v57 = vpack.c.bf16 %v1164_v35, %v1163_v28  ;;  %v1131_v42 = vmul.f32 %v6509_v1, %v1095_v6  ;;  %v1132_v8 = vmul.f32 %v6509_v1, %v1096_v44 }
 0x146   : > { %v451_v48 = vpop.xlane.xlu2 %450  ;;  %v997_v43 = vmul.f32 %v6534_v15, %v996_v32  ;;  %v994_v7 = vsel %vm6579_vm7, %v6436_v3, %v990_v30  ;;  %v715_v17 = vsub.f32 %v6622_v33, %v6430_v59  ;;  %v6629_v18 = vperm.slane %v6536_v56, 2 }
 0x147   : > { %v6590_v19 = vmul.f32 %v5856_v55, %v451_v48  ;;  %v984_v13 = vsel %vm6600_vm8, %v6457_v58, %v980_v12  ;;  %v6632_v58 = vmul.f32 %v994_v7, %v714_v4  ;;  %v6635_v35 = vperm.slane %v6536_v56, 3  ;;  %v4660_v7 = vld [vmem:[#allocation10 + $0xd8] sm:$0xff] }
 0x148   : > { %v998_v51 = vmul.f32 0.5, %v997_v43  ;;  %v1097_v14 = vmul.f32 %v984_v13, %v713_v10  ;;  %v1167_v47 = vadd.f32 %v6541_v26, %v1131_v42  ;;  %v1168_v36 = vadd.f32 %v6541_v26, %v1132_v8  ;;  %4078 = vmatpush.bf16.msrb.mxu3 %v4660_v7 }
 0x149   : > { %v654_v3 = vmul.f32 %v6590_v19, %v6590_v19  ;;  %vm1001_vm9 = vweird.f32 %v6492_v46  ;;  %vm1002_vm10 = vweird.f32 %v6534_v15  ;;  %vm1011_vm11 = vweird.f32 %v6494_v9 }
 0x14a   : > { %v6547_v60 = vpop.eup %4818  ;;  %v999_v21 = vsub.f32 1.5, %v998_v51  ;;  %vm6654_vm13 = vmor %vm1001_vm9, %vm1002_vm10  ;;  %v6674_v4 = vpack.c.bf16 %v1168_v36, %v1167_v47  ;;  %v1134_v36 = vmul.f32 %v6509_v1, %v6632_v58 }
 0x14b   : > { %v1006_v29 = vmul.f32 %v6547_v60, %v6494_v9  ;;  %vm1012_vm12 = vweird.f32 %v6547_v60 }
 0x14c   : > { %v1000_v48 = vmul.f32 %v6534_v15, %v999_v21  ;;  %vm6666_vm14 = vmor %vm1011_vm11, %vm1012_vm12 }
 0x14d   : > { %v584_v39 = vpop.xlane.xlu0 %583  ;;  %v1007_v41 = vmul.f32 %v6547_v60, %v1006_v29  ;;  %v586_v54 = vpop.xlane.xlu1 %585 }
 0x14e   : > { %v621_v52 = vmul.f32 %v584_v39, %v5856_v55  ;;  %v622_v61 = vmul.f32 %v586_v54, %v5856_v55  ;;  %v4636_v54 = vld [vmem:[#allocation10 + $0x18] sm:$0xff] }
 0x14f   : > { %1440 = vmatmul.bf16.gmra.mxu0 %v1186_v11  ;;  %1529 = vmatmul.bf16.gmra.mxu1 %v1186_v11  ;;  %v1008_v63 = vmul.f32 0.5, %v1007_v41 }
 0x150   : > { %1618 = vmatmul.bf16.gmra.mxu2 %v1186_v11  ;;  %1707 = vmatmul.bf16.gmra.mxu3 %v1186_v11  ;;  %v1166_v11 = vadd.f32 %v6541_v26, %v1130_v62  ;;  %v685_v23 = vsub.f32 %v621_v52, %v653_v31  ;;  %v686_v32 = vsub.f32 %v622_v61, %v654_v3 }
 0x151   : > { %v1009_v28 = vsub.f32 1.5, %v1008_v63  ;;  %v1004_v63 = vsel %vm6654_vm13, %v6534_v15, %v1000_v48  ;;  %3811 = vmatpush.bf16.msrb.mxu0 %v4636_v54  ;;  %v1133_v15 = vmul.f32 %v6509_v1, %v1097_v14 }
 0x152   : > { %v6607_v53 = vadd.f32 1e-05, %v685_v23  ;;  %v6616_v16 = vpack.c.bf16 %v1166_v11, %v1165_v40  ;;  %v5610_v23 = vmov 1065369472   ;;  %v6672_v27 = vadd.f32 1e-05, %v686_v32 }
 0x153   : > { %v1010_v39 = vmul.f32 %v6547_v60, %v1009_v28  ;;  %v6660_v22 = vunpack.c.h.bf16 %v5610_v23  ;;  %v6676_v0 = vunpack.c.l.bf16 %v5610_v23  ;;  %v6706_v1 = vmul.f32 %v1004_v63, %v715_v17 }
 0x154   : > { %4820 = vrsqrt.f32 %v6607_v53  ;;  %vm1021_vm15 = vweird.f32 %v6607_v53  ;;  %vm1031_vm2 = vweird.f32 %v6672_v27 }
 0x155   : > { %v1014_v8 = vsel %vm6666_vm14, %v6547_v60, %v1010_v39 }
 0x15a   : > { %v6648_v6 = vpop.eup %4820 }
 0x15b   : > { %v1016_v9 = vmul.f32 %v6648_v6, %v6607_v53  ;;  %vm1022_vm0 = vweird.f32 %v6648_v6 }
 0x15c   : > { %v1406_v5 = vpop.f32.mrf.mxu0  ;;  %v1495_v25 = vpop.f32.mrf.mxu1  ;;  %vm6747_vm1 = vmor %vm1021_vm15, %vm1022_vm0 }
 0x15d   : > { %v1407_v38 = vadd.f32 %v1406_v5, %v6568_v37  ;;  %v1496_v2 = vadd.f32 %v1495_v25, %v6584_v24  ;;  %v5363_v25 = vld [vmem:[%s5773_s18 + $0xc8] sm:$0xff]  ;;  %v1017_v47 = vmul.f32 %v6648_v6, %v1016_v9 }
 0x15e   : > { %v716_v51 = vsub.f32 %v5363_v25, %v6455_v20 }
 0x15f   : > { %v6626_v49 = vpack.c.bf16 %v1496_v2, %v1407_v38  ;;  %1445 = vmatmul.bf16.gmra.mxu0 %v1187_v57  ;;  %1534 = vmatmul.bf16.gmra.mxu1 %v1187_v57  ;;  %v1018_v17 = vmul.f32 0.5, %v1017_v47 }
 0x160   : > { %1623 = vmatmul.bf16.gmra.mxu2 %v1187_v57  ;;  %1712 = vmatmul.bf16.gmra.mxu3 %v1187_v57  ;;  %v4652_v57 = vld [vmem:[#allocation10 + $0x98] sm:$0xff]  ;;  %v6708_v58 = vmul.f32 %v1014_v8, %v716_v51 }
 0x161   : > { %v1817_v62 = vxor.u32 2147516416, %v6626_v49  ;;  %v3099_v2 = vunpack.c.l.bf16 %v6626_v49  ;;  %v3100_v42 = vunpack.c.h.bf16 %v6626_v49  ;;  %3989 = vmatpush.bf16.msrb.mxu2 %v4652_v57  ;;  %v1019_v47 = vsub.f32 1.5, %v1018_v17 }
 0x163   : > { %v1881_v50 = vunpack.c.l.bf16 %v1817_v62  ;;  %v1882_v29 = vunpack.c.h.bf16 %v1817_v62  ;;  %v1584_v56 = vpop.f32.mrf.mxu2  ;;  %v1673_v30 = vpop.f32.mrf.mxu3 }
 0x164   : > { %v1585_v43 = vadd.f32 %v1584_v56, %v6629_v18  ;;  %v1674_v41 = vadd.f32 %v1673_v30, %v6635_v35  ;;  %v1408_v31 = vpop.f32.mrf.mxu0  ;;  %v1497_v52 = vpop.f32.mrf.mxu1 }
 0x165   : > { %v2009_v44 = vmul.f32 1.442695, %v1881_v50  ;;  %v2011_v45 = vmul.f32 1.442695, %v1882_v29  ;;  %v1409_v12 = vadd.f32 %v1408_v31, %v6568_v37  ;;  %v1498_v11 = vadd.f32 %v1497_v52, %v6584_v24  ;;  %v4644_v52 = vld [vmem:[#allocation10 + $0x58] sm:$0xff] }
 0x166   : > { %v6670_v46 = vpack.c.bf16 %v1674_v41, %v1585_v43  ;;  %3900 = vmatpush.bf16.msrb.mxu1 %v4644_v52 }
 0x167   : > { %4822 = vpow2.f32 %v2009_v44  ;;  %v6678_v5 = vpack.c.bf16 %v1498_v11, %v1409_v12  ;;  %v6717_v12 = vadd.f32 %v6541_v26, %v1133_v15  ;;  %v1170_v11 = vadd.f32 %v6541_v26, %v1134_v36 }
 0x168   : > { %4824 = vpow2.f32 %v2011_v45  ;;  %v1818_v38 = vxor.u32 2147516416, %v6670_v46  ;;  %v3101_v54 = vunpack.c.l.bf16 %v6670_v46  ;;  %v3102_v7 = vunpack.c.h.bf16 %v6670_v46 }
 0x169   : > { %v1819_v13 = vxor.u32 2147516416, %v6678_v5  ;;  %4826 = vrsqrt.f32 %v6672_v27 }
 0x16a   : > { %v1883_v20 = vunpack.c.l.bf16 %v1818_v38  ;;  %v1884_v3 = vunpack.c.h.bf16 %v1818_v38 }
 0x16b   : > { %v1885_v61 = vunpack.c.l.bf16 %v1819_v13  ;;  %v1886_v21 = vunpack.c.h.bf16 %v1819_v13  ;;  %v1586_v28 = vpop.f32.mrf.mxu2  ;;  %v1675_v62 = vpop.f32.mrf.mxu3 }
 0x16c   : > { %v2013_v32 = vmul.f32 1.442695, %v1883_v20  ;;  %v2015_v60 = vmul.f32 1.442695, %v1884_v3  ;;  %v1587_v50 = vadd.f32 %v1586_v28, %v6629_v18  ;;  %v1676_v29 = vadd.f32 %v1675_v62, %v6635_v35  ;;  %v1411_v56 = vpop.f32.mrf.mxu0  ;;  %v1500_v30 = vpop.f32.mrf.mxu1 }
 0x16d   : > { %v4823_v48 = vpop.eup %4822  ;;  %v2017_v39 = vmul.f32 1.442695, %v1885_v61  ;;  %v2019_v14 = vmul.f32 1.442695, %v1886_v21  ;;  %v1412_v43 = vadd.f32 %v1411_v56, %v6568_v37  ;;  %v1501_v41 = vadd.f32 %v1500_v30, %v6584_v24 }
 0x16e   : > { %v4825_v31 = vpop.eup %4824  ;;  %4828 = vpow2.f32 %v2013_v32  ;;  %v6710_v44 = vpack.c.bf16 %v1676_v29, %v1587_v50 }
 0x16f   : > { %v2265_v45 = vpack.c.bf16 %v4825_v31, %v4823_v48  ;;  %4830 = vpow2.f32 %v2015_v60  ;;  %v6712_v40 = vpack.c.bf16 %v1501_v41, %v1412_v43  ;;  %1450 = vmatmul.bf16.gmra.mxu0 %v6616_v16  ;;  %1539 = vmatmul.bf16.gmra.mxu1 %v6616_v16  ;;  %v6719_v59 = vpop.eup %4826 }
 0x170   : > { %4832 = vpow2.f32 %v2017_v39  ;;  %v1820_v33 = vxor.u32 2147516416, %v6710_v44  ;;  %1628 = vmatmul.bf16.gmra.mxu2 %v6616_v16  ;;  %1717 = vmatmul.bf16.gmra.mxu3 %v6616_v16  ;;  %v1026_v16 = vmul.f32 %v6719_v59, %v6672_v27  ;;  %vm1032_vm3 = vweird.f32 %v6719_v59 }
 0x171   : > { %8572 = vst [vmem:[#allocation16_spill] sm:$0xff] %v6712_v40  ;;  %v2329_v23 = vunpack.c.l.bf16 %v2265_v45  ;;  %v2330_v10 = vunpack.c.h.bf16 %v2265_v45  ;;  %4834 = vpow2.f32 %v2019_v14  ;;  %v1821_v57 = vxor.u32 2147516416, %v6712_v40  ;;  %vm6783_vm4 = vmor %vm1031_vm2, %vm1032_vm3 }
 0x172   : > { %v1887_v9 = vunpack.c.l.bf16 %v1820_v33  ;;  %v1888_v25 = vunpack.c.h.bf16 %v1820_v33  ;;  %v1027_v31 = vmul.f32 %v6719_v59, %v1026_v16 }
 0x173   : > { %v2457_v51 = vadd.f32 1.0, %v2329_v23  ;;  %v2458_v63 = vadd.f32 1.0, %v2330_v10  ;;  %v1889_v38 = vunpack.c.l.bf16 %v1821_v57  ;;  %v1890_v8 = vunpack.c.h.bf16 %v1821_v57  ;;  %v1589_v13 = vpop.f32.mrf.mxu2  ;;  %v1678_v20 = vpop.f32.mrf.mxu3 }
 0x174   : > { %v4829_v26 = vpop.eup %4828  ;;  %v2021_v15 = vmul.f32 1.442695, %v1887_v9  ;;  %v2023_v61 = vmul.f32 1.442695, %v1888_v25  ;;  %v1590_v60 = vadd.f32 %v1589_v13, %v6629_v18  ;;  %v1679_v50 = vadd.f32 %v1678_v20, %v6635_v35  ;;  %v1413_v17 = vpop.f32.mrf.mxu0 }
 0x175   : > { %v4831_v21 = vpop.eup %4830  ;;  %v2585_v28 = vpack.c.bf16 %v2458_v63, %v2457_v51  ;;  %v2025_v62 = vmul.f32 1.442695, %v1889_v38  ;;  %v2027_v48 = vmul.f32 1.442695, %v1890_v8  ;;  %v1502_v23 = vpop.f32.mrf.mxu1  ;;  %v6740_v57 = vmul.f32 %v6648_v6, %v1019_v47 }
 0x176   : > { %v4833_v36 = vpop.eup %4832  ;;  %v2266_v32 = vpack.c.bf16 %v4831_v21, %v4829_v26  ;;  %4836 = vpow2.f32 %v2021_v15  ;;  %v6735_v41 = vpack.c.bf16 %v1679_v50, %v1590_v60  ;;  %v1028_v8 = vmul.f32 0.5, %v1027_v31  ;;  %v5364_v15 = vld [vmem:[%s5773_s18 + $0xd0] sm:$0xff] }
 0x177   : > { %v4835_v29 = vpop.eup %4834  ;;  %v2651_v56 = vunpack.c.h.bf16 %v2585_v28  ;;  %v2652_v30 = vunpack.c.l.bf16 %v2585_v28  ;;  %4838 = vpow2.f32 %v2023_v61  ;;  %v6752_v13 = vpack.c.bf16 %v1170_v11, %v6717_v12 }
 0x178   : > { %v2331_v39 = vunpack.c.l.bf16 %v2266_v32  ;;  %v2332_v14 = vunpack.c.h.bf16 %v2266_v32  ;;  %v2267_v43 = vpack.c.bf16 %v4835_v29, %v4833_v36  ;;  %4840 = vpow2.f32 %v2025_v62  ;;  %8573 = vst [vmem:[#allocation17_spill] sm:$0xff] %v6735_v41  ;;  %v6757_v29 = vld [vmem:[%s5773_s18 + $0xd8] sm:$0xff] }
 0x179   : > { %4842 = vrcp.f32 %v2651_v56  ;;  %v1822_v9 = vxor.u32 2147516416, %v6735_v41  ;;  %v717_v61 = vsub.f32 %v5364_v15, %v6562_v34  ;;  %v1029_v60 = vsub.f32 1.5, %v1028_v8 }
 0x17a   : > { %4844 = vrcp.f32 %v2652_v30  ;;  %v2459_v52 = vadd.f32 1.0, %v2331_v39  ;;  %v2460_v45 = vadd.f32 1.0, %v2332_v14  ;;  %v2333_v33 = vunpack.c.l.bf16 %v2267_v43  ;;  %v4651_v30 = vld [vmem:[#allocation10 + $0x90] sm:$0xff] }
 0x17b   : > { %4846 = vpow2.f32 %v2027_v48  ;;  %v2334_v63 = vunpack.c.h.bf16 %v2267_v43  ;;  %v1891_v16 = vunpack.c.l.bf16 %v1822_v9  ;;  %v1892_v21 = vunpack.c.h.bf16 %v1822_v9  ;;  %v1591_v28 = vpop.f32.mrf.mxu2  ;;  %v1680_v62 = vpop.f32.mrf.mxu3  ;;  %v4635_v48 = vld [vmem:[#allocation10 + $0x10] sm:$0xff]  ;;  %3990 = vmatpush.bf16.msrb.mxu2 %v4651_v30 }
 0x17c   : > { %v4837_v25 = vpop.eup %4836  ;;  %v2586_v51 = vpack.c.bf16 %v2460_v45, %v2459_v52  ;;  %v2461_v26 = vadd.f32 1.0, %v2333_v33  ;;  %v718_v12 = vsub.f32 %v6757_v29, %v6590_v19  ;;  %v1024_v34 = vsel %vm6747_vm1, %v6648_v6, %v6740_v57  ;;  %v4659_v52 = vld [vmem:[#allocation10 + $0xd0] sm:$0xff]  ;;  %v453_v33 = vpop.xlane.xlu2 %452  ;;  %3812 = vmatpush.bf16.msrb.mxu0 %v4635_v48 }
 0x17d   : > { %v4839_v20 = vpop.eup %4838  ;;  %v2029_v11 = vmul.f32 1.442695, %v1891_v16  ;;  %v2031_v56 = vmul.f32 1.442695, %v1892_v21  ;;  %v2462_v14 = vadd.f32 1.0, %v2334_v63  ;;  %v1414_v6 = vadd.f32 %v1413_v17, %v6568_v37  ;;  %4079 = vmatpush.bf16.msrb.mxu3 %v4659_v52  ;;  %v1416_v16 = vpop.f32.mrf.mxu0 }
 0x17e   : > { %v4841_v47 = vpop.eup %4840  ;;  %v2658_v53 = vunpack.c.h.bf16 %v2586_v51  ;;  %v2659_v36 = vunpack.c.l.bf16 %v2586_v51  ;;  %v2268_v32 = vpack.c.bf16 %v4839_v20, %v4837_v25  ;;  %v1030_v25 = vmul.f32 %v6719_v59, %v1029_v60  ;;  %v1505_v21 = vpop.f32.mrf.mxu1 }
 0x17f   : > { %v4843_v50 = vpop.eup %4842  ;;  %1455 = vmatmul.bf16.gmra.mxu0 %v6674_v4  ;;  %1544 = vmatmul.bf16.gmra.mxu1 %v6674_v4  ;;  %v1503_v38 = vadd.f32 %v1502_v23, %v6584_v24  ;;  %v6788_v23 = vmul.f32 %v1024_v34, %v717_v61  ;;  %v6793_v60 = vpack.c.bf16 %v2462_v14, %v2461_v26 }
 0x180   : > { %v4845_v39 = vpop.eup %4844  ;;  %4848 = vrcp.f32 %v2658_v53  ;;  %v2335_v43 = vunpack.c.l.bf16 %v2268_v32  ;;  %v2336_v31 = vunpack.c.h.bf16 %v2268_v32  ;;  %1633 = vmatmul.bf16.gmra.mxu2 %v6674_v4  ;;  %1722 = vmatmul.bf16.gmra.mxu3 %v6674_v4  ;;  %v2654_v57 = vmul.f32 %v4843_v50, %v6660_v22 }
 0x181   : > { %v4847_v45 = vpop.eup %4846  ;;  %4850 = vrcp.f32 %v2659_v36  ;;  %v2656_v9 = vmul.f32 %v4845_v39, %v6676_v0  ;;  %v6791_v32 = vpack.c.bf16 %v1503_v38, %v1414_v6  ;;  %v1592_v27 = vadd.f32 %v1591_v28, %v6629_v18 }
 0x182   : > { %4852 = vpow2.f32 %v2029_v11  ;;  %v2463_v51 = vadd.f32 1.0, %v2335_v43  ;;  %v2464_v63 = vadd.f32 1.0, %v2336_v31  ;;  %v2269_v4 = vpack.c.bf16 %v4847_v45, %v4841_v47 }
 0x183   : > { %4854 = vpow2.f32 %v2031_v56  ;;  %8578 = vst [vmem:[#allocation18_spill] sm:$0xff] %v6791_v32  ;;  %v1681_v11 = vadd.f32 %v1680_v62, %v6635_v35  ;;  %v6798_v30 = vpack.c.bf16 %v2654_v57, %v2656_v9  ;;  %v1034_v61 = vsel %vm6783_vm4, %v6719_v59, %v1030_v25  ;;  %v1594_v39 = vpop.f32.mrf.mxu2  ;;  %v1683_v26 = vpop.f32.mrf.mxu3 }
 0x184   : > { %v6800_v48 = vpack.c.bf16 %v2464_v63, %v2463_v51  ;;  %v1823_v34 = vxor.u32 2147516416, %v6791_v32  ;;  %v2337_v31 = vunpack.c.l.bf16 %v2269_v4  ;;  %v1417_v57 = vadd.f32 %v1416_v16, %v6568_v37  ;;  %v455_v59 = vpop.xlane.xlu0 %454  ;;  %v590_v16 = vpop.xlane.xlu2 %589 }
 0x185   : > { %v6808_v62 = vpack.c.bf16 %v1681_v11, %v1592_v27  ;;  %v1506_v9 = vadd.f32 %v1505_v21, %v6584_v24  ;;  %v2338_v25 = vunpack.c.h.bf16 %v2269_v4  ;;  %v6815_v51 = vmul.f32 %v1034_v61, %v718_v12  ;;  %v4643_v21 = vld [vmem:[#allocation10 + $0x50] sm:$0xff] }
 0x186   : > { %v4849_v47 = vpop.eup %4848  ;;  %v1893_v45 = vunpack.c.l.bf16 %v1823_v34  ;;  %v1894_v6 = vunpack.c.h.bf16 %v1823_v34  ;;  %v6818_v63 = vmul.f32 %v5856_v55, %v453_v33  ;;  %v3227_v15 = vunpack.c.l.bf16 %v6798_v30  ;;  %3901 = vmatpush.bf16.msrb.mxu1 %v4643_v21 }
 0x187   : > { %v4851_v56 = vpop.eup %4850  ;;  %v2661_v43 = vmul.f32 %v4849_v47, %v6660_v22  ;;  %8579 = vst [vmem:[#allocation19_spill] sm:$0xff] %v6808_v62  ;;  %v1824_v38 = vxor.u32 2147516416, %v6808_v62  ;;  %v6822_v11 = vpack.c.bf16 %v1506_v9, %v1417_v57  ;;  %v3228_v4 = vunpack.c.h.bf16 %v6798_v30 }
 0x188   : > { %v4853_v14 = vpop.eup %4852  ;;  %v2663_v28 = vmul.f32 %v4851_v56, %v6676_v0  ;;  %v2033_v47 = vmul.f32 1.442695, %v1893_v45  ;;  %v2035_v27 = vmul.f32 1.442695, %v1894_v6  ;;  %v6826_v19 = vmul.f32 %v5856_v55, %v455_v59 }
 0x189   : > { %v4855_v52 = vpop.eup %4854  ;;  %8580 = vst [vmem:[#allocation20_spill] sm:$0xff] %v6822_v11  ;;  %v1895_v29 = vunpack.c.l.bf16 %v1824_v38  ;;  %v1896_v12 = vunpack.c.h.bf16 %v1824_v38  ;;  %v1825_v33 = vxor.u32 2147516416, %v6822_v11  ;;  %v6829_v61 = vadd.f32 1.0, %v2337_v31  ;;  %v588_v38 = vpop.xlane.xlu1 %587 }
 0x18a   : > { %v2664_v56 = vpack.c.bf16 %v2661_v43, %v2663_v28  ;;  %v2270_v34 = vpack.c.bf16 %v4855_v52, %v4853_v14  ;;  %4856 = vpow2.f32 %v2033_v47  ;;  %v6831_v45 = vadd.f32 1.0, %v2338_v25  ;;  %v1418_v43 = vpop.f32.mrf.mxu0  ;;  %v1507_v14 = vpop.f32.mrf.mxu1 }
 0x18b   : > { %v655_v6 = vmul.f32 %v6818_v63, %v6818_v63  ;;  %v624_v30 = vmul.f32 %v590_v16, %v5856_v55  ;;  %4858 = vpow2.f32 %v2035_v27  ;;  %v2037_v28 = vmul.f32 1.442695, %v1895_v29  ;;  %v1596_v21 = vpop.f32.mrf.mxu2  ;;  %v1685_v29 = vpop.f32.mrf.mxu3 }
 0x18c   : > { %v2039_v52 = vmul.f32 1.442695, %v1896_v12  ;;  %v1897_v57 = vunpack.c.l.bf16 %v1825_v33  ;;  %v3229_v9 = vunpack.c.l.bf16 %v2664_v56  ;;  %v3230_v31 = vunpack.c.h.bf16 %v2664_v56 }
 0x18d   : > { %v1898_v59 = vunpack.c.h.bf16 %v1825_v33  ;;  %v656_v25 = vmul.f32 %v6826_v19, %v6826_v19  ;;  %v2339_v47 = vunpack.c.l.bf16 %v2270_v34  ;;  %4860 = vpow2.f32 %v2037_v28 }
 0x18e   : > { %v2041_v16 = vmul.f32 1.442695, %v1897_v57  ;;  %v1595_v27 = vadd.f32 %v1594_v39, %v6629_v18  ;;  %4862 = vpow2.f32 %v2039_v52  ;;  %v1684_v56 = vadd.f32 %v1683_v26, %v6635_v35 }
 0x18f   : > { %1460 = vmatmul.bf16.gmra.mxu0 %v6752_v13  ;;  %1549 = vmatmul.bf16.gmra.mxu1 %v6752_v13  ;;  %v2043_v12 = vmul.f32 1.442695, %v1898_v59  ;;  %v688_v50 = vsub.f32 %v624_v30, %v656_v25  ;;  %v623_v36 = vmul.f32 %v588_v38, %v5856_v55  ;;  %v1419_v53 = vadd.f32 %v1418_v43, %v6568_v37 }
 0x190   : > { %1638 = vmatmul.bf16.gmra.mxu2 %v6752_v13  ;;  %1727 = vmatmul.bf16.gmra.mxu3 %v6752_v13  ;;  %v4857_v33 = vpop.eup %4856  ;;  %4864 = vpow2.f32 %v2041_v16  ;;  %v1508_v28 = vadd.f32 %v1507_v14, %v6584_v24  ;;  %v2340_v57 = vunpack.c.h.bf16 %v2270_v34  ;;  %v6849_v20 = vpack.c.bf16 %v1684_v56, %v1595_v27  ;;  %v6864_v34 = vld [vmem:[%s5773_s18 + $0xe0] sm:$0xff] }
 0x191   : > { %4866 = vpow2.f32 %v2043_v12  ;;  %v6847_v39 = vadd.f32 1e-05, %v688_v50  ;;  %v4859_v13 = vpop.eup %4858  ;;  %v6853_v30 = vmul.f32 %v3227_v15, %v3099_v2  ;;  %v6857_v26 = vmul.f32 %v3228_v4, %v3100_v42 }
 0x192   : > { %8581 = vst [vmem:[#allocation21_spill] sm:$0xff] %v6849_v20  ;;  %v687_v52 = vsub.f32 %v623_v36, %v655_v6  ;;  %v6859_v59 = vpack.c.bf16 %v1508_v28, %v1419_v53  ;;  %v6861_v43 = vpack.c.bf16 %v4859_v13, %v4857_v33  ;;  %v1826_v14 = vxor.u32 2147516416, %v6849_v20  ;;  %v1421_v16 = vpop.f32.mrf.mxu0  ;;  %v1510_v27 = vpop.f32.mrf.mxu1 }
 0x193   : > { %4868 = vrsqrt.f32 %v6847_v39  ;;  %v4861_v2 = vpop.eup %4860  ;;  %v6872_v49 = vmul.f32 %v3229_v9, %v3101_v54  ;;  %v6876_v42 = vmul.f32 %v3230_v31, %v3102_v7  ;;  %v6881_v4 = vadd.f32 1.0, %v2339_v47  ;;  %v457_v9 = vpop.xlane.xlu0 %456 }
 0x194   : > { %8582 = vst [vmem:[#allocation22_spill] sm:$0xff] %v6859_v59  ;;  %v6878_v53 = vadd.f32 1e-05, %v687_v52  ;;  %v1827_v36 = vxor.u32 2147516416, %v6859_v59  ;;  %v4863_v15 = vpop.eup %4862  ;;  %v6883_v6 = vadd.f32 1.0, %v2340_v57  ;;  %v1899_v25 = vunpack.c.l.bf16 %v1826_v14  ;;  %v6896_v46 = vpop.f32.mrf.mxu2 }
 0x195   : > { %8583 = vst [vmem:[#allocation23_spill] sm:$0xff] %v6881_v4  ;;  %v1900_v38 = vunpack.c.h.bf16 %v1826_v14  ;;  %v2341_v54 = vunpack.c.l.bf16 %v6861_v43  ;;  %v6888_v56 = vpack.c.bf16 %v4863_v15, %v4861_v2  ;;  %v6892_v28 = vmul.f32 %v5856_v55, %v457_v9  ;;  %v6898_v8 = vpop.f32.mrf.mxu3  ;;  %v6905_v15 = vld [vmem:[%s5773_s18 + $0xe8] sm:$0xff] }
 0x196   : > { %8584 = vst [vmem:[#allocation24_spill] sm:$0xff] %v6883_v6  ;;  %v4865_v12 = vpop.eup %4864  ;;  %4870 = vrsqrt.f32 %v6878_v53  ;;  %v1901_v7 = vunpack.c.l.bf16 %v1827_v36  ;;  %v2045_v33 = vmul.f32 1.442695, %v1899_v25  ;;  %v1902_v13 = vunpack.c.h.bf16 %v1827_v36 }
 0x197   : > { %v4867_v31 = vpop.eup %4866  ;;  %v2047_v57 = vmul.f32 1.442695, %v1900_v38  ;;  %v1597_v52 = vadd.f32 %v1596_v21, %v6629_v18  ;;  %v1686_v14 = vadd.f32 %v1685_v29, %v6635_v35  ;;  %vm1051_vm5 = vweird.f32 %v6847_v39  ;;  %v459_v38 = vpop.xlane.xlu1 %458 }
 0x198   : > { %v6902_v2 = vpack.c.bf16 %v4867_v31, %v4865_v12  ;;  %v2342_v21 = vunpack.c.h.bf16 %v6861_v43  ;;  %v6912_v29 = vadd.f32 1.0, %v2341_v54  ;;  %v2049_v9 = vmul.f32 1.442695, %v1901_v7 }
 0x199   : > { %v6900_v17 = vpop.eup %4868  ;;  %v2343_v47 = vunpack.c.l.bf16 %v6888_v56  ;;  %4872 = vpow2.f32 %v2045_v33  ;;  %v2051_v31 = vmul.f32 1.442695, %v1902_v13  ;;  %v2344_v3 = vunpack.c.h.bf16 %v6888_v56  ;;  %v592_v13 = vpop.xlane.xlu2 %591 }
 0x19a   : > { %v1046_v12 = vmul.f32 %v6900_v17, %v6847_v39  ;;  %4874 = vpow2.f32 %v2047_v57  ;;  %v6923_v43 = vmul.f32 %v6892_v28, %v6892_v28  ;;  %v6925_v54 = vpack.c.bf16 %v1686_v14, %v1597_v52  ;;  %v1423_v25 = vpop.f32.mrf.mxu0  ;;  %v1512_v20 = vpop.f32.mrf.mxu1 }
 0x19b   : > { %v2345_v7 = vunpack.c.l.bf16 %v6902_v2  ;;  %vm1052_vm6 = vweird.f32 %v6900_v17  ;;  %vm1041_vm7 = vweird.f32 %v6878_v53  ;;  %4876 = vpow2.f32 %v2049_v9 }
 0x19c   : > { %v6918_v10 = vpop.eup %4870  ;;  %8585 = vst [vmem:[#allocation25_spill] sm:$0xff] %v6925_v54  ;;  %v1047_v36 = vmul.f32 %v6900_v17, %v1046_v12  ;;  %v1828_v56 = vxor.u32 2147516416, %v6925_v54  ;;  %v1422_v57 = vadd.f32 %v1421_v16, %v6568_v37  ;;  %v1511_v52 = vadd.f32 %v1510_v27, %v6584_v24  ;;  %vm6963_vm8 = vmor %vm1051_vm5, %vm1052_vm6 }
 0x19d   : > { %v1036_v33 = vmul.f32 %v6918_v10, %v6878_v53  ;;  %4878 = vpow2.f32 %v2051_v31  ;;  %v6938_v12 = vmul.f32 %v5856_v55, %v459_v38  ;;  %v625_v9 = vmul.f32 %v592_v13, %v5856_v55  ;;  %v594_v31 = vpop.xlane.xlu0 %593  ;;  %v6949_v38 = vld [vmem:[%s5773_s18 + $0xf0] sm:$0xff]  ;;  %v1601_v13 = vpop.f32.mrf.mxu2 }
 0x19e   : > { %v1048_v14 = vmul.f32 0.5, %v1047_v36  ;;  %v1903_v11 = vunpack.c.l.bf16 %v1828_v56  ;;  %v1904_v59 = vunpack.c.h.bf16 %v1828_v56  ;;  %v6940_v41 = vpack.c.bf16 %v1511_v52, %v1422_v57  ;;  %v1690_v32 = vpop.f32.mrf.mxu3 }
 0x19f   : > { %v1037_v50 = vmul.f32 %v6918_v10, %v1036_v33  ;;  %v4873_v54 = vpop.eup %4872  ;;  %v6943_v16 = vadd.f32 1.0, %v2342_v21  ;;  %v2346_v27 = vunpack.c.h.bf16 %v6902_v2  ;;  %v6946_v62 = vadd.f32 1.0, %v2343_v47 }
 0x1a0   : > { %8586 = vst [vmem:[#allocation26_spill] sm:$0xff] %v6940_v41  ;;  %v1049_v36 = vsub.f32 1.5, %v1048_v14  ;;  %v4875_v40 = vpop.eup %4874  ;;  %v2053_v57 = vmul.f32 1.442695, %v1903_v11  ;;  %v1829_v52 = vxor.u32 2147516416, %v6940_v41  ;;  %v6954_v21 = vadd.f32 1.0, %v2344_v3 }
 0x1a1   : > { %v1038_v33 = vmul.f32 0.5, %v1037_v50  ;;  %8587 = vst [vmem:[#allocation27_spill] sm:$0xff] %v6946_v62  ;;  %v6956_v6 = vadd.f32 1.0, %v2345_v7  ;;  %v2055_v11 = vmul.f32 1.442695, %v1904_v59  ;;  %v4877_v2 = vpop.eup %4876  ;;  %v658_v3 = vmul.f32 %v6938_v12, %v6938_v12  ;;  %v6979_v62 = vld [vmem:[%s5773_s18 + $0xf8] sm:$0xff] }
 0x1a2   : > { %8588 = vst [vmem:[#allocation28_spill] sm:$0xff] %v6954_v21  ;;  %v1050_v50 = vmul.f32 %v6900_v17, %v1049_v36  ;;  %v689_v7 = vsub.f32 %v625_v9, %v6923_v43  ;;  %v626_v56 = vmul.f32 %v594_v31, %v5856_v55  ;;  %v2274_v21 = vpack.c.bf16 %v4875_v40, %v4873_v54 }
 0x1a3   : > { %8589 = vst [vmem:[#allocation29_spill] sm:$0xff] %v6956_v6  ;;  %v1039_v14 = vsub.f32 1.5, %v1038_v33  ;;  %v4879_v36 = vpop.eup %4878  ;;  %v6971_v6 = vadd.f32 1.0, %v2346_v27  ;;  %vm1042_vm9 = vweird.f32 %v6918_v10  ;;  %v1905_v39 = vunpack.c.l.bf16 %v1829_v52 }
 0x1a4   : > { %v1054_v59 = vsel %vm6963_vm8, %v6900_v17, %v1050_v50  ;;  %4880 = vpow2.f32 %v2053_v57  ;;  %v1906_v55 = vunpack.c.h.bf16 %v1829_v52  ;;  %v2275_v27 = vpack.c.bf16 %v4879_v36, %v4877_v2  ;;  %vm6996_vm10 = vmor %vm1041_vm7, %vm1042_vm9  ;;  %v1426_v2 = vpop.f32.mrf.mxu0 }
 0x1a5   : > { %8592 = vst [vmem:[#allocation30_spill] sm:$0xff] %v6971_v6  ;;  %4882 = vpow2.f32 %v2055_v11  ;;  %v2057_v9 = vmul.f32 1.442695, %v1905_v39  ;;  %v1040_v54 = vmul.f32 %v6918_v10, %v1039_v14  ;;  %v6985_v31 = vadd.f32 1e-05, %v689_v7 }
 0x1a6   : > { %v690_v47 = vsub.f32 %v626_v56, %v658_v3  ;;  %v8593_v17 = vsub.f32 %v6905_v15, %v6826_v19  ;;  %v2347_v50 = vunpack.c.l.bf16 %v2274_v21  ;;  %v2348_v33 = vunpack.c.h.bf16 %v2274_v21  ;;  %v1515_v56 = vpop.f32.mrf.mxu1 }
 0x1a7   : > { %v1600_v11 = vadd.f32 %v6896_v46, %v6629_v18  ;;  %v2059_v14 = vmul.f32 1.442695, %v1906_v55  ;;  %4884 = vrsqrt.f32 %v6985_v31  ;;  %v1689_v15 = vadd.f32 %v6898_v8, %v6635_v35  ;;  %v4634_v55 = vld [vmem:[#allocation10 + $0x8] sm:$0xff] }
 0x1a8   : > { %v6990_v57 = vmul.f32 %v1054_v59, %v8593_v17  ;;  %v7003_v19 = vadd.f32 1e-05, %v690_v47  ;;  %4886 = vpow2.f32 %v2057_v9  ;;  %v1424_v53 = vadd.f32 %v1423_v25, %v6568_v37  ;;  %v4650_v59 = vld [vmem:[#allocation10 + $0x88] sm:$0xff]  ;;  %v7016_v9 = vpop.f32.mrf.mxu2  ;;  %v7018_v25 = vpop.f32.mrf.mxu3  ;;  %3813 = vmatpush.bf16.msrb.mxu0 %v4634_v55 }
 0x1a9   : > { %v1513_v21 = vadd.f32 %v1512_v20, %v6584_v24  ;;  %v1602_v3 = vadd.f32 %v1601_v13, %v6629_v18  ;;  %v1044_v46 = vsel %vm6996_vm10, %v6918_v10, %v1040_v54  ;;  %v2349_v36 = vunpack.c.l.bf16 %v2275_v27  ;;  %v4658_v8 = vld [vmem:[#allocation10 + $0xc8] sm:$0xff]  ;;  %3991 = vmatpush.bf16.msrb.mxu2 %v4650_v59 }
 0x1aa   : > { %v4881_v7 = vpop.eup %4880  ;;  %4888 = vrsqrt.f32 %v7003_v19  ;;  %v7014_v39 = vpack.c.bf16 %v1689_v15, %v1600_v11  ;;  %v1691_v13 = vadd.f32 %v1690_v32, %v6635_v35  ;;  %v1427_v17 = vadd.f32 %v1426_v2, %v6568_v37  ;;  %4080 = vmatpush.bf16.msrb.mxu3 %v4658_v8 }
 0x1ab   : > { %v4883_v20 = vpop.eup %4882  ;;  %v7020_v47 = vpack.c.bf16 %v1513_v21, %v1424_v53  ;;  %v1516_v10 = vadd.f32 %v1515_v56, %v6584_v24  ;;  %v7025_v54 = vadd.f32 1.0, %v2347_v50  ;;  %v2350_v52 = vunpack.c.h.bf16 %v2275_v27 }
 0x1ac   : > { %8596 = vst [vmem:[#allocation31_spill] sm:$0xff] %v7014_v39  ;;  %4890 = vpow2.f32 %v2059_v14  ;;  %v1830_v11 = vxor.u32 2147516416, %v7014_v39  ;;  %v7028_v15 = vadd.f32 1.0, %v2348_v33  ;;  %v7031_v53 = vpack.c.bf16 %v1691_v13, %v1602_v3 }
 0x1ad   : > { %8597 = vst [vmem:[#allocation32_spill] sm:$0xff] %v7020_v47  ;;  %v1831_v40 = vxor.u32 2147516416, %v7020_v47  ;;  %v7033_v21 = vpack.c.bf16 %v1516_v10, %v1427_v17  ;;  %v7035_v32 = vpop.eup %4884  ;;  %v8602_v50 = vsub.f32 %v6864_v34, %v6818_v63  ;;  %v7042_v2 = vpack.c.bf16 %v4883_v20, %v4881_v7  ;;  %v4642_v20 = vld [vmem:[#allocation10 + $0x48] sm:$0xff] }
 0x1ae   : > { %8598 = vst [vmem:[#allocation33_spill] sm:$0xff] %v7025_v54  ;;  %v1907_v56 = vunpack.c.l.bf16 %v1830_v11  ;;  %v1908_v14 = vunpack.c.h.bf16 %v1830_v11  ;;  %v4887_v33 = vpop.eup %4886  ;;  %v7044_v59 = vadd.f32 1.0, %v2349_v36  ;;  %v1056_v3 = vmul.f32 %v7035_v32, %v6985_v31  ;;  %v1428_v11 = vpop.f32.mrf.mxu0  ;;  %3902 = vmatpush.bf16.msrb.mxu1 %v4642_v20  ;;  %v7072_v20 = vld [vmem:[#allocation5] ss:$0 sm:$0xff] }
 0x1af   : > { %8599 = vst [vmem:[#allocation34_spill] sm:$0xff] %v7028_v15  ;;  %v7040_v27 = vmul.f32 %v1044_v46, %v8602_v50  ;;  %v1909_v55 = vunpack.c.l.bf16 %v1831_v40  ;;  %v1910_v13 = vunpack.c.h.bf16 %v1831_v40  ;;  %v7050_v17 = vadd.f32 1.0, %v2350_v52  ;;  %v7057_v50 = vpop.f32.mrf.mxu1 }
 0x1b0   : > { %8600 = vst [vmem:[#allocation35_spill] sm:$0xff] %v7031_v53  ;;  %v7048_v8 = vpop.eup %4888  ;;  %v2061_v10 = vmul.f32 1.442695, %v1907_v56  ;;  %v2063_v63 = vmul.f32 1.442695, %v1908_v14  ;;  %v1832_v34 = vxor.u32 2147516416, %v7031_v53  ;;  %v1057_v7 = vmul.f32 %v7035_v32, %v1056_v3  ;;  %v7065_v15 = vpop.f32.mrf.mxu2 }
 0x1b1   : > { %8601 = vst [vmem:[#allocation36_spill] sm:$0xff] %v7033_v21  ;;  %vm1061_vm11 = vweird.f32 %v6985_v31  ;;  %v1066_v46 = vmul.f32 %v7048_v8, %v7003_v19  ;;  %v2065_v36 = vmul.f32 1.442695, %v1909_v55  ;;  %v2351_v52 = vunpack.c.l.bf16 %v7042_v2  ;;  %v7067_v54 = vpop.f32.mrf.mxu3 }
 0x1b2   : > { %8603 = vst [vmem:[#allocation37_spill] sm:$0xff] %v7044_v59  ;;  %v4891_v40 = vpop.eup %4890  ;;  %vm1071_vm12 = vweird.f32 %v7003_v19  ;;  %4892 = vpow2.f32 %v2061_v10  ;;  %v2067_v56 = vmul.f32 1.442695, %v1910_v13  ;;  %v1058_v14 = vmul.f32 0.5, %v1057_v7 }
 0x1b3   : > { %8604 = vst [vmem:[#allocation38_spill] sm:$0xff] %v7050_v17  ;;  %v1067_v3 = vmul.f32 %v7048_v8, %v1066_v46  ;;  %4894 = vpow2.f32 %v2063_v63  ;;  %v1911_v43 = vunpack.c.l.bf16 %v1832_v34  ;;  %v2352_v41 = vunpack.c.h.bf16 %v7042_v2 }
 0x1b4   : > { %v1912_v47 = vunpack.c.h.bf16 %v1832_v34  ;;  %v2277_v17 = vpack.c.bf16 %v4891_v40, %v4887_v33  ;;  %v1059_v10 = vsub.f32 1.5, %v1058_v14  ;;  %4896 = vpow2.f32 %v2065_v36 }
 0x1b5   : > { %v1068_v13 = vmul.f32 0.5, %v1067_v3  ;;  %vm1062_vm13 = vweird.f32 %v7035_v32  ;;  %vm1072_vm14 = vweird.f32 %v7048_v8  ;;  %4898 = vpow2.f32 %v2067_v56 }
 0x1b6   : > { %v1833_v2 = vxor.u32 2147516416, %v7033_v21  ;;  %v2069_v7 = vmul.f32 1.442695, %v1911_v43  ;;  %v2071_v46 = vmul.f32 1.442695, %v1912_v47  ;;  %v1135_v34 = vmul.f32 %v7072_v20, %v6706_v1  ;;  %vm7085_vm15 = vmor %vm1061_vm11, %vm1062_vm13  ;;  %v4633_v21 = vld [vmem:[#allocation10] sm:$0xff] }
 0x1b7   : > { %v1069_v63 = vsub.f32 1.5, %v1068_v13  ;;  %v1060_v33 = vmul.f32 %v7035_v32, %v1059_v10  ;;  %v1136_v14 = vmul.f32 %v7072_v20, %v6708_v58  ;;  %v7079_v56 = vadd.f32 1.0, %v2351_v52  ;;  %v7092_v1 = vld [vmem:[%s8388_s2] ss:$0 sm:$0xff]  ;;  %v1431_v52 = vpop.f32.mrf.mxu0  ;;  %v1520_v10 = vpop.f32.mrf.mxu1  ;;  %vm7102_vm0 = vmor %vm1071_vm12, %vm1072_vm14  ;;  %3814 = vmatpush.bf16.msrb.mxu0 %v4633_v21 }
 0x1b8   : > { %v4893_v53 = vpop.eup %4892  ;;  %v1913_v40 = vunpack.c.l.bf16 %v1833_v2  ;;  %v1914_v36 = vunpack.c.h.bf16 %v1833_v2  ;;  %v2353_v55 = vunpack.c.l.bf16 %v2277_v17  ;;  %v1171_v47 = vadd.f32 %v7092_v1, %v1135_v34 }
 0x1b9   : > { %v4895_v3 = vpop.eup %4894  ;;  %8605 = vst [vmem:[#allocation39_spill] sm:$0xff] %v7079_v56  ;;  %v1605_v58 = vadd.f32 %v7016_v9, %v6629_v18  ;;  %v2354_v13 = vunpack.c.h.bf16 %v2277_v17  ;;  %v1070_v2 = vmul.f32 %v7048_v8, %v1069_v63  ;;  %4900 = vpow2.f32 %v2069_v7 }
 0x1ba   : > { %v2278_v31 = vpack.c.bf16 %v4895_v3, %v4893_v53  ;;  %v2073_v39 = vmul.f32 1.442695, %v1913_v40  ;;  %v4897_v56 = vpop.eup %4896  ;;  %v2075_v34 = vmul.f32 1.442695, %v1914_v36  ;;  %v1172_v9 = vadd.f32 %v7092_v1, %v1136_v14  ;;  %v1609_v40 = vpop.f32.mrf.mxu2 }
 0x1bb   : > { %v1694_v17 = vadd.f32 %v7018_v25, %v6635_v35  ;;  %v4899_v6 = vpop.eup %4898  ;;  %v1064_v53 = vsel %vm7085_vm15, %v7035_v32, %v1060_v33  ;;  %4902 = vpow2.f32 %v2071_v46  ;;  %v1429_v19 = vadd.f32 %v1428_v11, %v6568_v37  ;;  %v1698_v3 = vpop.f32.mrf.mxu3 }
 0x1bc   : > { %v2355_v63 = vunpack.c.l.bf16 %v2278_v31  ;;  %4904 = vpow2.f32 %v2073_v39  ;;  %v1191_v4 = vpack.c.bf16 %v1172_v9, %v1171_v47  ;;  %v1518_v36 = vadd.f32 %v7057_v50, %v6584_v24 }
 0x1bd   : > { %v7113_v7 = vpack.c.bf16 %v1694_v17, %v1605_v58  ;;  %v7117_v14 = vadd.f32 1.0, %v2352_v41  ;;  %v7119_v25 = vadd.f32 1.0, %v2353_v55  ;;  %v1074_v32 = vsel %vm7102_vm0, %v7048_v8, %v1070_v2 }
 0x1be   : > { %v2356_v46 = vunpack.c.h.bf16 %v2278_v31  ;;  %v7124_v33 = vadd.f32 1.0, %v2354_v13  ;;  %v7126_v11 = vpack.c.bf16 %v4899_v6, %v4897_v56  ;;  %4906 = vpow2.f32 %v2075_v34  ;;  %1465 = vmatmul.bf16.gmra.mxu0 %v1191_v4  ;;  %1554 = vmatmul.bf16.gmra.mxu1 %v1191_v4 }
 0x1bf   : > { %8610 = vst [vmem:[#allocation40_spill] sm:$0xff] %v7113_v7  ;;  %v1834_v39 = vxor.u32 2147516416, %v7113_v7  ;;  %v8611_v41 = vsub.f32 %v6949_v38, %v6892_v28  ;;  %1643 = vmatmul.bf16.gmra.mxu2 %v1191_v4  ;;  %1732 = vmatmul.bf16.gmra.mxu3 %v1191_v4  ;;  %v7136_v8 = vpack.c.bf16 %v1518_v36, %v1429_v19  ;;  %v4901_v6 = vpop.eup %4900  ;;  %v7143_v47 = vadd.f32 1.0, %v2355_v63  ;;  %v1433_v38 = vpop.f32.mrf.mxu0 }
 0x1c0   : > { %v8613_v56 = vsub.f32 %v6979_v62, %v6938_v12  ;;  %v7145_v2 = vadd.f32 1.0, %v2356_v46  ;;  %v1607_v4 = vadd.f32 %v7065_v15, %v6629_v18  ;;  %v1696_v34 = vadd.f32 %v7067_v54, %v6635_v35  ;;  %v1522_v9 = vpop.f32.mrf.mxu1 }
 0x1c1   : > { %v7132_v50 = vmul.f32 %v1064_v53, %v8611_v41  ;;  %8612 = vst [vmem:[#allocation41_spill] sm:$0xff] %v7136_v8  ;;  %v1915_v58 = vunpack.c.l.bf16 %v1834_v39  ;;  %v1916_v28 = vunpack.c.h.bf16 %v1834_v39  ;;  %v4903_v13 = vpop.eup %4902  ;;  %v1835_v31 = vxor.u32 2147516416, %v7136_v8  ;;  %v4657_v8 = vld [vmem:[#allocation10 + $0xc0] sm:$0xff] }
 0x1c2   : > { %v7141_v43 = vmul.f32 %v1074_v32, %v8613_v56  ;;  %8614 = vst [vmem:[#allocation42_spill] sm:$0xff] %v7143_v47  ;;  %v4905_v62 = vpop.eup %4904  ;;  %v2357_v12 = vunpack.c.l.bf16 %v7126_v11  ;;  %v1432_v63 = vadd.f32 %v1431_v52, %v6568_v37  ;;  %v7154_v32 = vpack.c.bf16 %v1696_v34, %v1607_v4  ;;  %4081 = vmatpush.bf16.msrb.mxu3 %v4657_v8 }
 0x1c3   : > { %8615 = vst [vmem:[#allocation43_spill] sm:$0xff] %v7145_v2  ;;  %v2077_v17 = vmul.f32 1.442695, %v1915_v58  ;;  %v2079_v53 = vmul.f32 1.442695, %v1916_v28  ;;  %v1917_v19 = vunpack.c.l.bf16 %v1835_v31  ;;  %v1918_v36 = vunpack.c.h.bf16 %v1835_v31  ;;  %v7164_v58 = vpop.f32.mrf.mxu2  ;;  %v7166_v52 = vpop.f32.mrf.mxu3 }
 0x1c4   : > { %8616 = vst [vmem:[#allocation44_spill] sm:$0xff] %v7154_v32  ;;  %v1521_v46 = vadd.f32 %v1520_v10, %v6584_v24  ;;  %v4907_v39 = vpop.eup %4906  ;;  %v2358_v15 = vunpack.c.h.bf16 %v7126_v11  ;;  %v7158_v41 = vpack.c.bf16 %v4903_v13, %v4901_v6  ;;  %v1137_v54 = vmul.f32 %v7072_v20, %v6788_v23 }
 0x1c5   : > { %v1138_v56 = vmul.f32 %v7072_v20, %v6815_v51  ;;  %v7168_v28 = vpack.c.bf16 %v4907_v39, %v4905_v62  ;;  %4908 = vpow2.f32 %v2077_v17  ;;  %v2081_v31 = vmul.f32 1.442695, %v1917_v19 }
 0x1c6   : > { %v2083_v10 = vmul.f32 1.442695, %v1918_v36  ;;  %4910 = vpow2.f32 %v2079_v53  ;;  %v1836_v11 = vxor.u32 2147516416, %v7154_v32  ;;  %v7171_v6 = vpack.c.bf16 %v1521_v46, %v1432_v63 }
 0x1c7   : > { %v1610_v13 = vadd.f32 %v1609_v40, %v6629_v18  ;;  %4912 = vpow2.f32 %v2081_v31  ;;  %v1173_v23 = vadd.f32 %v7092_v1, %v1137_v54  ;;  %v1174_v51 = vadd.f32 %v7092_v1, %v1138_v56  ;;  %v1436_v56 = vpop.f32.mrf.mxu0 }
 0x1c8   : > { %8617 = vst [vmem:[#allocation45_spill] sm:$0xff] %v7171_v6  ;;  %v1699_v4 = vadd.f32 %v1698_v3, %v6635_v35  ;;  %4914 = vpow2.f32 %v2083_v10  ;;  %v1919_v34 = vunpack.c.l.bf16 %v1836_v11  ;;  %v1920_v62 = vunpack.c.h.bf16 %v1836_v11  ;;  %v1525_v55 = vpop.f32.mrf.mxu1 }
 0x1c9   : > { %v1837_v17 = vxor.u32 2147516416, %v7171_v6  ;;  %v2359_v53 = vunpack.c.l.bf16 %v7158_v41  ;;  %v2360_v19 = vunpack.c.h.bf16 %v7158_v41  ;;  %v2361_v63 = vunpack.c.l.bf16 %v7168_v28  ;;  %v4649_v41 = vld [vmem:[#allocation10 + $0x80] sm:$0xff] }
 0x1ca   : > { %v2085_v36 = vmul.f32 1.442695, %v1919_v34  ;;  %v2087_v46 = vmul.f32 1.442695, %v1920_v62  ;;  %v2362_v3 = vunpack.c.h.bf16 %v7168_v28  ;;  %v7183_v10 = vpack.c.bf16 %v1699_v4, %v1610_v13  ;;  %3992 = vmatpush.bf16.msrb.mxu2 %v4649_v41 }
 0x1cb   : > { %v1921_v39 = vunpack.c.l.bf16 %v1837_v17  ;;  %v1922_v54 = vunpack.c.h.bf16 %v1837_v17  ;;  %v4909_v31 = vpop.eup %4908  ;;  %v1434_v11 = vadd.f32 %v1433_v38, %v6568_v37  ;;  %v1523_v59 = vadd.f32 %v1522_v9, %v6584_v24 }
 0x1cc   : > { %8618 = vst [vmem:[#allocation46_spill] sm:$0xff] %v7183_v10  ;;  %v4911_v32 = vpop.eup %4910  ;;  %4916 = vpow2.f32 %v2085_v36  ;;  %v1192_v62 = vpack.c.bf16 %v1174_v51, %v1173_v23  ;;  %v7187_v2 = vadd.f32 1.0, %v2357_v12  ;;  %v7189_v47 = vadd.f32 1.0, %v2358_v15  ;;  %v7197_v51 = vpop.f32.mrf.mxu2 }
 0x1cd   : > { %v2089_v40 = vmul.f32 1.442695, %v1921_v39  ;;  %v2091_v34 = vmul.f32 1.442695, %v1922_v54  ;;  %v4913_v17 = vpop.eup %4912  ;;  %4918 = vpow2.f32 %v2087_v46  ;;  %v1838_v28 = vxor.u32 2147516416, %v7183_v10  ;;  %v7199_v12 = vpop.f32.mrf.mxu3 }
 0x1ce   : > { %v4915_v38 = vpop.eup %4914  ;;  %v7192_v9 = vadd.f32 1.0, %v2359_v53  ;;  %1470 = vmatmul.bf16.gmra.mxu0 %v1192_v62  ;;  %1559 = vmatmul.bf16.gmra.mxu1 %v1192_v62  ;;  %v7195_v23 = vpack.c.bf16 %v1523_v59, %v1434_v11  ;;  %v2282_v15 = vpack.c.bf16 %v4911_v32, %v4909_v31  ;;  %v7201_v36 = vadd.f32 1.0, %v2360_v19 }
 0x1cf   : > { %4920 = vpow2.f32 %v2089_v40  ;;  %1648 = vmatmul.bf16.gmra.mxu2 %v1192_v62  ;;  %1737 = vmatmul.bf16.gmra.mxu3 %v1192_v62  ;;  %v1923_v4 = vunpack.c.l.bf16 %v1838_v28  ;;  %v1924_v21 = vunpack.c.h.bf16 %v1838_v28  ;;  %v7203_v53 = vadd.f32 1.0, %v2361_v63 }
 0x1d0   : > { %8619 = vst [vmem:[#allocation47_spill] sm:$0xff] %v7195_v23  ;;  %4922 = vpow2.f32 %v2091_v34  ;;  %v7205_v46 = vadd.f32 1.0, %v2362_v3  ;;  %v1839_v40 = vxor.u32 2147516416, %v7195_v23  ;;  %v7208_v59 = vpack.c.bf16 %v4915_v38, %v4913_v17  ;;  %v4641_v3 = vld [vmem:[#allocation10 + $0x40] sm:$0xff]  ;;  %v1527_v8 = vpop.f32.mrf.mxu1 }
 0x1d1   : > { %v2093_v39 = vmul.f32 1.442695, %v1923_v4  ;;  %v2095_v54 = vmul.f32 1.442695, %v1924_v21  ;;  %v1612_v32 = vadd.f32 %v7164_v58, %v6629_v18  ;;  %v1701_v19 = vadd.f32 %v7166_v52, %v6635_v35  ;;  %3903 = vmatpush.bf16.msrb.mxu1 %v4641_v3  ;;  %v1438_v21 = vpop.f32.mrf.mxu0 }
 0x1d2   : > { %v4917_v31 = vpop.eup %4916  ;;  %v1925_v11 = vunpack.c.l.bf16 %v1839_v40  ;;  %v1926_v41 = vunpack.c.h.bf16 %v1839_v40  ;;  %v1437_v63 = vadd.f32 %v1436_v56, %v6568_v37  ;;  %v2363_v62 = vunpack.c.l.bf16 %v2282_v15 }
 0x1d3   : > { %v4919_v34 = vpop.eup %4918  ;;  %4924 = vpow2.f32 %v2093_v39  ;;  %v1526_v17 = vadd.f32 %v1525_v55, %v6584_v24  ;;  %v2364_v38 = vunpack.c.h.bf16 %v2282_v15  ;;  %v7219_v13 = vpack.c.bf16 %v1701_v19, %v1612_v32 }
 0x1d4   : > { %4926 = vpow2.f32 %v2095_v54  ;;  %v2097_v58 = vmul.f32 1.442695, %v1925_v11  ;;  %v2099_v4 = vmul.f32 1.442695, %v1926_v41  ;;  %v2365_v39 = vunpack.c.l.bf16 %v7208_v59 }
 0x1d5   : > { %v4921_v28 = vpop.eup %4920  ;;  %8620 = vst [vmem:[#allocation48_spill] sm:$0xff] %v7219_v13  ;;  %v7221_v23 = vpack.c.bf16 %v1526_v17, %v1437_v63  ;;  %v2284_v55 = vpack.c.bf16 %v4919_v34, %v4917_v31  ;;  %v1139_v54 = vmul.f32 %v7072_v20, %v7040_v27  ;;  %v7227_v11 = vadd.f32 1.0, %v2363_v62  ;;  %v1616_v63 = vpop.f32.mrf.mxu2 }
 0x1d6   : > { %v4923_v40 = vpop.eup %4922  ;;  %4928 = vpow2.f32 %v2097_v58  ;;  %v1840_v41 = vxor.u32 2147516416, %v7219_v13  ;;  %v7231_v32 = vadd.f32 1.0, %v2364_v38  ;;  %v1140_v31 = vmul.f32 %v7072_v20, %v6990_v57  ;;  %v1705_v34 = vpop.f32.mrf.mxu3 }
 0x1d7   : > { %8621 = vst [vmem:[#allocation49_spill] sm:$0xff] %v7221_v23  ;;  %v1841_v3 = vxor.u32 2147516416, %v7221_v23  ;;  %v7233_v19 = vpack.c.bf16 %v4923_v40, %v4921_v28  ;;  %4930 = vpow2.f32 %v2099_v4  ;;  %v2366_v52 = vunpack.c.h.bf16 %v7208_v59 }
 0x1d8   : > { %8622 = vst [vmem:[#allocation50_spill] sm:$0xff] %v7227_v11  ;;  %v1927_v15 = vunpack.c.l.bf16 %v1840_v41  ;;  %v1928_v27 = vunpack.c.h.bf16 %v1840_v41  ;;  %v7238_v10 = vadd.f32 1.0, %v2365_v39  ;;  %v2367_v38 = vunpack.c.l.bf16 %v2284_v55  ;;  %v1530_v11 = vpop.f32.mrf.mxu1 }
 0x1d9   : > { %8623 = vst [vmem:[#allocation51_spill] sm:$0xff] %v7231_v32  ;;  %v4925_v17 = vpop.eup %4924  ;;  %v1929_v62 = vunpack.c.l.bf16 %v1841_v3  ;;  %v1930_v56 = vunpack.c.h.bf16 %v1841_v3  ;;  %v1175_v28 = vadd.f32 %v7092_v1, %v1139_v54  ;;  %v2368_v40 = vunpack.c.h.bf16 %v2284_v55 }
 0x1da   : > { %v4927_v58 = vpop.eup %4926  ;;  %v2101_v4 = vmul.f32 1.442695, %v1927_v15  ;;  %v2103_v6 = vmul.f32 1.442695, %v1928_v27  ;;  %v1176_v7 = vadd.f32 %v7092_v1, %v1140_v31  ;;  %v1615_v41 = vadd.f32 %v7197_v51, %v6629_v18  ;;  %v1441_v31 = vpop.f32.mrf.mxu0 }
 0x1db   : > { %v2105_v13 = vmul.f32 1.442695, %v1929_v62  ;;  %v2107_v57 = vmul.f32 1.442695, %v1930_v56  ;;  %v1704_v3 = vadd.f32 %v7199_v12, %v6635_v35  ;;  %v2369_v59 = vunpack.c.l.bf16 %v7233_v19 }
 0x1dc   : > { %v4929_v32 = vpop.eup %4928  ;;  %v2286_v39 = vpack.c.bf16 %v4927_v58, %v4925_v17  ;;  %4932 = vpow2.f32 %v2101_v4  ;;  %v1439_v54 = vadd.f32 %v1438_v21, %v6568_v37  ;;  %v7248_v15 = vadd.f32 1.0, %v2366_v52 }
 0x1dd   : > { %v4931_v55 = vpop.eup %4930  ;;  %4934 = vpow2.f32 %v2103_v6  ;;  %v1193_v56 = vpack.c.bf16 %v1176_v7, %v1175_v28  ;;  %v7250_v27 = vpack.c.bf16 %v1704_v3, %v1615_v41  ;;  %v7252_v62 = vadd.f32 1.0, %v2367_v38 }
 0x1de   : > { %4936 = vpow2.f32 %v2105_v13  ;;  %v1528_v12 = vadd.f32 %v1527_v8, %v6584_v24  ;;  %v7256_v17 = vadd.f32 1.0, %v2368_v40  ;;  %v2370_v21 = vunpack.c.h.bf16 %v7233_v19  ;;  %v1619_v19 = vpop.f32.mrf.mxu2  ;;  %v1708_v4 = vpop.f32.mrf.mxu3 }
 0x1df   : > { %8624 = vst [vmem:[#allocation52_spill] sm:$0xff] %v7250_v27  ;;  %4938 = vpow2.f32 %v2107_v57  ;;  %1475 = vmatmul.bf16.gmra.mxu0 %v1193_v56  ;;  %1564 = vmatmul.bf16.gmra.mxu1 %v1193_v56  ;;  %v1842_v7 = vxor.u32 2147516416, %v7250_v27  ;;  %v7260_v6 = vadd.f32 1.0, %v2369_v59  ;;  %v2371_v52 = vunpack.c.l.bf16 %v2286_v39 }
 0x1e0   : > { %1653 = vmatmul.bf16.gmra.mxu2 %v1193_v56  ;;  %1742 = vmatmul.bf16.gmra.mxu3 %v1193_v56  ;;  %v7262_v13 = vpack.c.bf16 %v1528_v12, %v1439_v54  ;;  %v1617_v58 = vadd.f32 %v1616_v63, %v6629_v18  ;;  %v2372_v8 = vunpack.c.h.bf16 %v2286_v39  ;;  %v7265_v38 = vpack.c.bf16 %v4931_v55, %v4929_v32 }
 0x1e1   : > { %8625 = vst [vmem:[#allocation53_spill] sm:$0xff] %v7260_v6  ;;  %v1931_v28 = vunpack.c.l.bf16 %v1842_v7  ;;  %v1932_v40 = vunpack.c.h.bf16 %v1842_v7  ;;  %v1706_v3 = vadd.f32 %v1705_v34, %v6635_v35  ;;  %v1442_v59 = vadd.f32 %v1441_v31, %v6568_v37 }
 0x1e2   : > { %8626 = vst [vmem:[#allocation54_spill] sm:$0xff] %v7262_v13  ;;  %v4933_v57 = vpop.eup %4932  ;;  %v1843_v41 = vxor.u32 2147516416, %v7262_v13  ;;  %v1531_v56 = vadd.f32 %v1530_v11, %v6584_v24  ;;  %v7271_v12 = vadd.f32 1.0, %v2370_v21  ;;  %v1141_v32 = vmul.f32 %v7072_v20, %v7132_v50 }
 0x1e3   : > { %v4935_v54 = vpop.eup %4934  ;;  %v2109_v63 = vmul.f32 1.442695, %v1931_v28  ;;  %v2111_v39 = vmul.f32 1.442695, %v1932_v40  ;;  %v7275_v6 = vpack.c.bf16 %v1706_v3, %v1617_v58  ;;  %v1142_v34 = vmul.f32 %v7072_v20, %v7141_v43  ;;  %v1443_v43 = vpop.f32.mrf.mxu0 }
 0x1e4   : > { %8627 = vst [vmem:[#allocation55_spill] sm:$0xff] %v7271_v12  ;;  %v4937_v55 = vpop.eup %4936  ;;  %v1933_v7 = vunpack.c.l.bf16 %v1843_v41  ;;  %v1934_v51 = vunpack.c.h.bf16 %v1843_v41  ;;  %v7279_v31 = vadd.f32 1.0, %v2371_v52  ;;  %v7282_v21 = vpack.c.bf16 %v1531_v56, %v1442_v59 }
 0x1e5   : > { %8628 = vst [vmem:[#allocation56_spill] sm:$0xff] %v7275_v6  ;;  %v4939_v13 = vpop.eup %4938  ;;  %4940 = vpow2.f32 %v2109_v63  ;;  %v7284_v28 = vadd.f32 1.0, %v2372_v8  ;;  %v2373_v50 = vunpack.c.l.bf16 %v7265_v38  ;;  %v2288_v40 = vpack.c.bf16 %v4935_v54, %v4933_v57  ;;  %v1532_v8 = vpop.f32.mrf.mxu1 }
 0x1e6   : > { %8629 = vst [vmem:[#allocation57_spill] sm:$0xff] %v7279_v31  ;;  %4942 = vpow2.f32 %v2111_v39  ;;  %v2113_v41 = vmul.f32 1.442695, %v1933_v7  ;;  %v2115_v58 = vmul.f32 1.442695, %v1934_v51  ;;  %v1844_v3 = vxor.u32 2147516416, %v7275_v6 }
 0x1e7   : > { %8630 = vst [vmem:[#allocation58_spill] sm:$0xff] %v7282_v21  ;;  %v1845_v20 = vxor.u32 2147516416, %v7282_v21  ;;  %v2374_v52 = vunpack.c.h.bf16 %v7265_v38  ;;  %v2289_v31 = vpack.c.bf16 %v4939_v13, %v4937_v55  ;;  %v1177_v63 = vadd.f32 %v7092_v1, %v1141_v32  ;;  %v1621_v55 = vpop.f32.mrf.mxu2  ;;  %v1710_v32 = vpop.f32.mrf.mxu3 }
 0x1e8   : > { %8631 = vst [vmem:[#allocation59_spill] sm:$0xff] %v7284_v28  ;;  %v1178_v59 = vadd.f32 %v7092_v1, %v1142_v34  ;;  %4944 = vpow2.f32 %v2113_v41  ;;  %v1935_v56 = vunpack.c.l.bf16 %v1844_v3  ;;  %v1936_v11 = vunpack.c.h.bf16 %v1844_v3 }
 0x1e9   : > { %v1937_v57 = vunpack.c.l.bf16 %v1845_v20  ;;  %v2375_v54 = vunpack.c.l.bf16 %v2288_v40  ;;  %4946 = vpow2.f32 %v2115_v58  ;;  %v2376_v23 = vunpack.c.h.bf16 %v2288_v40 }
 0x1ea   : > { %v2117_v6 = vmul.f32 1.442695, %v1935_v56  ;;  %v2119_v38 = vmul.f32 1.442695, %v1936_v11  ;;  %v1938_v13 = vunpack.c.h.bf16 %v1845_v20  ;;  %v2377_v1 = vunpack.c.l.bf16 %v2289_v31 }
 0x1eb   : > { %v4941_v7 = vpop.eup %4940  ;;  %v2378_v34 = vunpack.c.h.bf16 %v2289_v31  ;;  %v2121_v41 = vmul.f32 1.442695, %v1937_v57  ;;  %v1620_v3 = vadd.f32 %v1619_v19, %v6629_v18  ;;  %v1194_v12 = vpack.c.bf16 %v1178_v59, %v1177_v63 }
 0x1ec   : > { %v4943_v28 = vpop.eup %4942  ;;  %4948 = vpow2.f32 %v2117_v6  ;;  %v1709_v51 = vadd.f32 %v1708_v4, %v6635_v35  ;;  %v1444_v39 = vadd.f32 %v1443_v43, %v6568_v37  ;;  %v1533_v40 = vadd.f32 %v1532_v8, %v6584_v24 }
 0x1ed   : > { %4950 = vpow2.f32 %v2119_v38  ;;  %v1622_v11 = vadd.f32 %v1621_v55, %v6629_v18  ;;  %v1711_v58 = vadd.f32 %v1710_v32, %v6635_v35  ;;  %v7300_v56 = vadd.f32 1.0, %v2373_v50 }
 0x1ee   : > { %v4945_v20 = vpop.eup %4944  ;;  %v2290_v31 = vpack.c.bf16 %v4943_v28, %v4941_v7  ;;  %v2123_v57 = vmul.f32 1.442695, %v1938_v13  ;;  %v7302_v6 = vpack.c.bf16 %v1709_v51, %v1620_v3  ;;  %v7304_v4 = vadd.f32 1.0, %v2374_v52  ;;  %v1446_v7 = vpop.f32.mrf.mxu0 }
 0x1ef   : > { %1480 = vmatmul.bf16.gmra.mxu0 %v1194_v12  ;;  %1569 = vmatmul.bf16.gmra.mxu1 %v1194_v12  ;;  %v4947_v19 = vpop.eup %4946  ;;  %v7306_v43 = vadd.f32 1.0, %v2375_v54  ;;  %v7308_v63 = vpack.c.bf16 %v1533_v40, %v1444_v39  ;;  %v7310_v59 = vpack.c.bf16 %v1711_v58, %v1622_v11  ;;  %v7312_v8 = vadd.f32 1.0, %v2376_v23  ;;  %v1535_v54 = vpop.f32.mrf.mxu1 }
 0x1f0   : > { %8632 = vst [vmem:[#allocation60_spill] sm:$0xff] %v7302_v6  ;;  %1658 = vmatmul.bf16.gmra.mxu2 %v1194_v12  ;;  %1747 = vmatmul.bf16.gmra.mxu3 %v1194_v12  ;;  %v7314_v50 = vadd.f32 1.0, %v2377_v1  ;;  %v7316_v28 = vadd.f32 1.0, %v2378_v34  ;;  %v1846_v51 = vxor.u32 2147516416, %v7302_v6  ;;  %v7319_v38 = vpack.c.bf16 %v4947_v19, %v4945_v20 }
 0x1f1   : > { %8633 = vst [vmem:[#allocation61_spill] sm:$0xff] %v7308_v63  ;;  %4952 = vpow2.f32 %v2121_v41  ;;  %v1847_v52 = vxor.u32 2147516416, %v7308_v63  ;;  %v1848_v12 = vxor.u32 2147516416, %v7310_v59  ;;  %v2379_v13 = vunpack.c.l.bf16 %v2290_v31 }
 0x1f2   : > { %8634 = vst [vmem:[#allocation62_spill] sm:$0xff] %v7310_v59  ;;  %v4949_v39 = vpop.eup %4948  ;;  %4954 = vpow2.f32 %v2123_v57  ;;  %v1939_v23 = vunpack.c.l.bf16 %v1846_v51  ;;  %v1940_v55 = vunpack.c.h.bf16 %v1846_v51  ;;  %v1447_v40 = vadd.f32 %v1446_v7, %v6568_v37  ;;  %v1624_v57 = vpop.f32.mrf.mxu2 }
 0x1f3   : > { %8635 = vst [vmem:[#allocation63_spill] sm:$0xff] %v7312_v8  ;;  %v4951_v32 = vpop.eup %4950  ;;  %v1941_v1 = vunpack.c.l.bf16 %v1847_v52  ;;  %v1942_v34 = vunpack.c.h.bf16 %v1847_v52  ;;  %v1943_v3 = vunpack.c.l.bf16 %v1848_v12  ;;  %v2380_v11 = vunpack.c.h.bf16 %v2290_v31 }
 0x1f4   : > { %8636 = vst [vmem:[#allocation64_spill] sm:$0xff] %v7314_v50  ;;  %v2125_v41 = vmul.f32 1.442695, %v1939_v23  ;;  %v1944_v20 = vunpack.c.h.bf16 %v1848_v12  ;;  %v2381_v19 = vunpack.c.l.bf16 %v7319_v38  ;;  %v2127_v59 = vmul.f32 1.442695, %v1940_v55  ;;  %v1713_v50 = vpop.f32.mrf.mxu3 }
 0x1f5   : > { %8637 = vst [vmem:[#allocation65_spill] sm:$0xff] %v7316_v28  ;;  %v2129_v63 = vmul.f32 1.442695, %v1941_v1  ;;  %v1536_v27 = vadd.f32 %v1535_v54, %v6584_v24  ;;  %v2292_v28 = vpack.c.bf16 %v4951_v32, %v4949_v39  ;;  %v2131_v52 = vmul.f32 1.442695, %v1942_v34 }
 0x1f6   : > { %4956 = vpow2.f32 %v2125_v41  ;;  %v7328_v7 = vadd.f32 1.0, %v2379_v13  ;;  %v2133_v31 = vmul.f32 1.442695, %v1943_v3  ;;  %v7332_v58 = vadd.f32 1.0, %v2380_v11  ;;  %v1448_v41 = vpop.f32.mrf.mxu0 }
 0x1f7   : > { %v4953_v8 = vpop.eup %4952  ;;  %4958 = vpow2.f32 %v2127_v59  ;;  %v7330_v23 = vpack.c.bf16 %v1536_v27, %v1447_v40  ;;  %v2135_v39 = vmul.f32 1.442695, %v1944_v20  ;;  %v2382_v32 = vunpack.c.h.bf16 %v7319_v38  ;;  %v1537_v54 = vpop.f32.mrf.mxu1 }
 0x1f8   : > { %v4955_v12 = vpop.eup %4954  ;;  %8639 = vst [vmem:[#allocation67_spill] sm:$0xff] %v7332_v58  ;;  %v7337_v1 = vadd.f32 1.0, %v2381_v19  ;;  %4960 = vpow2.f32 %v2129_v63  ;;  %v2383_v34 = vunpack.c.l.bf16 %v2292_v28  ;;  %v2384_v59 = vunpack.c.h.bf16 %v2292_v28 }
 0x1f9   : > { %8638 = vst [vmem:[#allocation66_spill] sm:$0xff] %v7330_v23  ;;  %v1849_v13 = vxor.u32 2147516416, %v7330_v23  ;;  %4962 = vpow2.f32 %v2131_v52  ;;  %v2665_v27 = vunpack.c.h.bf16 %v6793_v60  ;;  %v2666_v11 = vunpack.c.l.bf16 %v6793_v60 }
 0x1fa   : > { %4964 = vpow2.f32 %v2133_v31  ;;  %v2293_v55 = vpack.c.bf16 %v4955_v12, %v4953_v8  ;;  %v2672_v38 = vunpack.c.h.bf16 %v6800_v48  ;;  %v1625_v63 = vadd.f32 %v1624_v57, %v6629_v18  ;;  %v1626_v57 = vpop.f32.mrf.mxu2 }
 0x1fb   : > { %v1945_v3 = vunpack.c.l.bf16 %v1849_v13  ;;  %v1946_v40 = vunpack.c.h.bf16 %v1849_v13  ;;  %4966 = vpow2.f32 %v2135_v39  ;;  %v1714_v52 = vadd.f32 %v1713_v50, %v6635_v35 }
 0x1fc   : > { %v4957_v20 = vpop.eup %4956  ;;  %4968 = vrcp.f32 %v2665_v27  ;;  %v2673_v31 = vunpack.c.l.bf16 %v6800_v48  ;;  %v1449_v60 = vadd.f32 %v1448_v41, %v6568_v37  ;;  %v1538_v13 = vadd.f32 %v1537_v54, %v6584_v24  ;;  %v1715_v48 = vpop.f32.mrf.mxu3 }
 0x1fd   : > { %v4959_v19 = vpop.eup %4958  ;;  %v2137_v51 = vmul.f32 1.442695, %v1945_v3  ;;  %v2139_v28 = vmul.f32 1.442695, %v1946_v40  ;;  %4970 = vrcp.f32 %v2666_v11  ;;  %v7348_v8 = vadd.f32 1.0, %v2382_v32 }
 0x1fe   : > { %v4961_v6 = vpop.eup %4960  ;;  %v2294_v12 = vpack.c.bf16 %v4959_v19, %v4957_v20  ;;  %v7350_v39 = vpack.c.bf16 %v1714_v52, %v1625_v63  ;;  %v7352_v40 = vadd.f32 1.0, %v2383_v34  ;;  %v2385_v27 = vunpack.c.l.bf16 %v2293_v55 }
 0x1ff   : > { %4972 = vpow2.f32 %v2137_v51  ;;  %v4963_v3 = vpop.eup %4962  ;;  %v7354_v50 = vpack.c.bf16 %v1538_v13, %v1449_v60  ;;  %v7356_v41 = vadd.f32 1.0, %v2384_v59  ;;  %v2386_v54 = vunpack.c.h.bf16 %v2293_v55 }
 0x200   : > { %8640 = vst [vmem:[#allocation68_spill] sm:$0xff] %v7350_v39  ;;  %4974 = vpow2.f32 %v2139_v28  ;;  %v4965_v11 = vpop.eup %4964  ;;  %v1850_v32 = vxor.u32 2147516416, %v7350_v39  ;;  %v1627_v34 = vadd.f32 %v1626_v57, %v6629_v18  ;;  %v2387_v28 = vunpack.c.l.bf16 %v2294_v12 }
 0x201   : > { %8641 = vst [vmem:[#allocation69_spill] sm:$0xff] %v7352_v40  ;;  %4976 = vrcp.f32 %v2672_v38  ;;  %v4967_v20 = vpop.eup %4966  ;;  %v2388_v52 = vunpack.c.h.bf16 %v2294_v12  ;;  %v1716_v13 = vadd.f32 %v1715_v48, %v6635_v35  ;;  %v7363_v21 = vadd.f32 1.0, %v2385_v27 }
 0x202   : > { %8642 = vst [vmem:[#allocation70_spill] sm:$0xff] %v7354_v50  ;;  %4978 = vrcp.f32 %v2673_v31  ;;  %v4969_v19 = vpop.eup %4968  ;;  %v1947_v60 = vunpack.c.l.bf16 %v1850_v32  ;;  %v1948_v38 = vunpack.c.h.bf16 %v1850_v32  ;;  %v7367_v40 = vadd.f32 1.0, %v2386_v54 }
 0x203   : > { %8643 = vst [vmem:[#allocation71_spill] sm:$0xff] %v7356_v41  ;;  %v4971_v59 = vpop.eup %4970  ;;  %v2668_v55 = vmul.f32 %v4969_v19, %v6660_v22  ;;  %v1851_v41 = vxor.u32 2147516416, %v7354_v50  ;;  %v7369_v31 = vpack.c.bf16 %v4963_v3, %v4961_v6  ;;  %v7371_v57 = vpack.c.bf16 %v4967_v20, %v4965_v11 }
 0x204   : > { %8644 = vst [vmem:[#allocation72_spill] sm:$0xff] %v7363_v21  ;;  %v2670_v48 = vmul.f32 %v4971_v59, %v6676_v0  ;;  %v2141_v23 = vmul.f32 1.442695, %v1947_v60  ;;  %v2143_v27 = vmul.f32 1.442695, %v1948_v38  ;;  %v7375_v19 = vadd.f32 1.0, %v2387_v28  ;;  %v1451_v28 = vpop.f32.mrf.mxu0 }
 0x205   : > { %v4973_v51 = vpop.eup %4972  ;;  %8645 = vst [vmem:[#allocation73_spill] sm:$0xff] %v7367_v40  ;;  %v1949_v21 = vunpack.c.l.bf16 %v1851_v41  ;;  %v7377_v32 = vadd.f32 1.0, %v2388_v52  ;;  %v1950_v50 = vunpack.c.h.bf16 %v1851_v41  ;;  %v7379_v54 = vpack.c.bf16 %v1716_v13, %v1627_v34 }
 0x206   : > { %v4975_v63 = vpop.eup %4974  ;;  %8646 = vst [vmem:[#allocation74_spill] sm:$0xff] %v7375_v19  ;;  %v2671_v3 = vpack.c.bf16 %v2668_v55, %v2670_v48  ;;  %4980 = vpow2.f32 %v2141_v23  ;;  %v2389_v12 = vunpack.c.l.bf16 %v7369_v31  ;;  %v2390_v60 = vunpack.c.h.bf16 %v7369_v31  ;;  %v1540_v23 = vpop.f32.mrf.mxu1 }
 0x207   : > { %v4977_v58 = vpop.eup %4976  ;;  %8647 = vst [vmem:[#allocation75_spill] sm:$0xff] %v7377_v32  ;;  %v2145_v20 = vmul.f32 1.442695, %v1949_v21  ;;  %4982 = vpow2.f32 %v2143_v27  ;;  %v2391_v52 = vunpack.c.l.bf16 %v7371_v57  ;;  %v2147_v34 = vmul.f32 1.442695, %v1950_v50 }
 0x208   : > { %8648 = vst [vmem:[#allocation76_spill] sm:$0xff] %v7379_v54  ;;  %v4979_v6 = vpop.eup %4978  ;;  %v2675_v11 = vmul.f32 %v4977_v58, %v6660_v22  ;;  %v3231_v38 = vunpack.c.l.bf16 %v2671_v3  ;;  %v3232_v41 = vunpack.c.h.bf16 %v2671_v3  ;;  %v2297_v13 = vpack.c.bf16 %v4975_v63, %v4973_v51 }
 0x209   : > { %v2677_v59 = vmul.f32 %v4979_v6, %v6676_v0  ;;  %4984 = vpow2.f32 %v2145_v20  ;;  %v1852_v58 = vxor.u32 2147516416, %v7379_v54  ;;  %v8649_v21 = vunpack.c.l.bf16 %v6678_v5  ;;  %v8671_v54 = vld [vmem:[#allocation16_spill] sm:$0xff] }
 0x20a   : > { %v8650_v31 = vunpack.c.h.bf16 %v6678_v5  ;;  %4986 = vpow2.f32 %v2147_v34  ;;  %v1452_v27 = vadd.f32 %v1451_v28, %v6568_v37  ;;  %v2589_v20 = vpack.c.bf16 %v6831_v45, %v6829_v61 }
 0x20b   : > { %v2678_v32 = vpack.c.bf16 %v2675_v11, %v2677_v59  ;;  %v3359_v55 = vmul.f32 %v3231_v38, %v8649_v21  ;;  %v1951_v40 = vunpack.c.l.bf16 %v1852_v58  ;;  %v1952_v3 = vunpack.c.h.bf16 %v1852_v58 }
 0x20c   : > { %v3360_v48 = vmul.f32 %v3232_v41, %v8650_v31  ;;  %v4981_v50 = vpop.eup %4980  ;;  %v1541_v11 = vadd.f32 %v1540_v23, %v6584_v24  ;;  %v2392_v5 = vunpack.c.h.bf16 %v7371_v57  ;;  %v8651_v38 = vunpack.c.l.bf16 %v6710_v44 }
 0x20d   : > { %v3233_v6 = vunpack.c.l.bf16 %v2678_v32  ;;  %v3234_v19 = vunpack.c.h.bf16 %v2678_v32  ;;  %v3483_v51 = vpack.c.bf16 %v3359_v55, %v6853_v30  ;;  %v4983_v59 = vpop.eup %4982  ;;  %v8652_v32 = vunpack.c.h.bf16 %v6710_v44 }
 0x20e   : > { %v3484_v63 = vpack.c.bf16 %v3360_v48, %v6857_v26  ;;  %v2149_v34 = vmul.f32 1.442695, %v1951_v40  ;;  %v2298_v30 = vpack.c.bf16 %v4983_v59, %v4981_v50  ;;  %v2151_v58 = vmul.f32 1.442695, %v1952_v3  ;;  %v1629_v50 = vpop.f32.mrf.mxu2 }
 0x20f   : > { %v3361_v28 = vmul.f32 %v3233_v6, %v8651_v38  ;;  %v3362_v41 = vmul.f32 %v3234_v19, %v8652_v32  ;;  %3815 = vmatmul.bf16.vlgmr.msrb.gmra.mxu0 %v3483_v51  ;;  %v7402_v26 = vpack.c.bf16 %v1541_v11, %v1452_v27  ;;  %v2679_v23 = vunpack.c.h.bf16 %v2589_v20  ;;  %v4985_v21 = vpop.eup %4984 }
 0x210   : > { %3904 = vmatmul.bf16.vlgmr.msrb.gmra.mxu1 %v3484_v63  ;;  %v2591_v57 = vpack.c.bf16 %v6943_v16, %v6912_v29  ;;  %v2680_v55 = vunpack.c.l.bf16 %v2589_v20  ;;  %v4987_v31 = vpop.eup %4986  ;;  %v2393_v44 = vunpack.c.l.bf16 %v2297_v13  ;;  %v2394_v19 = vunpack.c.h.bf16 %v2297_v13 }
 0x211   : > { %8653 = vst [vmem:[#allocation77_spill] sm:$0xff] %v7402_v26  ;;  %v3485_v61 = vpack.c.bf16 %v3361_v28, %v6872_v49  ;;  %v3486_v45 = vpack.c.bf16 %v3362_v41, %v6876_v42  ;;  %4988 = vpow2.f32 %v2149_v34  ;;  %v1853_v40 = vxor.u32 2147516416, %v7402_v26  ;;  %v8661_v41 = vld [vmem:[#allocation23_spill] sm:$0xff]  ;;  %v8662_v34 = vld [vmem:[#allocation24_spill] sm:$0xff] }
 0x212   : > { %v7409_v48 = vadd.f32 1.0, %v2389_v12  ;;  %v7411_v27 = vadd.f32 1.0, %v2390_v60  ;;  %4990 = vrcp.f32 %v2679_v23  ;;  %v7414_v42 = vadd.f32 1.0, %v2391_v52  ;;  %v1718_v12 = vpop.f32.mrf.mxu3  ;;  %v8670_v26 = vld [vmem:[#allocation19_spill] sm:$0xff] }
 0x213   : > { %3993 = vmatmul.bf16.vlgmr.msrb.gmra.mxu2 %v3485_v61  ;;  %4082 = vmatmul.bf16.vlgmr.msrb.gmra.mxu3 %v3486_v45  ;;  %v2395_v6 = vunpack.c.l.bf16 %v2298_v30  ;;  %4992 = vpow2.f32 %v2151_v58  ;;  %v1953_v29 = vunpack.c.l.bf16 %v1853_v40  ;;  %v2396_v16 = vunpack.c.h.bf16 %v2298_v30  ;;  %v8664_v58 = vld [vmem:[#allocation28_spill] sm:$0xff] }
 0x214   : > { %8654 = vst [vmem:[#allocation78_spill] sm:$0xff] %v7409_v48  ;;  %v7416_v3 = vpack.c.bf16 %v4987_v31, %v4985_v21  ;;  %4994 = vrcp.f32 %v2680_v55  ;;  %v2693_v13 = vunpack.c.h.bf16 %v2591_v57  ;;  %v7418_v51 = vadd.f32 1.0, %v2392_v5  ;;  %v8663_v5 = vld [vmem:[#allocation27_spill] sm:$0xff]  ;;  %v1453_v31 = vpop.f32.mrf.mxu0 }
 0x215   : > { %8655 = vst [vmem:[#allocation79_spill] sm:$0xff] %v7411_v27  ;;  %v7420_v60 = vadd.f32 1.0, %v2393_v44  ;;  %v7422_v63 = vadd.f32 1.0, %v2394_v19  ;;  %v2694_v11 = vunpack.c.l.bf16 %v2591_v57  ;;  %v1954_v20 = vunpack.c.h.bf16 %v1853_v40 }
 0x216   : > { %8656 = vst [vmem:[#allocation80_spill] sm:$0xff] %v7414_v42  ;;  %v2153_v52 = vmul.f32 1.442695, %v1953_v29  ;;  %4996 = vrcp.f32 %v2693_v13  ;;  %v7425_v28 = vadd.f32 1.0, %v2395_v6  ;;  %v2590_v30 = vpack.c.bf16 %v8662_v34, %v8661_v41  ;;  %v1542_v29 = vpop.f32.mrf.mxu1 }
 0x217   : > { %8657 = vst [vmem:[#allocation81_spill] sm:$0xff] %v7418_v51  ;;  %v4989_v38 = vpop.eup %4988  ;;  %v2592_v23 = vpack.c.bf16 %v8664_v58, %v8663_v5  ;;  %v7432_v61 = vadd.f32 1.0, %v2396_v16  ;;  %v2397_v45 = vunpack.c.l.bf16 %v7416_v3  ;;  %v1630_v55 = vadd.f32 %v1629_v50, %v6629_v18 }
 0x218   : > { %8658 = vst [vmem:[#allocation82_spill] sm:$0xff] %v7420_v60  ;;  %v4991_v21 = vpop.eup %4990  ;;  %4998 = vrcp.f32 %v2694_v11  ;;  %v2686_v40 = vunpack.c.h.bf16 %v2590_v30  ;;  %v2687_v6 = vunpack.c.l.bf16 %v2590_v30  ;;  %v2155_v41 = vmul.f32 1.442695, %v1954_v20 }
 0x219   : > { %8659 = vst [vmem:[#allocation83_spill] sm:$0xff] %v7422_v63  ;;  %v4993_v44 = vpop.eup %4992  ;;  %v2682_v19 = vmul.f32 %v4991_v21, %v6660_v22  ;;  %5000 = vpow2.f32 %v2153_v52  ;;  %v2700_v34 = vunpack.c.h.bf16 %v2592_v23  ;;  %v2701_v16 = vunpack.c.l.bf16 %v2592_v23  ;;  %v8667_v21 = vld [vmem:[#allocation18_spill] sm:$0xff] }
 0x21a   : > { %8660 = vst [vmem:[#allocation84_spill] sm:$0xff] %v7425_v28  ;;  %v4995_v13 = vpop.eup %4994  ;;  %5002 = vrcp.f32 %v2686_v40  ;;  %v1719_v58 = vadd.f32 %v1718_v12, %v6635_v35  ;;  %v1454_v50 = vadd.f32 %v1453_v31, %v6568_v37  ;;  %v7441_v59 = vadd.f32 1.0, %v2397_v45  ;;  %v1631_v45 = vpop.f32.mrf.mxu2 }
 0x21b   : > { %8665 = vst [vmem:[#allocation23_spill] sm:$0xff] %v7432_v61  ;;  %v2684_v5 = vmul.f32 %v4995_v13, %v6676_v0  ;;  %v3111_v11 = vunpack.c.l.bf16 %v8667_v21  ;;  %5004 = vrcp.f32 %v2687_v6  ;;  %v1543_v30 = vadd.f32 %v1542_v29, %v6584_v24  ;;  %v1720_v40 = vpop.f32.mrf.mxu3 }
 0x21c   : > { %v4997_v32 = vpop.eup %4996  ;;  %8666 = vst [vmem:[#allocation24_spill] sm:$0xff] %v7441_v59  ;;  %v7445_v49 = vpack.c.bf16 %v4993_v44, %v4989_v38  ;;  %5006 = vrcp.f32 %v2700_v34  ;;  %v7447_v52 = vpack.c.bf16 %v1719_v58, %v1630_v55  ;;  %v3112_v12 = vunpack.c.h.bf16 %v8667_v21 }
 0x21d   : > { %v2685_v20 = vpack.c.bf16 %v2682_v19, %v2684_v5  ;;  %v2696_v23 = vmul.f32 %v4997_v32, %v6660_v22  ;;  %5008 = vrcp.f32 %v2701_v16  ;;  %v7451_v31 = vpack.c.bf16 %v1543_v30, %v1454_v50 }
 0x21e   : > { %8668 = vst [vmem:[#allocation27_spill] sm:$0xff] %v7447_v52  ;;  %v4999_v13 = vpop.eup %4998  ;;  %v3113_v29 = vunpack.c.l.bf16 %v8670_v26  ;;  %v1854_v38 = vxor.u32 2147516416, %v7447_v52  ;;  %5010 = vpow2.f32 %v2155_v41  ;;  %v3114_v32 = vunpack.c.h.bf16 %v8670_v26  ;;  %v1545_v27 = vpop.f32.mrf.mxu1 }
 0x21f   : > { %8669 = vst [vmem:[#allocation28_spill] sm:$0xff] %v7451_v31  ;;  %v3235_v57 = vunpack.c.l.bf16 %v2685_v20  ;;  %v3236_v6 = vunpack.c.h.bf16 %v2685_v20  ;;  %v5001_v44 = vpop.eup %5000  ;;  %v2698_v55 = vmul.f32 %v4999_v13, %v6676_v0  ;;  %v1855_v19 = vxor.u32 2147516416, %v7451_v31 }
 0x220   : > { %v5003_v34 = vpop.eup %5002  ;;  %v1632_v58 = vadd.f32 %v1631_v45, %v6629_v18  ;;  %v1721_v50 = vadd.f32 %v1720_v40, %v6635_v35  ;;  %v1955_v41 = vunpack.c.l.bf16 %v1854_v38  ;;  %v1956_v39 = vunpack.c.h.bf16 %v1854_v38 }
 0x221   : > { %v5005_v21 = vpop.eup %5004  ;;  %v2699_v30 = vpack.c.bf16 %v2696_v23, %v2698_v55  ;;  %v2689_v20 = vmul.f32 %v5003_v34, %v6660_v22  ;;  %v8672_v26 = vunpack.c.l.bf16 %v8671_v54  ;;  %v8673_v31 = vunpack.c.h.bf16 %v8671_v54 }
 0x222   : > { %v5007_v13 = vpop.eup %5006  ;;  %v2691_v16 = vmul.f32 %v5005_v21, %v6676_v0  ;;  %v1957_v5 = vunpack.c.l.bf16 %v1855_v19  ;;  %v2157_v23 = vmul.f32 1.442695, %v1955_v41  ;;  %v2159_v38 = vmul.f32 1.442695, %v1956_v39 }
 0x223   : > { %v3363_v61 = vmul.f32 %v3235_v57, %v8672_v26  ;;  %v3364_v28 = vmul.f32 %v3236_v6, %v8673_v31  ;;  %v5009_v59 = vpop.eup %5008  ;;  %v3239_v45 = vunpack.c.l.bf16 %v2699_v30  ;;  %v3240_v63 = vunpack.c.h.bf16 %v2699_v30  ;;  %v1456_v26 = vpop.f32.mrf.mxu0 }
 0x224   : > { %v2703_v40 = vmul.f32 %v5007_v13, %v6660_v22  ;;  %v2692_v55 = vpack.c.bf16 %v2689_v20, %v2691_v16  ;;  %v2705_v34 = vmul.f32 %v5009_v59, %v6676_v0  ;;  %v1958_v60 = vunpack.c.h.bf16 %v1855_v19  ;;  %v5011_v51 = vpop.eup %5010  ;;  %v8674_v59 = vld [vmem:[#allocation17_spill] sm:$0xff] }
 0x225   : > { %v3367_v42 = vmul.f32 %v3239_v45, %v3111_v11  ;;  %v3368_v57 = vmul.f32 %v3240_v63, %v3112_v12  ;;  %5012 = vpow2.f32 %v2157_v23  ;;  %v2161_v54 = vmul.f32 1.442695, %v1957_v5 }
 0x226   : > { %v2706_v31 = vpack.c.bf16 %v2703_v40, %v2705_v34  ;;  %v3237_v6 = vunpack.c.l.bf16 %v2692_v55  ;;  %v3238_v21 = vunpack.c.h.bf16 %v2692_v55  ;;  %5014 = vpow2.f32 %v2159_v38  ;;  %v8683_v55 = vld [vmem:[#allocation38_spill] sm:$0xff] }
 0x227   : > { %v3487_v30 = vpack.c.bf16 %v3367_v42, %v3363_v61  ;;  %v3488_v48 = vpack.c.bf16 %v3368_v57, %v3364_v28  ;;  %5016 = vpow2.f32 %v2161_v54  ;;  %v2163_v41 = vmul.f32 1.442695, %v1958_v60  ;;  %v8679_v61 = vld [vmem:[#allocation30_spill] sm:$0xff] }
 0x228   : > { %v2301_v16 = vpack.c.bf16 %v5011_v51, %v5001_v44  ;;  %v3241_v20 = vunpack.c.l.bf16 %v2706_v31  ;;  %v8675_v39 = vunpack.c.l.bf16 %v8674_v59  ;;  %v3242_v13 = vunpack.c.h.bf16 %v2706_v31  ;;  %v8678_v51 = vld [vmem:[#allocation29_spill] sm:$0xff] }
 0x229   : > { %3820 = vmatmul.bf16.gmra.mxu0 %v3487_v30  ;;  %3909 = vmatmul.bf16.gmra.mxu1 %v3488_v48  ;;  %5018 = vpow2.f32 %v2163_v41  ;;  %v7472_v63 = vpack.c.bf16 %v1721_v50, %v1632_v58  ;;  %v1457_v11 = vadd.f32 %v1456_v26, %v6568_v37  ;;  %v1546_v12 = vadd.f32 %v1545_v27, %v6584_v24  ;;  %v8682_v50 = vld [vmem:[#allocation37_spill] sm:$0xff] }
 0x22a   : > { %v3365_v19 = vmul.f32 %v3237_v6, %v8675_v39  ;;  %v3369_v5 = vmul.f32 %v3241_v20, %v3113_v29  ;;  %v8677_v42 = vunpack.c.h.bf16 %v8674_v59  ;;  %v3370_v60 = vmul.f32 %v3242_v13, %v3114_v32 }
 0x22b   : > { %8676 = vst [vmem:[#allocation18_spill] sm:$0xff] %v7472_v63  ;;  %v2593_v44 = vpack.c.bf16 %v8679_v61, %v8678_v51  ;;  %v5013_v45 = vpop.eup %5012  ;;  %v8680_v40 = vunpack.c.h.bf16 %v7416_v3  ;;  %v1856_v48 = vxor.u32 2147516416, %v7472_v63  ;;  %v7485_v58 = vpack.c.bf16 %v1546_v12, %v1457_v11 }
 0x22c   : > { %v3366_v28 = vmul.f32 %v3238_v21, %v8677_v42  ;;  %v2595_v27 = vpack.c.bf16 %v8683_v55, %v8682_v50  ;;  %v5015_v29 = vpop.eup %5014  ;;  %v3489_v34 = vpack.c.bf16 %v3369_v5, %v3365_v19  ;;  %v2401_v31 = vunpack.c.l.bf16 %v2301_v16  ;;  %v8689_v50 = vld [vmem:[#allocation33_spill] sm:$0xff]  ;;  %v8690_v55 = vld [vmem:[#allocation34_spill] sm:$0xff] }
 0x22d   : > { %v7482_v23 = vadd.f32 1.0, %v8680_v40  ;;  %8681 = vst [vmem:[#allocation19_spill] sm:$0xff] %v7485_v58  ;;  %v2707_v57 = vunpack.c.h.bf16 %v2593_v44  ;;  %v2708_v32 = vunpack.c.l.bf16 %v2593_v44  ;;  %v5017_v54 = vpop.eup %5016  ;;  %v1959_v6 = vunpack.c.l.bf16 %v1856_v48 }
 0x22e   : > { %v3490_v38 = vpack.c.bf16 %v3370_v60, %v3366_v28  ;;  %v1960_v21 = vunpack.c.h.bf16 %v1856_v48  ;;  %v1857_v3 = vxor.u32 2147516416, %v7485_v58  ;;  %v8684_v26 = vunpack.c.l.bf16 %v7445_v49  ;;  %3998 = vmatmul.bf16.gmra.mxu2 %v3489_v34  ;;  %v1634_v60 = vpop.f32.mrf.mxu2  ;;  %v8691_v34 = vld [vmem:[#allocation39_spill] sm:$0xff] }
 0x22f   : > { %v8685_v41 = vunpack.c.h.bf16 %v7445_v49  ;;  %v2402_v59 = vunpack.c.h.bf16 %v2301_v16  ;;  %5020 = vrcp.f32 %v2707_v57  ;;  %v5019_v39 = vpop.eup %5018  ;;  %v2302_v19 = vpack.c.bf16 %v5015_v29, %v5013_v45  ;;  %v1723_v16 = vpop.f32.mrf.mxu3 }
 0x230   : > { %v7492_v30 = vadd.f32 1.0, %v8684_v26  ;;  %4087 = vmatmul.bf16.gmra.mxu3 %v3490_v38  ;;  %v2165_v13 = vmul.f32 1.442695, %v1959_v6  ;;  %v2167_v11 = vmul.f32 1.442695, %v1960_v21  ;;  %v2721_v12 = vunpack.c.h.bf16 %v2595_v27  ;;  %v1458_v26 = vpop.f32.mrf.mxu0 }
 0x231   : > { %v7496_v20 = vadd.f32 1.0, %v8685_v41  ;;  %v2303_v5 = vpack.c.bf16 %v5019_v39, %v5017_v54  ;;  %v1961_v42 = vunpack.c.l.bf16 %v1857_v3  ;;  %v1962_v28 = vunpack.c.h.bf16 %v1857_v3 }
 0x232   : > { %5022 = vrcp.f32 %v2708_v32  ;;  %v7498_v51 = vadd.f32 1.0, %v2401_v31  ;;  %v7502_v44 = vadd.f32 1.0, %v2402_v59  ;;  %v2722_v40 = vunpack.c.l.bf16 %v2595_v27  ;;  %v1547_v27 = vpop.f32.mrf.mxu1 }
 0x233   : > { %8686 = vst [vmem:[#allocation16_spill] sm:$0xff] %v7496_v20  ;;  %5024 = vpow2.f32 %v2165_v13  ;;  %v2169_v45 = vmul.f32 1.442695, %v1961_v42  ;;  %v2171_v48 = vmul.f32 1.442695, %v1962_v28  ;;  %v2594_v29 = vpack.c.bf16 %v8690_v55, %v8689_v50  ;;  %v8692_v28 = vld [vmem:[#allocation22_spill] sm:$0xff] }
 0x234   : > { %8687 = vst [vmem:[#allocation17_spill] sm:$0xff] %v7498_v51  ;;  %5026 = vpow2.f32 %v2167_v11  ;;  %v2596_v38 = vpack.c.bf16 %v7117_v14, %v8691_v34  ;;  %v2403_v32 = vunpack.c.l.bf16 %v2302_v19  ;;  %v2404_v54 = vunpack.c.h.bf16 %v2302_v19 }
 0x235   : > { %8688 = vst [vmem:[#allocation29_spill] sm:$0xff] %v7502_v44  ;;  %5028 = vrcp.f32 %v2721_v12  ;;  %v5021_v57 = vpop.eup %5020  ;;  %v2405_v31 = vunpack.c.l.bf16 %v2303_v5  ;;  %v2714_v21 = vunpack.c.h.bf16 %v2594_v29  ;;  %v2715_v3 = vunpack.c.l.bf16 %v2594_v29 }
 0x236   : > { %5030 = vpow2.f32 %v2169_v45  ;;  %v2710_v6 = vmul.f32 %v5021_v57, %v6660_v22  ;;  %v2406_v59 = vunpack.c.h.bf16 %v2303_v5  ;;  %v2728_v39 = vunpack.c.h.bf16 %v2596_v38  ;;  %v1636_v57 = vpop.f32.mrf.mxu2 }
 0x237   : > { %5032 = vpow2.f32 %v2171_v48  ;;  %v2729_v13 = vunpack.c.l.bf16 %v2596_v38  ;;  %v1635_v19 = vadd.f32 %v1634_v60, %v6629_v18  ;;  %v1724_v12 = vadd.f32 %v1723_v16, %v6635_v35  ;;  %v8699_v16 = vld [vmem:[#allocation25_spill] sm:$0xff] }
 0x238   : > { %v5023_v41 = vpop.eup %5022  ;;  %5034 = vrcp.f32 %v2722_v40  ;;  %v3119_v45 = vunpack.c.l.bf16 %v8692_v28  ;;  %v1459_v48 = vadd.f32 %v1458_v26, %v6568_v37  ;;  %v1548_v50 = vadd.f32 %v1547_v27, %v6584_v24 }
 0x239   : > { %v5025_v11 = vpop.eup %5024  ;;  %v2712_v14 = vmul.f32 %v5023_v41, %v6676_v0  ;;  %5036 = vrcp.f32 %v2714_v21  ;;  %v3120_v55 = vunpack.c.h.bf16 %v8692_v28  ;;  %v7516_v29 = vpack.c.bf16 %v1724_v12, %v1635_v19  ;;  %v1725_v41 = vpop.f32.mrf.mxu3 }
 0x23a   : > { %v5027_v42 = vpop.eup %5026  ;;  %5038 = vrcp.f32 %v2715_v3  ;;  %v7518_v38 = vadd.f32 1.0, %v2403_v32  ;;  %v7522_v3 = vadd.f32 1.0, %v2404_v54  ;;  %v7524_v26 = vadd.f32 1.0, %v2405_v31 }
 0x23b   : > { %v5029_v5 = vpop.eup %5028  ;;  %v2713_v40 = vpack.c.bf16 %v2710_v6, %v2712_v14  ;;  %5040 = vrcp.f32 %v2728_v39  ;;  %8693 = vst [vmem:[#allocation30_spill] sm:$0xff] %v7516_v29  ;;  %v7526_v6 = vadd.f32 1.0, %v2406_v59  ;;  %v1858_v19 = vxor.u32 2147516416, %v7516_v29 }
 0x23c   : > { %v5031_v34 = vpop.eup %5030  ;;  %8694 = vst [vmem:[#allocation37_spill] sm:$0xff] %v7518_v38  ;;  %5042 = vrcp.f32 %v2729_v13  ;;  %v2724_v27 = vmul.f32 %v5029_v5, %v6660_v22  ;;  %v7530_v12 = vpack.c.bf16 %v1548_v50, %v1459_v48  ;;  %v3121_v54 = vunpack.c.l.bf16 %v8699_v16 }
 0x23d   : > { %v5033_v21 = vpop.eup %5032  ;;  %8695 = vst [vmem:[#allocation38_spill] sm:$0xff] %v7522_v3  ;;  %v3243_v14 = vunpack.c.l.bf16 %v2713_v40  ;;  %v3244_v32 = vunpack.c.h.bf16 %v2713_v40  ;;  %v3122_v31 = vunpack.c.h.bf16 %v8699_v16  ;;  %v1637_v59 = vadd.f32 %v1636_v57, %v6629_v18  ;;  %v8700_v3 = vld [vmem:[#allocation20_spill] sm:$0xff] }
 0x23e   : > { %8696 = vst [vmem:[#allocation33_spill] sm:$0xff] %v7524_v26  ;;  %v5035_v39 = vpop.eup %5034  ;;  %v7536_v61 = vpack.c.bf16 %v5027_v42, %v5025_v11  ;;  %v7538_v5 = vpack.c.bf16 %v5033_v21, %v5031_v34  ;;  %v1726_v49 = vadd.f32 %v1725_v41, %v6635_v35  ;;  %v1964_v52 = vunpack.c.h.bf16 %v1858_v19 }
 0x23f   : > { %8697 = vst [vmem:[#allocation34_spill] sm:$0xff] %v7526_v6  ;;  %v5037_v28 = vpop.eup %5036  ;;  %v2726_v13 = vmul.f32 %v5035_v39, %v6676_v0  ;;  %v1963_v39 = vunpack.c.l.bf16 %v1858_v19  ;;  %v8701_v16 = vunpack.c.l.bf16 %v8700_v3  ;;  %v8702_v57 = vunpack.c.h.bf16 %v8700_v3 }
 0x240   : > { %8698 = vst [vmem:[#allocation39_spill] sm:$0xff] %v7530_v12  ;;  %v5039_v60 = vpop.eup %5038  ;;  %v2717_v40 = vmul.f32 %v5037_v28, %v6660_v22  ;;  %v1859_v34 = vxor.u32 2147516416, %v7530_v12 }
 0x241   : > { %v5041_v48 = vpop.eup %5040  ;;  %v2727_v50 = vpack.c.bf16 %v2724_v27, %v2726_v13  ;;  %v2719_v58 = vmul.f32 %v5039_v60, %v6676_v0  ;;  %v3371_v38 = vmul.f32 %v3243_v14, %v8701_v16  ;;  %v3372_v11 = vmul.f32 %v3244_v32, %v8702_v57  ;;  %v1550_v57 = vpop.f32.mrf.mxu1 }
 0x242   : > { %v5043_v63 = vpop.eup %5042  ;;  %v2731_v42 = vmul.f32 %v5041_v48, %v6660_v22  ;;  %v2173_v13 = vmul.f32 1.442695, %v1963_v39  ;;  %v2175_v60 = vmul.f32 1.442695, %v1964_v52  ;;  %v1965_v6 = vunpack.c.l.bf16 %v1859_v34  ;;  %v1461_v48 = vpop.f32.mrf.mxu0 }
 0x243   : > { %v3247_v21 = vunpack.c.l.bf16 %v2727_v50  ;;  %v3248_v28 = vunpack.c.h.bf16 %v2727_v50  ;;  %v2720_v41 = vpack.c.bf16 %v2717_v40, %v2719_v58  ;;  %v2733_v27 = vmul.f32 %v5043_v63, %v6676_v0  ;;  %v8703_v58 = vld [vmem:[#allocation21_spill] sm:$0xff] }
 0x244   : > { %v1966_v19 = vunpack.c.h.bf16 %v1859_v34  ;;  %5044 = vpow2.f32 %v2173_v13  ;;  %v2177_v3 = vmul.f32 1.442695, %v1965_v6  ;;  %v8704_v40 = vunpack.c.l.bf16 %v8703_v58 }
 0x245   : > { %v3375_v26 = vmul.f32 %v3247_v21, %v3119_v45  ;;  %v3376_v44 = vmul.f32 %v3248_v28, %v3120_v55  ;;  %v2734_v51 = vpack.c.bf16 %v2731_v42, %v2733_v27  ;;  %v3245_v14 = vunpack.c.l.bf16 %v2720_v41 }
 0x246   : > { %v3246_v16 = vunpack.c.h.bf16 %v2720_v41  ;;  %v2179_v32 = vmul.f32 1.442695, %v1966_v19  ;;  %v8705_v52 = vunpack.c.h.bf16 %v8703_v58  ;;  %5046 = vpow2.f32 %v2175_v60 }
 0x247   : > { %v3491_v12 = vpack.c.bf16 %v3375_v26, %v3371_v38  ;;  %v3492_v20 = vpack.c.bf16 %v3376_v44, %v3372_v11  ;;  %v3249_v50 = vunpack.c.l.bf16 %v2734_v51  ;;  %v3373_v63 = vmul.f32 %v3245_v14, %v8704_v40 }
 0x248   : > { %v3250_v39 = vunpack.c.h.bf16 %v2734_v51  ;;  %v3374_v34 = vmul.f32 %v3246_v16, %v8705_v52  ;;  %v7554_v45 = vpack.c.bf16 %v1726_v49, %v1637_v59  ;;  %v2407_v55 = vunpack.c.l.bf16 %v7536_v61 }
 0x249   : > { %3825 = vmatmul.bf16.gmra.mxu0 %v3491_v12  ;;  %3914 = vmatmul.bf16.gmra.mxu1 %v3492_v20  ;;  %v3377_v6 = vmul.f32 %v3249_v50, %v3121_v54  ;;  %v1462_v42 = vadd.f32 %v1461_v48, %v6568_v37  ;;  %v1551_v44 = vadd.f32 %v1550_v57, %v6584_v24  ;;  %5048 = vpow2.f32 %v2177_v3  ;;  %v8709_v48 = vld [vmem:[#allocation43_spill] sm:$0xff] }
 0x24a   : > { %8706 = vst [vmem:[#allocation22_spill] sm:$0xff] %v7554_v45  ;;  %v3378_v38 = vmul.f32 %v3250_v39, %v3122_v31  ;;  %v1860_v26 = vxor.u32 2147516416, %v7554_v45  ;;  %v2597_v51 = vpack.c.bf16 %v7124_v33, %v7119_v25  ;;  %5050 = vpow2.f32 %v2179_v32  ;;  %v5045_v20 = vpop.eup %5044  ;;  %v8708_v32 = vld [vmem:[#allocation42_spill] sm:$0xff] }
 0x24b   : > { %v3493_v11 = vpack.c.bf16 %v3377_v6, %v3373_v63  ;;  %v7562_v49 = vpack.c.bf16 %v1551_v44, %v1462_v42  ;;  %v2599_v12 = vpack.c.bf16 %v7189_v47, %v7187_v2  ;;  %v2408_v31 = vunpack.c.h.bf16 %v7536_v61  ;;  %v8710_v44 = vld [vmem:[#allocation32_spill] sm:$0xff] }
 0x24c   : > { %v3494_v54 = vpack.c.bf16 %v3378_v38, %v3374_v34  ;;  %v1967_v59 = vunpack.c.l.bf16 %v1860_v26  ;;  %v1968_v21 = vunpack.c.h.bf16 %v1860_v26  ;;  %v2735_v28 = vunpack.c.h.bf16 %v2597_v51  ;;  %v5047_v33 = vpop.eup %5046 }
 0x24d   : > { %8707 = vst [vmem:[#allocation25_spill] sm:$0xff] %v7562_v49  ;;  %v2409_v41 = vunpack.c.l.bf16 %v7538_v5  ;;  %4003 = vmatmul.bf16.gmra.mxu2 %v3493_v11  ;;  %v1861_v27 = vxor.u32 2147516416, %v7562_v49  ;;  %v2736_v25 = vunpack.c.l.bf16 %v2597_v51  ;;  %v2749_v19 = vunpack.c.h.bf16 %v2599_v12 }
 0x24e   : > { %4092 = vmatmul.bf16.gmra.mxu3 %v3494_v54  ;;  %v2181_v13 = vmul.f32 1.442695, %v1967_v59  ;;  %v2183_v60 = vmul.f32 1.442695, %v1968_v21  ;;  %5052 = vrcp.f32 %v2735_v28  ;;  %v2410_v47 = vunpack.c.h.bf16 %v7538_v5 }
 0x24f   : > { %v1969_v2 = vunpack.c.l.bf16 %v1861_v27  ;;  %v1970_v14 = vunpack.c.h.bf16 %v1861_v27  ;;  %5054 = vrcp.f32 %v2736_v25  ;;  %v5049_v16 = vpop.eup %5048  ;;  %v2598_v57 = vpack.c.bf16 %v8709_v48, %v8708_v32 }
 0x250   : > { %5056 = vpow2.f32 %v2181_v13  ;;  %v5051_v50 = vpop.eup %5050  ;;  %v7574_v58 = vadd.f32 1.0, %v2407_v55  ;;  %v2306_v40 = vpack.c.bf16 %v5047_v33, %v5045_v20  ;;  %v2750_v63 = vunpack.c.l.bf16 %v2599_v12  ;;  %v1639_v12 = vpop.f32.mrf.mxu2 }
 0x251   : > { %5058 = vpow2.f32 %v2183_v60  ;;  %v2185_v39 = vmul.f32 1.442695, %v1969_v2  ;;  %v2187_v5 = vmul.f32 1.442695, %v1970_v14  ;;  %v2600_v52 = vpack.c.bf16 %v7201_v36, %v7192_v9  ;;  %v1728_v20 = vpop.f32.mrf.mxu3  ;;  %v1463_v60 = vpop.f32.mrf.mxu0 }
 0x252   : > { %5060 = vrcp.f32 %v2749_v19  ;;  %v7578_v34 = vadd.f32 1.0, %v2408_v31  ;;  %v7580_v6 = vadd.f32 1.0, %v2409_v41  ;;  %v7582_v42 = vadd.f32 1.0, %v2410_v47  ;;  %v1552_v19 = vpop.f32.mrf.mxu1 }
 0x253   : > { %v2307_v55 = vpack.c.bf16 %v5051_v50, %v5049_v16  ;;  %5062 = vpow2.f32 %v2185_v39  ;;  %v2742_v51 = vunpack.c.h.bf16 %v2598_v57  ;;  %v2743_v11 = vunpack.c.l.bf16 %v2598_v57 }
 0x254   : > { %v5053_v26 = vpop.eup %5052  ;;  %5064 = vpow2.f32 %v2187_v5  ;;  %v2756_v36 = vunpack.c.h.bf16 %v2600_v52  ;;  %v2411_v28 = vunpack.c.l.bf16 %v2306_v40  ;;  %v2412_v31 = vunpack.c.h.bf16 %v2306_v40 }
 0x255   : > { %v5055_v54 = vpop.eup %5054  ;;  %v2738_v9 = vmul.f32 %v5053_v26, %v6660_v22  ;;  %5066 = vrcp.f32 %v2750_v63  ;;  %v2757_v25 = vunpack.c.l.bf16 %v2600_v52  ;;  %v1640_v33 = vadd.f32 %v1639_v12, %v6629_v18 }
 0x256   : > { %v5057_v21 = vpop.eup %5056  ;;  %v2740_v41 = vmul.f32 %v5055_v54, %v6676_v0  ;;  %5068 = vrcp.f32 %v2742_v51  ;;  %v1729_v13 = vadd.f32 %v1728_v20, %v6635_v35  ;;  %v2413_v2 = vunpack.c.l.bf16 %v2307_v55 }
 0x257   : > { %v5059_v27 = vpop.eup %5058  ;;  %v2414_v14 = vunpack.c.h.bf16 %v2307_v55  ;;  %5070 = vrcp.f32 %v2743_v11  ;;  %v3128_v48 = vunpack.c.h.bf16 %v8710_v44  ;;  %v7594_v40 = vadd.f32 1.0, %v2411_v28 }
 0x258   : > { %v5061_v47 = vpop.eup %5060  ;;  %v2741_v16 = vpack.c.bf16 %v2738_v9, %v2740_v41  ;;  %5072 = vrcp.f32 %v2756_v36  ;;  %v7592_v57 = vpack.c.bf16 %v1729_v13, %v1640_v33  ;;  %v7596_v63 = vpack.c.bf16 %v5059_v27, %v5057_v21  ;;  %v8712_v9 = vld [vmem:[#allocation35_spill] sm:$0xff] }
 0x259   : > { %v5063_v50 = vpop.eup %5062  ;;  %v1464_v39 = vadd.f32 %v1463_v60, %v6568_v37  ;;  %v1553_v5 = vadd.f32 %v1552_v19, %v6584_v24  ;;  %v7600_v26 = vadd.f32 1.0, %v2412_v31  ;;  %v2752_v55 = vmul.f32 %v5061_v47, %v6660_v22  ;;  %v1730_v49 = vpop.f32.mrf.mxu3 }
 0x25a   : > { %8711 = vst [vmem:[#allocation20_spill] sm:$0xff] %v7592_v57  ;;  %v5065_v52 = vpop.eup %5064  ;;  %5074 = vrcp.f32 %v2757_v25  ;;  %v1862_v51 = vxor.u32 2147516416, %v7592_v57  ;;  %v7604_v12 = vadd.f32 1.0, %v2413_v2  ;;  %v7606_v20 = vadd.f32 1.0, %v2414_v14  ;;  %v8733_v57 = vld [vmem:[#allocation36_spill] sm:$0xff] }
 0x25b   : > { %v5067_v11 = vpop.eup %5066  ;;  %v3251_v54 = vunpack.c.l.bf16 %v2741_v16  ;;  %v3129_v36 = vunpack.c.l.bf16 %v8712_v9  ;;  %v3252_v41 = vunpack.c.h.bf16 %v2741_v16  ;;  %v3130_v60 = vunpack.c.h.bf16 %v8712_v9 }
 0x25c   : > { %v5069_v21 = vpop.eup %5068  ;;  %v2754_v28 = vmul.f32 %v5067_v11, %v6676_v0  ;;  %v1971_v27 = vunpack.c.l.bf16 %v1862_v51  ;;  %v1972_v31 = vunpack.c.h.bf16 %v1862_v51  ;;  %v7613_v19 = vpack.c.bf16 %v1553_v5, %v1464_v39  ;;  %v8714_v11 = vld [vmem:[#allocation26_spill] sm:$0xff] }
 0x25d   : > { %v5071_v33 = vpop.eup %5070  ;;  %v2745_v25 = vmul.f32 %v5069_v21, %v6660_v22  ;;  %v7615_v2 = vpack.c.bf16 %v5065_v52, %v5063_v50  ;;  %v8715_v16 = vunpack.c.l.bf16 %v8714_v11  ;;  %v8716_v39 = vunpack.c.h.bf16 %v8714_v11  ;;  %v1641_v52 = vpop.f32.mrf.mxu2 }
 0x25e   : > { %8713 = vst [vmem:[#allocation21_spill] sm:$0xff] %v7613_v19  ;;  %v5073_v47 = vpop.eup %5072  ;;  %v2755_v14 = vpack.c.bf16 %v2752_v55, %v2754_v28  ;;  %v2747_v32 = vmul.f32 %v5071_v33, %v6676_v0  ;;  %v2189_v59 = vmul.f32 1.442695, %v1971_v27  ;;  %v2191_v61 = vmul.f32 1.442695, %v1972_v31 }
 0x25f   : > { %v3379_v3 = vmul.f32 %v3251_v54, %v8715_v16  ;;  %v2759_v51 = vmul.f32 %v5073_v47, %v6660_v22  ;;  %v1863_v13 = vxor.u32 2147516416, %v7613_v19  ;;  %v3380_v5 = vmul.f32 %v3252_v41, %v8716_v39  ;;  %v1466_v41 = vpop.f32.mrf.mxu0 }
 0x260   : > { %v5075_v21 = vpop.eup %5074  ;;  %v3255_v38 = vunpack.c.l.bf16 %v2755_v14  ;;  %v3256_v9 = vunpack.c.h.bf16 %v2755_v14  ;;  %v2748_v50 = vpack.c.bf16 %v2745_v25, %v2747_v32  ;;  %5076 = vpow2.f32 %v2189_v59  ;;  %v1555_v32 = vpop.f32.mrf.mxu1 }
 0x261   : > { %v2761_v55 = vmul.f32 %v5075_v21, %v6676_v0  ;;  %v1973_v28 = vunpack.c.l.bf16 %v1863_v13  ;;  %v1974_v27 = vunpack.c.h.bf16 %v1863_v13  ;;  %v8717_v54 = vunpack.c.l.bf16 %v8710_v44  ;;  %v8718_v21 = vld [vmem:[#allocation31_spill] sm:$0xff] }
 0x262   : > { %v3384_v47 = vmul.f32 %v3256_v9, %v3128_v48  ;;  %v3253_v31 = vunpack.c.l.bf16 %v2748_v50  ;;  %v3254_v16 = vunpack.c.h.bf16 %v2748_v50  ;;  %5078 = vpow2.f32 %v2191_v61 }
 0x263   : > { %v3383_v33 = vmul.f32 %v3255_v38, %v8717_v54  ;;  %v2762_v19 = vpack.c.bf16 %v2759_v51, %v2761_v55  ;;  %v2193_v14 = vmul.f32 1.442695, %v1973_v28  ;;  %v1642_v11 = vadd.f32 %v1641_v52, %v6629_v18 }
 0x264   : > { %v3496_v39 = vpack.c.bf16 %v3384_v47, %v3380_v5  ;;  %v8719_v59 = vunpack.c.l.bf16 %v8718_v21  ;;  %v2195_v13 = vmul.f32 1.442695, %v1974_v27  ;;  %v8720_v38 = vunpack.c.h.bf16 %v8718_v21 }
 0x265   : > { %v3495_v25 = vpack.c.bf16 %v3383_v33, %v3379_v3  ;;  %v3257_v45 = vunpack.c.l.bf16 %v2762_v19  ;;  %v3258_v44 = vunpack.c.h.bf16 %v2762_v19  ;;  %v1731_v9 = vadd.f32 %v1730_v49, %v6635_v35 }
 0x266   : > { %v3381_v29 = vmul.f32 %v3253_v31, %v8719_v59  ;;  %v3382_v48 = vmul.f32 %v3254_v16, %v8720_v38  ;;  %3919 = vmatmul.bf16.gmra.mxu1 %v3496_v39  ;;  %5080 = vpow2.f32 %v2193_v14  ;;  %v1467_v61 = vadd.f32 %v1466_v41, %v6568_v37  ;;  %v5077_v5 = vpop.eup %5076 }
 0x267   : > { %3830 = vmatmul.bf16.gmra.mxu0 %v3495_v25  ;;  %v1556_v51 = vadd.f32 %v1555_v32, %v6584_v24  ;;  %v2601_v3 = vpack.c.bf16 %v7205_v46, %v7203_v53  ;;  %v3385_v50 = vmul.f32 %v3257_v45, %v3129_v36  ;;  %v3386_v52 = vmul.f32 %v3258_v44, %v3130_v60 }
 0x268   : > { %v7637_v55 = vpack.c.bf16 %v1731_v9, %v1642_v11  ;;  %v2603_v19 = vpack.c.bf16 %v7248_v15, %v7238_v10  ;;  %v2416_v49 = vunpack.c.h.bf16 %v7596_v63  ;;  %5082 = vpow2.f32 %v2195_v13  ;;  %v5079_v54 = vpop.eup %5078  ;;  %v1644_v13 = vpop.f32.mrf.mxu2 }
 0x269   : > { %v7642_v28 = vpack.c.bf16 %v1556_v51, %v1467_v61  ;;  %v2763_v27 = vunpack.c.h.bf16 %v2601_v3  ;;  %v3497_v33 = vpack.c.bf16 %v3385_v50, %v3381_v29  ;;  %v3498_v47 = vpack.c.bf16 %v3386_v52, %v3382_v48  ;;  %v1733_v9 = vpop.f32.mrf.mxu3  ;;  %v8725_v50 = vld [vmem:[#allocation51_spill] sm:$0xff] }
 0x26a   : > { %8721 = vst [vmem:[#allocation42_spill] sm:$0xff] %v7637_v55  ;;  %v1864_v31 = vxor.u32 2147516416, %v7637_v55  ;;  %v2764_v53 = vunpack.c.l.bf16 %v2601_v3  ;;  %v2417_v46 = vunpack.c.l.bf16 %v7615_v2  ;;  %v2777_v60 = vunpack.c.h.bf16 %v2603_v19 }
 0x26b   : > { %8722 = vst [vmem:[#allocation43_spill] sm:$0xff] %v7642_v28  ;;  %v1865_v36 = vxor.u32 2147516416, %v7642_v28  ;;  %v2418_v10 = vunpack.c.h.bf16 %v7615_v2  ;;  %4008 = vmatmul.bf16.gmra.mxu2 %v3497_v33  ;;  %4097 = vmatmul.bf16.gmra.mxu3 %v3498_v47  ;;  %5084 = vrcp.f32 %v2763_v27  ;;  %v2310_v29 = vpack.c.bf16 %v5079_v54, %v5077_v5  ;;  %v8724_v5 = vld [vmem:[#allocation50_spill] sm:$0xff] }
 0x26c   : > { %v1975_v15 = vunpack.c.l.bf16 %v1864_v31  ;;  %v1976_v16 = vunpack.c.h.bf16 %v1864_v31  ;;  %v5081_v14 = vpop.eup %5080  ;;  %v8723_v25 = vunpack.c.l.bf16 %v7596_v63  ;;  %5086 = vrcp.f32 %v2764_v53 }
 0x26d   : > { %v1977_v41 = vunpack.c.l.bf16 %v1865_v36  ;;  %v1978_v32 = vunpack.c.h.bf16 %v1865_v36  ;;  %v7654_v44 = vadd.f32 1.0, %v2416_v49  ;;  %5088 = vrcp.f32 %v2777_v60 }
 0x26e   : > { %v7652_v39 = vadd.f32 1.0, %v8723_v25  ;;  %v2197_v21 = vmul.f32 1.442695, %v1975_v15  ;;  %v2199_v59 = vmul.f32 1.442695, %v1976_v16  ;;  %v5083_v2 = vpop.eup %5082  ;;  %v7656_v61 = vadd.f32 1.0, %v2417_v46 }
 0x26f   : > { %v2201_v38 = vmul.f32 1.442695, %v1977_v41  ;;  %v2203_v48 = vmul.f32 1.442695, %v1978_v32  ;;  %v7658_v51 = vadd.f32 1.0, %v2418_v10  ;;  %v2778_v3 = vunpack.c.l.bf16 %v2603_v19 }
 0x270   : > { %5090 = vpow2.f32 %v2197_v21  ;;  %v2419_v63 = vunpack.c.l.bf16 %v2310_v29  ;;  %v2602_v52 = vpack.c.bf16 %v8725_v50, %v8724_v5  ;;  %v2604_v27 = vpack.c.bf16 %v7256_v17, %v7252_v62 }
 0x271   : > { %5092 = vpow2.f32 %v2199_v59  ;;  %v5085_v49 = vpop.eup %5084  ;;  %v2420_v54 = vunpack.c.h.bf16 %v2310_v29  ;;  %v2311_v33 = vpack.c.bf16 %v5083_v2, %v5081_v14  ;;  %v1645_v17 = vadd.f32 %v1644_v13, %v6629_v18  ;;  %v1468_v14 = vpop.f32.mrf.mxu0 }
 0x272   : > { %5094 = vpow2.f32 %v2201_v38  ;;  %v2766_v31 = vmul.f32 %v5085_v49, %v6660_v22  ;;  %v2770_v53 = vunpack.c.h.bf16 %v2602_v52  ;;  %v2771_v46 = vunpack.c.l.bf16 %v2602_v52  ;;  %v5087_v19 = vpop.eup %5086  ;;  %v1557_v29 = vpop.f32.mrf.mxu1 }
 0x273   : > { %5096 = vpow2.f32 %v2203_v48  ;;  %v2784_v60 = vunpack.c.h.bf16 %v2604_v27  ;;  %v2785_v10 = vunpack.c.l.bf16 %v2604_v27  ;;  %v5089_v15 = vpop.eup %5088  ;;  %v2768_v62 = vmul.f32 %v5087_v19, %v6676_v0  ;;  %v8729_v27 = vld [vmem:[#allocation41_spill] sm:$0xff] }
 0x274   : > { %5098 = vrcp.f32 %v2778_v3  ;;  %v1734_v16 = vadd.f32 %v1733_v9, %v6635_v35  ;;  %v7670_v32 = vadd.f32 1.0, %v2419_v63  ;;  %v2421_v25 = vunpack.c.l.bf16 %v2311_v33  ;;  %v1646_v63 = vpop.f32.mrf.mxu2 }
 0x275   : > { %5100 = vrcp.f32 %v2770_v53  ;;  %v2422_v21 = vunpack.c.h.bf16 %v2311_v33  ;;  %v7672_v2 = vadd.f32 1.0, %v2420_v54  ;;  %v2769_v38 = vpack.c.bf16 %v2766_v31, %v2768_v62  ;;  %v1735_v31 = vpop.f32.mrf.mxu3 }
 0x276   : > { %v5091_v41 = vpop.eup %5090  ;;  %8726 = vst [vmem:[#allocation32_spill] sm:$0xff] %v7670_v32  ;;  %5102 = vrcp.f32 %v2771_v46  ;;  %v7674_v48 = vpack.c.bf16 %v1734_v16, %v1645_v17  ;;  %v1469_v13 = vadd.f32 %v1468_v14, %v6568_v37  ;;  %v1558_v9 = vadd.f32 %v1557_v29, %v6584_v24 }
 0x277   : > { %v5093_v59 = vpop.eup %5092  ;;  %8727 = vst [vmem:[#allocation35_spill] sm:$0xff] %v7672_v2  ;;  %5104 = vrcp.f32 %v2784_v60  ;;  %v2780_v52 = vmul.f32 %v5089_v15, %v6660_v22  ;;  %v3135_v49 = vunpack.c.l.bf16 %v8729_v27  ;;  %v3136_v54 = vunpack.c.h.bf16 %v8729_v27 }
 0x278   : > { %8728 = vst [vmem:[#allocation26_spill] sm:$0xff] %v7674_v48  ;;  %v5095_v3 = vpop.eup %5094  ;;  %v7676_v5 = vpack.c.bf16 %v5093_v59, %v5091_v41  ;;  %5106 = vrcp.f32 %v2785_v10  ;;  %v1866_v33 = vxor.u32 2147516416, %v7674_v48  ;;  %v7684_v46 = vadd.f32 1.0, %v2421_v25  ;;  %v8731_v10 = vld [vmem:[#allocation44_spill] sm:$0xff] }
 0x279   : > { %v5097_v50 = vpop.eup %5096  ;;  %v7686_v19 = vadd.f32 1.0, %v2422_v21  ;;  %v3259_v60 = vunpack.c.l.bf16 %v2769_v38  ;;  %v3137_v62 = vunpack.c.l.bf16 %v8731_v10  ;;  %v3138_v15 = vunpack.c.h.bf16 %v8731_v10 }
 0x27a   : > { %v5099_v53 = vpop.eup %5098  ;;  %v1979_v14 = vunpack.c.l.bf16 %v1866_v33  ;;  %v1647_v29 = vadd.f32 %v1646_v63, %v6629_v18  ;;  %v3260_v27 = vunpack.c.h.bf16 %v2769_v38  ;;  %v7693_v36 = vpack.c.bf16 %v1558_v9, %v1469_v13 }
 0x27b   : > { %8730 = vst [vmem:[#allocation31_spill] sm:$0xff] %v7686_v19  ;;  %v5101_v17 = vpop.eup %5100  ;;  %v2782_v16 = vmul.f32 %v5099_v53, %v6676_v0  ;;  %v1736_v25 = vadd.f32 %v1735_v31, %v6635_v35  ;;  %v1980_v53 = vunpack.c.h.bf16 %v1866_v33  ;;  %v7698_v10 = vpack.c.bf16 %v5097_v50, %v5095_v3 }
 0x27c   : > { %v5103_v41 = vpop.eup %5102  ;;  %8732 = vst [vmem:[#allocation50_spill] sm:$0xff] %v7693_v36  ;;  %v2773_v11 = vmul.f32 %v5101_v17, %v6660_v22  ;;  %v8734_v63 = vunpack.c.l.bf16 %v8733_v57  ;;  %v2205_v38 = vmul.f32 1.442695, %v1979_v14  ;;  %v1867_v33 = vxor.u32 2147516416, %v7693_v36 }
 0x27d   : > { %v5105_v21 = vpop.eup %5104  ;;  %v2783_v47 = vpack.c.bf16 %v2780_v52, %v2782_v16  ;;  %v2775_v45 = vmul.f32 %v5103_v41, %v6676_v0  ;;  %v8735_v52 = vunpack.c.h.bf16 %v8733_v57  ;;  %v2207_v16 = vmul.f32 1.442695, %v1980_v53  ;;  %v8737_v57 = vld [vmem:[#allocation40_spill] sm:$0xff] }
 0x27e   : > { %v5107_v28 = vpop.eup %5106  ;;  %v3387_v55 = vmul.f32 %v3259_v60, %v8734_v63  ;;  %v2787_v59 = vmul.f32 %v5105_v21, %v6660_v22  ;;  %v7707_v41 = vpack.c.bf16 %v1736_v25, %v1647_v29  ;;  %5108 = vpow2.f32 %v2205_v38 }
 0x27f   : > { %v3263_v13 = vunpack.c.l.bf16 %v2783_v47  ;;  %v3264_v9 = vunpack.c.h.bf16 %v2783_v47  ;;  %v2776_v2 = vpack.c.bf16 %v2773_v11, %v2775_v45  ;;  %v2789_v31 = vmul.f32 %v5107_v28, %v6676_v0  ;;  %v1471_v47 = vpop.f32.mrf.mxu0  ;;  %v1560_v45 = vpop.f32.mrf.mxu1 }
 0x280   : > { %v3388_v17 = vmul.f32 %v3260_v27, %v8735_v52  ;;  %8736 = vst [vmem:[#allocation51_spill] sm:$0xff] %v7707_v41  ;;  %v1981_v14 = vunpack.c.l.bf16 %v1867_v33  ;;  %v1982_v21 = vunpack.c.h.bf16 %v1867_v33  ;;  %5110 = vpow2.f32 %v2207_v16 }
 0x281   : > { %v3391_v3 = vmul.f32 %v3263_v13, %v3135_v49  ;;  %v3392_v50 = vmul.f32 %v3264_v9, %v3136_v54  ;;  %v2790_v32 = vpack.c.bf16 %v2787_v59, %v2789_v31  ;;  %v3261_v60 = vunpack.c.l.bf16 %v2776_v2  ;;  %v8740_v9 = vld [vmem:[#allocation53_spill] sm:$0xff]  ;;  %v8741_v31 = vld [vmem:[#allocation55_spill] sm:$0xff] }
 0x282   : > { %v3262_v63 = vunpack.c.h.bf16 %v2776_v2  ;;  %v8738_v27 = vunpack.c.l.bf16 %v8737_v57  ;;  %v2209_v29 = vmul.f32 1.442695, %v1981_v14  ;;  %v2211_v25 = vmul.f32 1.442695, %v1982_v21 }
 0x283   : > { %v3499_v11 = vpack.c.bf16 %v3391_v3, %v3387_v55  ;;  %v3500_v28 = vpack.c.bf16 %v3392_v50, %v3388_v17  ;;  %v3265_v19 = vunpack.c.l.bf16 %v2790_v32  ;;  %v3266_v52 = vunpack.c.h.bf16 %v2790_v32 }
 0x284   : > { %v3389_v53 = vmul.f32 %v3261_v60, %v8738_v27  ;;  %v1868_v2 = vxor.u32 2147516416, %v7707_v41  ;;  %v1472_v54 = vadd.f32 %v1471_v47, %v6568_v37  ;;  %v1561_v59 = vadd.f32 %v1560_v45, %v6584_v24  ;;  %v5109_v3 = vpop.eup %5108 }
 0x285   : > { %3835 = vmatmul.bf16.gmra.mxu0 %v3499_v11  ;;  %3924 = vmatmul.bf16.gmra.mxu1 %v3500_v28  ;;  %v3393_v49 = vmul.f32 %v3265_v19, %v3137_v62  ;;  %v8739_v55 = vunpack.c.h.bf16 %v8737_v57  ;;  %v3394_v13 = vmul.f32 %v3266_v52, %v3138_v15  ;;  %v2605_v17 = vpack.c.bf16 %v8741_v31, %v8740_v9  ;;  %v8746_v31 = vld [vmem:[#allocation57_spill] sm:$0xff] }
 0x286   : > { %v2607_v32 = vpack.c.bf16 %v7304_v4, %v7300_v56  ;;  %v2424_v16 = vunpack.c.h.bf16 %v7676_v5  ;;  %v1983_v19 = vunpack.c.l.bf16 %v1868_v2  ;;  %v1984_v62 = vunpack.c.h.bf16 %v1868_v2  ;;  %v5111_v21 = vpop.eup %5110 }
 0x287   : > { %v3390_v38 = vmul.f32 %v3262_v63, %v8739_v55  ;;  %v3501_v33 = vpack.c.bf16 %v3393_v49, %v3389_v53  ;;  %5112 = vpow2.f32 %v2209_v29  ;;  %v7721_v60 = vpack.c.bf16 %v1561_v59, %v1472_v54  ;;  %v1649_v54 = vpop.f32.mrf.mxu2 }
 0x288   : > { %v2791_v14 = vunpack.c.h.bf16 %v2605_v17  ;;  %5114 = vpow2.f32 %v2211_v25  ;;  %v2213_v15 = vmul.f32 1.442695, %v1983_v19  ;;  %v2215_v63 = vmul.f32 1.442695, %v1984_v62 }
 0x289   : > { %v3502_v50 = vpack.c.bf16 %v3394_v13, %v3390_v38  ;;  %8742 = vst [vmem:[#allocation41_spill] sm:$0xff] %v7721_v60  ;;  %4013 = vmatmul.bf16.gmra.mxu2 %v3501_v33  ;;  %v2792_v47 = vunpack.c.l.bf16 %v2605_v17  ;;  %v2425_v45 = vunpack.c.l.bf16 %v7698_v10  ;;  %v1869_v56 = vxor.u32 2147516416, %v7721_v60 }
 0x28a   : > { %5116 = vrcp.f32 %v2791_v14  ;;  %v2805_v4 = vunpack.c.h.bf16 %v2607_v32  ;;  %v2426_v11 = vunpack.c.h.bf16 %v7698_v10  ;;  %v2806_v57 = vunpack.c.l.bf16 %v2607_v32  ;;  %v8748_v32 = vld [vmem:[#allocation63_spill] sm:$0xff]  ;;  %v1738_v14 = vpop.f32.mrf.mxu3 }
 0x28b   : > { %4102 = vmatmul.bf16.gmra.mxu3 %v3502_v50  ;;  %5118 = vpow2.f32 %v2213_v15  ;;  %v2314_v27 = vpack.c.bf16 %v5111_v21, %v5109_v3  ;;  %v1985_v53 = vunpack.c.l.bf16 %v1869_v56  ;;  %v1986_v52 = vunpack.c.h.bf16 %v1869_v56  ;;  %v8749_v15 = vld [vmem:[#allocation47_spill] sm:$0xff]  ;;  %v1473_v56 = vpop.f32.mrf.mxu0 }
 0x28c   : > { %5120 = vpow2.f32 %v2215_v63  ;;  %v8743_v29 = vunpack.c.l.bf16 %v7676_v5  ;;  %v7731_v49 = vadd.f32 1.0, %v2424_v16  ;;  %v7734_v10 = vadd.f32 1.0, %v2425_v45  ;;  %v8747_v5 = vld [vmem:[#allocation59_spill] sm:$0xff] }
 0x28d   : > { %5122 = vrcp.f32 %v2792_v47  ;;  %v5113_v59 = vpop.eup %5112  ;;  %v2217_v55 = vmul.f32 1.442695, %v1985_v53  ;;  %v2219_v38 = vmul.f32 1.442695, %v1986_v52  ;;  %v7736_v9 = vadd.f32 1.0, %v2426_v11 }
 0x28e   : > { %v7729_v25 = vadd.f32 1.0, %v8743_v29  ;;  %8744 = vst [vmem:[#allocation44_spill] sm:$0xff] %v7734_v10  ;;  %5124 = vrcp.f32 %v2805_v4  ;;  %v5115_v13 = vpop.eup %5114  ;;  %v2606_v17 = vpack.c.bf16 %v8747_v5, %v8746_v31  ;;  %v2608_v16 = vpack.c.bf16 %v8748_v32, %v7306_v43  ;;  %v1562_v4 = vpop.f32.mrf.mxu1 }
 0x28f   : > { %8745 = vst [vmem:[#allocation36_spill] sm:$0xff] %v7736_v9  ;;  %5126 = vrcp.f32 %v2806_v57  ;;  %v2427_v19 = vunpack.c.l.bf16 %v2314_v27  ;;  %v2428_v62 = vunpack.c.h.bf16 %v2314_v27  ;;  %v3143_v63 = vunpack.c.l.bf16 %v8749_v15 }
 0x290   : > { %v5117_v33 = vpop.eup %5116  ;;  %5128 = vpow2.f32 %v2217_v55  ;;  %v2798_v47 = vunpack.c.h.bf16 %v2606_v17  ;;  %v2799_v45 = vunpack.c.l.bf16 %v2606_v17  ;;  %v2812_v57 = vunpack.c.h.bf16 %v2608_v16 }
 0x291   : > { %v5119_v21 = vpop.eup %5118  ;;  %5130 = vpow2.f32 %v2219_v38  ;;  %v2794_v43 = vmul.f32 %v5117_v33, %v6660_v22  ;;  %v2813_v53 = vunpack.c.l.bf16 %v2608_v16  ;;  %v7746_v52 = vpack.c.bf16 %v5115_v13, %v5113_v59 }
 0x292   : > { %v5121_v11 = vpop.eup %5120  ;;  %5132 = vrcp.f32 %v2798_v47  ;;  %v1650_v29 = vadd.f32 %v1649_v54, %v6629_v18  ;;  %v1739_v55 = vadd.f32 %v1738_v14, %v6635_v35  ;;  %v1474_v17 = vadd.f32 %v1473_v56, %v6568_v37 }
 0x293   : > { %v5123_v27 = vpop.eup %5122  ;;  %5134 = vrcp.f32 %v2799_v45  ;;  %v1563_v38 = vadd.f32 %v1562_v4, %v6584_v24  ;;  %v7753_v33 = vadd.f32 1.0, %v2427_v19  ;;  %v7755_v16 = vpack.c.bf16 %v5121_v11, %v5119_v21  ;;  %v8753_v4 = vld [vmem:[#allocation48_spill] sm:$0xff]  ;;  %v1651_v21 = vpop.f32.mrf.mxu2 }
 0x294   : > { %v5125_v31 = vpop.eup %5124  ;;  %v2796_v5 = vmul.f32 %v5123_v27, %v6676_v0  ;;  %5136 = vrcp.f32 %v2812_v57  ;;  %v7759_v14 = vpack.c.bf16 %v1739_v55, %v1650_v29  ;;  %v7761_v45 = vadd.f32 1.0, %v2428_v62 }
 0x295   : > { %v5127_v32 = vpop.eup %5126  ;;  %8750 = vst [vmem:[#allocation40_spill] sm:$0xff] %v7753_v33  ;;  %v2808_v59 = vmul.f32 %v5125_v31, %v6660_v22  ;;  %5138 = vrcp.f32 %v2813_v53  ;;  %v3144_v56 = vunpack.c.h.bf16 %v8749_v15  ;;  %v3145_v27 = vunpack.c.l.bf16 %v8753_v4 }
 0x296   : > { %v2797_v13 = vpack.c.bf16 %v2794_v43, %v2796_v5  ;;  %v2810_v54 = vmul.f32 %v5127_v32, %v6676_v0  ;;  %8751 = vst [vmem:[#allocation53_spill] sm:$0xff] %v7759_v14  ;;  %v5129_v47 = vpop.eup %5128  ;;  %v7765_v19 = vpack.c.bf16 %v1563_v38, %v1474_v17  ;;  %v3146_v62 = vunpack.c.h.bf16 %v8753_v4  ;;  %v8755_v4 = vld [vmem:[#allocation45_spill] sm:$0xff] }
 0x297   : > { %8752 = vst [vmem:[#allocation55_spill] sm:$0xff] %v7761_v45  ;;  %v5131_v11 = vpop.eup %5130  ;;  %v1870_v15 = vxor.u32 2147516416, %v7759_v14  ;;  %v1652_v3 = vadd.f32 %v1651_v21, %v6629_v18  ;;  %v8756_v53 = vunpack.c.l.bf16 %v8755_v4  ;;  %v8757_v17 = vunpack.c.h.bf16 %v8755_v4 }
 0x298   : > { %8754 = vst [vmem:[#allocation57_spill] sm:$0xff] %v7765_v19  ;;  %v2811_v57 = vpack.c.bf16 %v2808_v59, %v2810_v54  ;;  %v3267_v43 = vunpack.c.l.bf16 %v2797_v13  ;;  %v3268_v5 = vunpack.c.h.bf16 %v2797_v13  ;;  %v5133_v32 = vpop.eup %5132  ;;  %v1871_v50 = vxor.u32 2147516416, %v7765_v19 }
 0x299   : > { %v5135_v55 = vpop.eup %5134  ;;  %v7775_v54 = vpack.c.bf16 %v5131_v11, %v5129_v47  ;;  %v2801_v2 = vmul.f32 %v5133_v32, %v6660_v22  ;;  %v1987_v11 = vunpack.c.l.bf16 %v1870_v15  ;;  %v1988_v32 = vunpack.c.h.bf16 %v1870_v15 }
 0x29a   : > { %v3271_v38 = vunpack.c.l.bf16 %v2811_v57  ;;  %v5137_v59 = vpop.eup %5136  ;;  %v3272_v13 = vunpack.c.h.bf16 %v2811_v57  ;;  %v2803_v28 = vmul.f32 %v5135_v55, %v6676_v0  ;;  %v3395_v31 = vmul.f32 %v3267_v43, %v8756_v53  ;;  %v1740_v57 = vpop.f32.mrf.mxu3 }
 0x29b   : > { %v5139_v29 = vpop.eup %5138  ;;  %v3396_v48 = vmul.f32 %v3268_v5, %v8757_v17  ;;  %v2815_v19 = vmul.f32 %v5137_v59, %v6660_v22  ;;  %v1989_v45 = vunpack.c.l.bf16 %v1871_v50  ;;  %v1990_v55 = vunpack.c.h.bf16 %v1871_v50 }
 0x29c   : > { %v3399_v60 = vmul.f32 %v3271_v38, %v3143_v63  ;;  %v3400_v41 = vmul.f32 %v3272_v13, %v3144_v56  ;;  %v2804_v21 = vpack.c.bf16 %v2801_v2, %v2803_v28  ;;  %v2817_v47 = vmul.f32 %v5139_v29, %v6676_v0  ;;  %v1476_v63 = vpop.f32.mrf.mxu0  ;;  %v1565_v28 = vpop.f32.mrf.mxu1  ;;  %v8758_v29 = vld [vmem:[#allocation46_spill] sm:$0xff]  ;;  %v8762_v13 = vld [vmem:[#allocation64_spill] sm:$0xff] }
 0x29d   : > { %v2221_v53 = vmul.f32 1.442695, %v1987_v11  ;;  %v2223_v5 = vmul.f32 1.442695, %v1988_v32  ;;  %v2225_v17 = vmul.f32 1.442695, %v1989_v45  ;;  %v1741_v56 = vadd.f32 %v1740_v57, %v6635_v35 }
 0x29e   : > { %v3503_v36 = vpack.c.bf16 %v3399_v60, %v3395_v31  ;;  %v3504_v33 = vpack.c.bf16 %v3400_v41, %v3396_v48  ;;  %v2818_v9 = vpack.c.bf16 %v2815_v19, %v2817_v47  ;;  %v3269_v10 = vunpack.c.l.bf16 %v2804_v21 }
 0x29f   : > { %v3270_v43 = vunpack.c.h.bf16 %v2804_v21  ;;  %v8759_v38 = vunpack.c.l.bf16 %v8758_v29  ;;  %v8760_v50 = vunpack.c.h.bf16 %v8758_v29  ;;  %5140 = vpow2.f32 %v2221_v53 }
 0x2a0   : > { %3840 = vmatmul.bf16.gmra.mxu0 %v3503_v36  ;;  %3929 = vmatmul.bf16.gmra.mxu1 %v3504_v33  ;;  %v3273_v2 = vunpack.c.l.bf16 %v2818_v9  ;;  %v3274_v31 = vunpack.c.h.bf16 %v2818_v9  ;;  %v2227_v41 = vmul.f32 1.442695, %v1990_v55  ;;  %v7790_v19 = vpack.c.bf16 %v1741_v56, %v1652_v3 }
 0x2a1   : > { %v3397_v60 = vmul.f32 %v3269_v10, %v8759_v38  ;;  %v3398_v48 = vmul.f32 %v3270_v43, %v8760_v50  ;;  %v1477_v36 = vadd.f32 %v1476_v63, %v6568_v37  ;;  %5142 = vpow2.f32 %v2223_v5  ;;  %v8763_v10 = vld [vmem:[#allocation65_spill] sm:$0xff] }
 0x2a2   : > { %8761 = vst [vmem:[#allocation59_spill] sm:$0xff] %v7790_v19  ;;  %v3401_v15 = vmul.f32 %v3273_v2, %v3145_v27  ;;  %v3402_v45 = vmul.f32 %v3274_v31, %v3146_v62  ;;  %v1566_v59 = vadd.f32 %v1565_v28, %v6584_v24  ;;  %5144 = vpow2.f32 %v2225_v17 }
 0x2a3   : > { %v1872_v33 = vxor.u32 2147516416, %v7790_v19  ;;  %v2609_v9 = vpack.c.bf16 %v8763_v10, %v8762_v13  ;;  %v2611_v4 = vpack.c.bf16 %v7348_v8, %v7337_v1  ;;  %5146 = vpow2.f32 %v2227_v41  ;;  %v8771_v13 = vld [vmem:[#allocation71_spill] sm:$0xff] }
 0x2a4   : > { %v3505_v21 = vpack.c.bf16 %v3401_v15, %v3397_v60  ;;  %v3506_v47 = vpack.c.bf16 %v3402_v45, %v3398_v48  ;;  %v7799_v3 = vpack.c.bf16 %v1566_v59, %v1477_v36  ;;  %v8765_v32 = vunpack.c.l.bf16 %v7746_v52 }
 0x2a5   : > { %v1991_v11 = vunpack.c.l.bf16 %v1872_v33  ;;  %v1992_v27 = vunpack.c.h.bf16 %v1872_v33  ;;  %v2819_v62 = vunpack.c.h.bf16 %v2609_v9  ;;  %v2820_v57 = vunpack.c.l.bf16 %v2609_v9  ;;  %v5141_v8 = vpop.eup %5140  ;;  %v8770_v33 = vld [vmem:[#allocation69_spill] sm:$0xff] }
 0x2a6   : > { %8764 = vst [vmem:[#allocation63_spill] sm:$0xff] %v7799_v3  ;;  %v7803_v55 = vadd.f32 1.0, %v8765_v32  ;;  %v8766_v43 = vunpack.c.h.bf16 %v7746_v52  ;;  %v2433_v53 = vunpack.c.l.bf16 %v7775_v54  ;;  %4018 = vmatmul.bf16.gmra.mxu2 %v3505_v21  ;;  %4107 = vmatmul.bf16.gmra.mxu3 %v3506_v47  ;;  %v1873_v1 = vxor.u32 2147516416, %v7799_v3 }
 0x2a7   : > { %v2434_v5 = vunpack.c.h.bf16 %v7775_v54  ;;  %v2229_v17 = vmul.f32 1.442695, %v1991_v11  ;;  %5148 = vrcp.f32 %v2819_v62  ;;  %v2833_v56 = vunpack.c.h.bf16 %v2611_v4  ;;  %v5143_v28 = vpop.eup %5142  ;;  %v8769_v54 = vld [vmem:[#allocation67_spill] sm:$0xff] }
 0x2a8   : > { %v7807_v63 = vadd.f32 1.0, %v8766_v43  ;;  %v2231_v2 = vmul.f32 1.442695, %v1992_v27  ;;  %v1993_v29 = vunpack.c.l.bf16 %v1873_v1  ;;  %v1994_v38 = vunpack.c.h.bf16 %v1873_v1  ;;  %v5145_v52 = vpop.eup %5144  ;;  %v1654_v43 = vpop.f32.mrf.mxu2 }
 0x2a9   : > { %5150 = vrcp.f32 %v2820_v57  ;;  %v8767_v60 = vunpack.c.l.bf16 %v7755_v16  ;;  %v8768_v50 = vunpack.c.h.bf16 %v7755_v16  ;;  %v2610_v36 = vpack.c.bf16 %v8769_v54, %v7328_v7  ;;  %v5147_v15 = vpop.eup %5146  ;;  %v1743_v1 = vpop.f32.mrf.mxu3 }
 0x2aa   : > { %5152 = vpow2.f32 %v2229_v17  ;;  %v2233_v45 = vmul.f32 1.442695, %v1993_v29  ;;  %v2235_v59 = vmul.f32 1.442695, %v1994_v38  ;;  %v2612_v10 = vpack.c.bf16 %v8771_v13, %v8770_v33  ;;  %v8772_v33 = vld [vmem:[#allocation54_spill] sm:$0xff] }
 0x2ab   : > { %v7814_v31 = vadd.f32 1.0, %v8767_v60  ;;  %v7818_v48 = vadd.f32 1.0, %v8768_v50  ;;  %v2318_v9 = vpack.c.bf16 %v5143_v28, %v5141_v8  ;;  %v2834_v47 = vunpack.c.l.bf16 %v2611_v4  ;;  %v1478_v60 = vpop.f32.mrf.mxu0  ;;  %v1567_v50 = vpop.f32.mrf.mxu1 }
 0x2ac   : > { %5154 = vrcp.f32 %v2833_v56  ;;  %v7826_v16 = vadd.f32 1.0, %v2433_v53  ;;  %v7828_v11 = vadd.f32 1.0, %v2434_v5  ;;  %v2826_v27 = vunpack.c.h.bf16 %v2610_v36 }
 0x2ad   : > { %5156 = vpow2.f32 %v2231_v2  ;;  %v5149_v62 = vpop.eup %5148  ;;  %v2319_v7 = vpack.c.bf16 %v5147_v15, %v5145_v52  ;;  %v2827_v32 = vunpack.c.l.bf16 %v2610_v36  ;;  %v2840_v53 = vunpack.c.h.bf16 %v2612_v10 }
 0x2ae   : > { %5158 = vpow2.f32 %v2233_v45  ;;  %v2822_v4 = vmul.f32 %v5149_v62, %v6660_v22  ;;  %v2435_v56 = vunpack.c.l.bf16 %v2318_v9  ;;  %v2436_v5 = vunpack.c.h.bf16 %v2318_v9 }
 0x2af   : > { %v5151_v17 = vpop.eup %5150  ;;  %5160 = vpow2.f32 %v2235_v59  ;;  %v2841_v29 = vunpack.c.l.bf16 %v2612_v10  ;;  %v1655_v38 = vadd.f32 %v1654_v43, %v6629_v18  ;;  %v1744_v52 = vadd.f32 %v1743_v1, %v6635_v35 }
 0x2b0   : > { %v2824_v28 = vmul.f32 %v5151_v17, %v6676_v0  ;;  %5162 = vrcp.f32 %v2834_v47  ;;  %v5153_v2 = vpop.eup %5152  ;;  %v2437_v36 = vunpack.c.l.bf16 %v2319_v7  ;;  %v2438_v15 = vunpack.c.h.bf16 %v2319_v7  ;;  %v8776_v17 = vld [vmem:[#allocation56_spill] sm:$0xff] }
 0x2b1   : > { %5164 = vrcp.f32 %v2826_v27  ;;  %v3151_v13 = vunpack.c.l.bf16 %v8772_v33  ;;  %v3152_v9 = vunpack.c.h.bf16 %v8772_v33  ;;  %v7838_v47 = vpack.c.bf16 %v1744_v52, %v1655_v38 }
 0x2b2   : > { %v5155_v54 = vpop.eup %5154  ;;  %v2825_v45 = vpack.c.bf16 %v2822_v4, %v2824_v28  ;;  %5166 = vrcp.f32 %v2827_v32  ;;  %v7840_v27 = vadd.f32 1.0, %v2435_v56  ;;  %v7842_v62 = vadd.f32 1.0, %v2436_v5 }
 0x2b3   : > { %v5157_v59 = vpop.eup %5156  ;;  %5168 = vrcp.f32 %v2840_v53  ;;  %8773 = vst [vmem:[#allocation47_spill] sm:$0xff] %v7838_v47  ;;  %v1479_v43 = vadd.f32 %v1478_v60, %v6568_v37  ;;  %v1568_v1 = vadd.f32 %v1567_v50, %v6584_v24  ;;  %v2836_v32 = vmul.f32 %v5155_v54, %v6660_v22 }
 0x2b4   : > { %v5159_v10 = vpop.eup %5158  ;;  %8774 = vst [vmem:[#allocation48_spill] sm:$0xff] %v7840_v27  ;;  %5170 = vrcp.f32 %v2841_v29  ;;  %v1874_v28 = vxor.u32 2147516416, %v7838_v47  ;;  %v7849_v38 = vadd.f32 1.0, %v2437_v36  ;;  %v7851_v52 = vadd.f32 1.0, %v2438_v15 }
 0x2b5   : > { %8775 = vst [vmem:[#allocation45_spill] sm:$0xff] %v7842_v62  ;;  %v5161_v7 = vpop.eup %5160  ;;  %v3275_v56 = vunpack.c.l.bf16 %v2825_v45  ;;  %v3276_v5 = vunpack.c.h.bf16 %v2825_v45  ;;  %v3154_v50 = vunpack.c.h.bf16 %v8776_v17  ;;  %v7855_v29 = vpack.c.bf16 %v5157_v59, %v5153_v2 }
 0x2b6   : > { %v5163_v53 = vpop.eup %5162  ;;  %8777 = vst [vmem:[#allocation46_spill] sm:$0xff] %v7849_v38  ;;  %v1995_v8 = vunpack.c.l.bf16 %v1874_v28  ;;  %v1996_v57 = vunpack.c.h.bf16 %v1874_v28  ;;  %v7857_v21 = vpack.c.bf16 %v5161_v7, %v5159_v10  ;;  %v7860_v36 = vpack.c.bf16 %v1568_v1, %v1479_v43 }
 0x2b7   : > { %8778 = vst [vmem:[#allocation64_spill] sm:$0xff] %v7851_v52  ;;  %v5165_v33 = vpop.eup %5164  ;;  %v2838_v60 = vmul.f32 %v5163_v53, %v6676_v0  ;;  %v8780_v53 = vld [vmem:[#allocation49_spill] sm:$0xff]  ;;  %v1481_v52 = vpop.f32.mrf.mxu0 }
 0x2b8   : > { %v5167_v54 = vpop.eup %5166  ;;  %v2829_v41 = vmul.f32 %v5165_v33, %v6660_v22  ;;  %8779 = vst [vmem:[#allocation65_spill] sm:$0xff] %v7860_v36  ;;  %v2237_v3 = vmul.f32 1.442695, %v1995_v8  ;;  %v2239_v14 = vmul.f32 1.442695, %v1996_v57  ;;  %v8781_v19 = vunpack.c.l.bf16 %v8780_v53 }
 0x2b9   : > { %v5169_v15 = vpop.eup %5168  ;;  %v2839_v4 = vpack.c.bf16 %v2836_v32, %v2838_v60  ;;  %v2831_v45 = vmul.f32 %v5167_v54, %v6676_v0  ;;  %v8782_v28 = vunpack.c.h.bf16 %v8780_v53  ;;  %v1875_v59 = vxor.u32 2147516416, %v7860_v36  ;;  %v1656_v32 = vpop.f32.mrf.mxu2 }
 0x2ba   : > { %v3403_v62 = vmul.f32 %v3275_v56, %v8781_v19  ;;  %v2843_v2 = vmul.f32 %v5169_v15, %v6660_v22  ;;  %v5171_v10 = vpop.eup %5170  ;;  %5172 = vpow2.f32 %v2237_v3  ;;  %v1657_v36 = vadd.f32 %v1656_v32, %v6629_v18 }
 0x2bb   : > { %v3404_v27 = vmul.f32 %v3276_v5, %v8782_v28  ;;  %v3279_v7 = vunpack.c.l.bf16 %v2839_v4  ;;  %v3280_v43 = vunpack.c.h.bf16 %v2839_v4  ;;  %v2832_v1 = vpack.c.bf16 %v2829_v41, %v2831_v45  ;;  %v1745_v5 = vpop.f32.mrf.mxu3  ;;  %v1570_v4 = vpop.f32.mrf.mxu1  ;;  %v8783_v45 = vld [vmem:[#allocation52_spill] sm:$0xff] }
 0x2bc   : > { %v2845_v33 = vmul.f32 %v5171_v10, %v6676_v0  ;;  %5174 = vpow2.f32 %v2239_v14  ;;  %v1997_v57 = vunpack.c.l.bf16 %v1875_v59  ;;  %v1998_v8 = vunpack.c.h.bf16 %v1875_v59 }
 0x2bd   : > { %v3407_v60 = vmul.f32 %v3279_v7, %v3151_v13  ;;  %v3408_v19 = vmul.f32 %v3280_v43, %v3152_v9  ;;  %v3277_v56 = vunpack.c.l.bf16 %v2832_v1  ;;  %v3278_v54 = vunpack.c.h.bf16 %v2832_v1  ;;  %v8787_v1 = vld [vmem:[#allocation73_spill] sm:$0xff] }
 0x2be   : > { %v2846_v53 = vpack.c.bf16 %v2843_v2, %v2845_v33  ;;  %v2241_v15 = vmul.f32 1.442695, %v1997_v57  ;;  %v2243_v28 = vmul.f32 1.442695, %v1998_v8  ;;  %v8784_v38 = vunpack.c.l.bf16 %v8783_v45 }
 0x2bf   : > { %v3507_v41 = vpack.c.bf16 %v3407_v60, %v3403_v62  ;;  %v3508_v3 = vpack.c.bf16 %v3408_v19, %v3404_v27  ;;  %v8785_v14 = vunpack.c.h.bf16 %v8783_v45  ;;  %v1746_v7 = vadd.f32 %v1745_v5, %v6635_v35  ;;  %v8786_v27 = vld [vmem:[#allocation72_spill] sm:$0xff]  ;;  %v8790_v19 = vld [vmem:[#allocation78_spill] sm:$0xff] }
 0x2c0   : > { %v3405_v10 = vmul.f32 %v3277_v56, %v8784_v38  ;;  %v3281_v13 = vunpack.c.l.bf16 %v2846_v53  ;;  %v3282_v9 = vunpack.c.h.bf16 %v2846_v53  ;;  %5176 = vpow2.f32 %v2241_v15  ;;  %v5173_v2 = vpop.eup %5172  ;;  %v8791_v56 = vld [vmem:[#allocation79_spill] sm:$0xff] }
 0x2c1   : > { %v3406_v59 = vmul.f32 %v3278_v54, %v8785_v14  ;;  %3845 = vmatmul.bf16.gmra.mxu0 %v3507_v41  ;;  %3934 = vmatmul.bf16.gmra.mxu1 %v3508_v3  ;;  %5178 = vpow2.f32 %v2243_v28  ;;  %v1482_v43 = vadd.f32 %v1481_v52, %v6568_v37  ;;  %v1571_v62 = vadd.f32 %v1570_v4, %v6584_v24 }
 0x2c2   : > { %v2613_v32 = vpack.c.bf16 %v8787_v1, %v8786_v27  ;;  %v5175_v38 = vpop.eup %5174  ;;  %v8788_v33 = vunpack.c.l.bf16 %v8776_v17  ;;  %v3410_v8 = vmul.f32 %v3282_v9, %v3154_v50  ;;  %v7882_v60 = vpack.c.bf16 %v1746_v7, %v1657_v36 }
 0x2c3   : > { %v2615_v54 = vpack.c.bf16 %v8791_v56, %v8790_v19  ;;  %v2439_v5 = vunpack.c.l.bf16 %v7855_v29  ;;  %v7887_v53 = vpack.c.bf16 %v5175_v38, %v5173_v2  ;;  %v7889_v52 = vpack.c.bf16 %v1571_v62, %v1482_v43 }
 0x2c4   : > { %v3409_v57 = vmul.f32 %v3281_v13, %v8788_v33  ;;  %8789 = vst [vmem:[#allocation67_spill] sm:$0xff] %v7882_v60  ;;  %v2847_v15 = vunpack.c.h.bf16 %v2613_v32  ;;  %v3510_v4 = vpack.c.bf16 %v3410_v8, %v3406_v59  ;;  %v1876_v41 = vxor.u32 2147516416, %v7882_v60  ;;  %v1748_v8 = vpop.f32.mrf.mxu3  ;;  %v8806_v60 = vld [vmem:[#allocation58_spill] sm:$0xff] }
 0x2c5   : > { %8792 = vst [vmem:[#allocation69_spill] sm:$0xff] %v7889_v52  ;;  %v2848_v3 = vunpack.c.l.bf16 %v2613_v32  ;;  %v2440_v17 = vunpack.c.h.bf16 %v7855_v29  ;;  %v1877_v36 = vxor.u32 2147516416, %v7889_v52  ;;  %v2861_v45 = vunpack.c.h.bf16 %v2615_v54  ;;  %v1659_v32 = vpop.f32.mrf.mxu2 }
 0x2c6   : > { %v3509_v28 = vpack.c.bf16 %v3409_v57, %v3405_v10  ;;  %v5177_v14 = vpop.eup %5176  ;;  %v2441_v13 = vunpack.c.l.bf16 %v7857_v21  ;;  %4112 = vmatmul.bf16.gmra.mxu3 %v3510_v4  ;;  %v1999_v9 = vunpack.c.l.bf16 %v1876_v41  ;;  %v2000_v7 = vunpack.c.h.bf16 %v1876_v41  ;;  %v8795_v4 = vld [vmem:[#allocation75_spill] sm:$0xff] }
 0x2c7   : > { %5180 = vrcp.f32 %v2847_v15  ;;  %v5179_v10 = vpop.eup %5178  ;;  %v2442_v59 = vunpack.c.h.bf16 %v7857_v21  ;;  %v2443_v2 = vunpack.c.l.bf16 %v7887_v53  ;;  %v2001_v43 = vunpack.c.l.bf16 %v1877_v36 }
 0x2c8   : > { %4023 = vmatmul.bf16.gmra.mxu2 %v3509_v28  ;;  %v2002_v29 = vunpack.c.h.bf16 %v1877_v36  ;;  %v2323_v62 = vpack.c.bf16 %v5179_v10, %v5177_v14  ;;  %v2245_v27 = vmul.f32 1.442695, %v1999_v9  ;;  %v2247_v1 = vmul.f32 1.442695, %v2000_v7  ;;  %v8794_v28 = vld [vmem:[#allocation74_spill] sm:$0xff]  ;;  %v8797_v36 = vld [vmem:[#allocation81_spill] sm:$0xff]  ;;  %v1572_v7 = vpop.f32.mrf.mxu1 }
 0x2c9   : > { %5182 = vrcp.f32 %v2848_v3  ;;  %v7898_v38 = vadd.f32 1.0, %v2439_v5  ;;  %v2249_v33 = vmul.f32 1.442695, %v2001_v43  ;;  %v7900_v19 = vadd.f32 1.0, %v2440_v17  ;;  %v8796_v3 = vld [vmem:[#allocation80_spill] sm:$0xff] }
 0x2ca   : > { %v2251_v57 = vmul.f32 1.442695, %v2002_v29  ;;  %5184 = vrcp.f32 %v2861_v45  ;;  %v7902_v56 = vadd.f32 1.0, %v2441_v13  ;;  %v2862_v21 = vunpack.c.l.bf16 %v2615_v54  ;;  %v1483_v13 = vpop.f32.mrf.mxu0 }
 0x2cb   : > { %5186 = vpow2.f32 %v2245_v27  ;;  %v7904_v15 = vadd.f32 1.0, %v2442_v59  ;;  %v2614_v41 = vpack.c.bf16 %v8795_v4, %v8794_v28  ;;  %v2616_v5 = vpack.c.bf16 %v8797_v36, %v8796_v3 }
 0x2cc   : > { %5188 = vpow2.f32 %v2247_v1  ;;  %v2444_v9 = vunpack.c.h.bf16 %v7887_v53  ;;  %v7911_v45 = vadd.f32 1.0, %v2443_v2  ;;  %v2445_v17 = vunpack.c.l.bf16 %v2323_v62 }
 0x2cd   : > { %8793 = vst [vmem:[#allocation71_spill] sm:$0xff] %v7904_v15  ;;  %v5181_v14 = vpop.eup %5180  ;;  %5190 = vpow2.f32 %v2249_v33  ;;  %v2854_v10 = vunpack.c.h.bf16 %v2614_v41  ;;  %v2855_v59 = vunpack.c.l.bf16 %v2614_v41  ;;  %v2446_v29 = vunpack.c.h.bf16 %v2323_v62 }
 0x2ce   : > { %8798 = vst [vmem:[#allocation54_spill] sm:$0xff] %v7911_v45  ;;  %5192 = vpow2.f32 %v2251_v57  ;;  %v2850_v54 = vmul.f32 %v5181_v14, %v6660_v22  ;;  %v2868_v27 = vunpack.c.h.bf16 %v2616_v5  ;;  %v2869_v1 = vunpack.c.l.bf16 %v2616_v5  ;;  %v8800_v57 = vld [vmem:[#allocation61_spill] sm:$0xff] }
 0x2cf   : > { %v5183_v43 = vpop.eup %5182  ;;  %5194 = vrcp.f32 %v2862_v21  ;;  %v1660_v53 = vadd.f32 %v1659_v32, %v6629_v18  ;;  %v1749_v2 = vadd.f32 %v1748_v8, %v6635_v35  ;;  %v7917_v3 = vadd.f32 1.0, %v2444_v9  ;;  %v1661_v9 = vpop.f32.mrf.mxu2 }
 0x2d0   : > { %v5185_v28 = vpop.eup %5184  ;;  %v2852_v4 = vmul.f32 %v5183_v43, %v6676_v0  ;;  %5196 = vrcp.f32 %v2854_v10  ;;  %v3159_v36 = vunpack.c.l.bf16 %v8800_v57  ;;  %v1484_v41 = vadd.f32 %v1483_v13, %v6568_v37 }
 0x2d1   : > { %v5187_v33 = vpop.eup %5186  ;;  %8799 = vst [vmem:[#allocation56_spill] sm:$0xff] %v7917_v3  ;;  %5198 = vrcp.f32 %v2855_v59  ;;  %v7921_v5 = vpack.c.bf16 %v1749_v2, %v1660_v53  ;;  %v1573_v14 = vadd.f32 %v1572_v7, %v6584_v24  ;;  %v7924_v43 = vadd.f32 1.0, %v2445_v17  ;;  %v8804_v7 = vld [vmem:[#allocation62_spill] sm:$0xff] }
 0x2d2   : > { %v5189_v62 = vpop.eup %5188  ;;  %v2853_v21 = vpack.c.bf16 %v2850_v54, %v2852_v4  ;;  %5200 = vrcp.f32 %v2868_v27  ;;  %v3160_v8 = vunpack.c.h.bf16 %v8800_v57  ;;  %v7929_v59 = vadd.f32 1.0, %v2446_v29  ;;  %v1750_v27 = vpop.f32.mrf.mxu3 }
 0x2d3   : > { %8801 = vst [vmem:[#allocation49_spill] sm:$0xff] %v7921_v5  ;;  %v5191_v10 = vpop.eup %5190  ;;  %v7926_v32 = vpack.c.bf16 %v5189_v62, %v5187_v33  ;;  %5202 = vrcp.f32 %v2869_v1  ;;  %v2864_v37 = vmul.f32 %v5185_v28, %v6660_v22  ;;  %v1878_v54 = vxor.u32 2147516416, %v7921_v5  ;;  %v3816_v45 = vpop.f32.mrf.mxu0 }
 0x2d4   : > { %8802 = vst [vmem:[#allocation52_spill] sm:$0xff] %v7924_v43  ;;  %v5193_v50 = vpop.eup %5192  ;;  %v3283_v13 = vunpack.c.l.bf16 %v2853_v21  ;;  %v3284_v17 = vunpack.c.h.bf16 %v2853_v21  ;;  %v3161_v53 = vunpack.c.l.bf16 %v8804_v7  ;;  %v3162_v2 = vunpack.c.h.bf16 %v8804_v7  ;;  %v7946_v7 = vpop.f32.mrf.mxu1 }
 0x2d5   : > { %8803 = vst [vmem:[#allocation72_spill] sm:$0xff] %v7929_v59  ;;  %v5195_v4 = vpop.eup %5194  ;;  %v2447_v24 = vunpack.c.l.bf16 %v7926_v32  ;;  %v2003_v57 = vunpack.c.l.bf16 %v1878_v54  ;;  %v7937_v29 = vpack.c.bf16 %v1573_v14, %v1484_v41  ;;  %v1662_v28 = vadd.f32 %v1661_v9, %v6629_v18 }
 0x2d6   : > { %v5197_v33 = vpop.eup %5196  ;;  %v2866_v1 = vmul.f32 %v5195_v4, %v6676_v0  ;;  %v2448_v5 = vunpack.c.h.bf16 %v7926_v32  ;;  %v7941_v52 = vpack.c.bf16 %v5193_v50, %v5191_v10  ;;  %v8807_v47 = vunpack.c.l.bf16 %v8806_v60 }
 0x2d7   : > { %8805 = vst [vmem:[#allocation73_spill] sm:$0xff] %v7937_v29  ;;  %v5199_v62 = vpop.eup %5198  ;;  %v1751_v3 = vadd.f32 %v1750_v27, %v6635_v35  ;;  %v2857_v41 = vmul.f32 %v5197_v33, %v6660_v22  ;;  %v2004_v18 = vunpack.c.h.bf16 %v1878_v54  ;;  %v7950_v43 = vadd.f32 1.0, %v2447_v24 }
 0x2d8   : > { %v3411_v21 = vmul.f32 %v3283_v13, %v8807_v47  ;;  %v5201_v59 = vpop.eup %5200  ;;  %v2867_v4 = vpack.c.bf16 %v2864_v37, %v2866_v1  ;;  %v2859_v14 = vmul.f32 %v5199_v62, %v6676_v0  ;;  %v8809_v50 = vunpack.c.h.bf16 %v8806_v60 }
 0x2d9   : > { %v5203_v9 = vpop.eup %5202  ;;  %8808 = vst [vmem:[#allocation78_spill] sm:$0xff] %v7950_v43  ;;  %v2871_v47 = vmul.f32 %v5201_v59, %v6660_v22  ;;  %v2253_v32 = vmul.f32 1.442695, %v2003_v57  ;;  %v2255_v37 = vmul.f32 1.442695, %v2004_v18  ;;  %v1879_v33 = vxor.u32 2147516416, %v7937_v29 }
 0x2da   : > { %v3412_v10 = vmul.f32 %v3284_v17, %v8809_v50  ;;  %v3287_v35 = vunpack.c.l.bf16 %v2867_v4  ;;  %v3288_v13 = vunpack.c.h.bf16 %v2867_v4  ;;  %v2860_v27 = vpack.c.bf16 %v2857_v41, %v2859_v14  ;;  %v8833_v29 = vld [vmem:[#allocation28_spill] sm:$0xff] }
 0x2db   : > { %v2873_v15 = vmul.f32 %v5203_v9, %v6676_v0  ;;  %5204 = vpow2.f32 %v2253_v32  ;;  %v7957_v1 = vpack.c.bf16 %v1751_v3, %v1662_v28  ;;  %v2005_v17 = vunpack.c.l.bf16 %v1879_v33  ;;  %v7964_v3 = vld [vmem:[%s8392_s6] ss:$0 sm:$0xff] }
 0x2dc   : > { %v3415_v54 = vmul.f32 %v3287_v35, %v3159_v36  ;;  %v3416_v24 = vmul.f32 %v3288_v13, %v3160_v8  ;;  %v3285_v43 = vunpack.c.l.bf16 %v2860_v27  ;;  %v3286_v60 = vunpack.c.h.bf16 %v2860_v27  ;;  %v4083_v13 = vpop.f32.mrf.mxu3 }
 0x2dd   : > { %8810 = vst [vmem:[#allocation79_spill] sm:$0xff] %v7957_v1  ;;  %v2874_v62 = vpack.c.bf16 %v2871_v47, %v2873_v15  ;;  %5206 = vpow2.f32 %v2255_v37  ;;  %v2006_v59 = vunpack.c.h.bf16 %v1879_v33  ;;  %v2449_v57 = vunpack.c.l.bf16 %v7941_v52  ;;  %v8811_v15 = vld [vmem:[#allocation60_spill] sm:$0xff]  ;;  %v8814_v47 = vld [vmem:[#allocation83_spill] sm:$0xff] }
 0x2de   : > { %v3511_v4 = vpack.c.bf16 %v3415_v54, %v3411_v21  ;;  %v3512_v41 = vpack.c.bf16 %v3416_v24, %v3412_v10  ;;  %v2450_v9 = vunpack.c.h.bf16 %v7941_v52  ;;  %v2257_v50 = vmul.f32 1.442695, %v2005_v17  ;;  %v8813_v10 = vld [vmem:[#allocation82_spill] sm:$0xff]  ;;  %v3994_v52 = vpop.f32.mrf.mxu2  ;;  %v8816_v24 = vld [vmem:[#allocation24_spill] sm:$0xff]  ;;  %v3818_v17 = vpop.f32.mrf.mxu0 }
 0x2df   : > { %v3289_v14 = vunpack.c.l.bf16 %v2874_v62  ;;  %v3290_v18 = vunpack.c.h.bf16 %v2874_v62  ;;  %v2259_v32 = vmul.f32 1.442695, %v2006_v59  ;;  %v8812_v36 = vunpack.c.l.bf16 %v8811_v15  ;;  %v3907_v59 = vpop.f32.mrf.mxu1 }
 0x2e0   : > { %3850 = vmatmul.bf16.gmra.mxu0 %v3511_v4  ;;  %3939 = vmatmul.bf16.gmra.mxu1 %v3512_v41  ;;  %v1880_v21 = vxor.u32 2147516416, %v7957_v1  ;;  %v2617_v35 = vpack.c.bf16 %v8814_v47, %v8813_v10  ;;  %v8815_v37 = vunpack.c.h.bf16 %v8811_v15  ;;  %5208 = vpow2.f32 %v2257_v50 }
 0x2e1   : > { %v3413_v8 = vmul.f32 %v3285_v43, %v8812_v36  ;;  %v3417_v28 = vmul.f32 %v3289_v14, %v3161_v53  ;;  %v5205_v27 = vpop.eup %5204  ;;  %v3418_v54 = vmul.f32 %v3290_v18, %v3162_v2  ;;  %v2619_v62 = vpack.c.bf16 %v7482_v23, %v8816_v24 }
 0x2e2   : > { %v3414_v33 = vmul.f32 %v3286_v60, %v8815_v37  ;;  %5210 = vpow2.f32 %v2259_v32  ;;  %v2007_v53 = vunpack.c.l.bf16 %v1880_v21  ;;  %v2008_v4 = vunpack.c.h.bf16 %v1880_v21  ;;  %v8819_v32 = vld [vmem:[#allocation84_spill] sm:$0xff] }
 0x2e3   : > { %v3513_v43 = vpack.c.bf16 %v3417_v28, %v3413_v8  ;;  %v5207_v41 = vpop.eup %5206  ;;  %v7975_v14 = vadd.f32 1.0, %v2448_v5  ;;  %v3817_v10 = vadd.f32 %v7964_v3, %v3816_v45  ;;  %v2875_v47 = vunpack.c.h.bf16 %v2617_v35  ;;  %v8820_v8 = vld [vmem:[#allocation23_spill] sm:$0xff]  ;;  %v8822_v45 = vld [vmem:[#allocation16_spill] sm:$0xff] }
 0x2e4   : > { %v3514_v36 = vpack.c.bf16 %v3418_v54, %v3414_v33  ;;  %v2326_v60 = vpack.c.bf16 %v5207_v41, %v5205_v27  ;;  %v2261_v2 = vmul.f32 1.442695, %v2007_v53  ;;  %v2263_v18 = vmul.f32 1.442695, %v2008_v4  ;;  %v8823_v54 = vld [vmem:[#allocation70_spill] sm:$0xff]  ;;  %v4085_v41 = vpop.f32.mrf.mxu3 }
 0x2e5   : > { %8817 = vst [vmem:[#allocation74_spill] sm:$0xff] %v7975_v14  ;;  %4028 = vmatmul.bf16.gmra.mxu2 %v3513_v43  ;;  %v2876_v50 = vunpack.c.l.bf16 %v2617_v35  ;;  %v7978_v15 = vadd.f32 1.0, %v2449_v57  ;;  %5212 = vrcp.f32 %v2875_v47  ;;  %v2889_v23 = vunpack.c.h.bf16 %v2619_v62 }
 0x2e6   : > { %4117 = vmatmul.bf16.gmra.mxu3 %v3514_v36  ;;  %v2618_v28 = vpack.c.bf16 %v8820_v8, %v8819_v32  ;;  %v7982_v21 = vadd.f32 1.0, %v2450_v9  ;;  %5214 = vpow2.f32 %v2261_v2  ;;  %v2890_v5 = vunpack.c.l.bf16 %v2619_v62  ;;  %v5209_v33 = vpop.eup %5208  ;;  %v3996_v9 = vpop.f32.mrf.mxu2 }
 0x2e7   : > { %8818 = vst [vmem:[#allocation75_spill] sm:$0xff] %v7978_v15  ;;  %v2620_v37 = vpack.c.bf16 %v8822_v45, %v7492_v30  ;;  %v2451_v27 = vunpack.c.l.bf16 %v2326_v60  ;;  %5216 = vpow2.f32 %v2263_v18  ;;  %v3906_v43 = vadd.f32 %v7946_v7, %v3817_v10  ;;  %v3821_v30 = vpop.f32.mrf.mxu0  ;;  %v3910_v2 = vpop.f32.mrf.mxu1  ;;  %v8825_v7 = vld [vmem:[#allocation76_spill] sm:$0xff] }
 0x2e8   : > { %8821 = vst [vmem:[#allocation80_spill] sm:$0xff] %v7982_v21  ;;  %v2882_v57 = vunpack.c.h.bf16 %v2618_v28  ;;  %v5211_v24 = vpop.eup %5210  ;;  %5218 = vrcp.f32 %v2876_v50  ;;  %v2883_v4 = vunpack.c.l.bf16 %v2618_v28  ;;  %v2452_v36 = vunpack.c.h.bf16 %v2326_v60  ;;  %v8826_v50 = vld [vmem:[#allocation17_spill] sm:$0xff] }
 0x2e9   : > { %v2327_v62 = vpack.c.bf16 %v5211_v24, %v5209_v33  ;;  %5220 = vrcp.f32 %v2889_v23  ;;  %v2896_v47 = vunpack.c.h.bf16 %v2620_v37  ;;  %v2897_v18 = vunpack.c.l.bf16 %v2620_v37  ;;  %v8827_v28 = vld [vmem:[#allocation29_spill] sm:$0xff] }
 0x2ea   : > { %5222 = vrcp.f32 %v2890_v5  ;;  %v3995_v32 = vadd.f32 %v3994_v52, %v3906_v43  ;;  %v3819_v8 = vadd.f32 %v7964_v3, %v3818_v17  ;;  %v7990_v35 = vadd.f32 1.0, %v2451_v27 }
 0x2eb   : > { %v5213_v45 = vpop.eup %5212  ;;  %5224 = vrcp.f32 %v2882_v57  ;;  %v2621_v60 = vpack.c.bf16 %v8827_v28, %v8826_v50  ;;  %v2453_v23 = vunpack.c.l.bf16 %v2327_v62  ;;  %v7995_v37 = vadd.f32 1.0, %v2452_v36 }
 0x2ec   : > { %8824 = vst [vmem:[#allocation81_spill] sm:$0xff] %v7990_v35  ;;  %v5215_v33 = vpop.eup %5214  ;;  %5226 = vrcp.f32 %v2883_v4  ;;  %v4084_v24 = vadd.f32 %v4083_v13, %v3995_v32  ;;  %v3908_v53 = vadd.f32 %v3907_v59, %v3819_v8  ;;  %v2878_v52 = vmul.f32 %v5213_v45, %v6660_v22  ;;  %v8829_v4 = vld [vmem:[#allocation33_spill] sm:$0xff]  ;;  %v8830_v13 = vld [vmem:[#allocation34_spill] sm:$0xff] }
 0x2ed   : > { %v5217_v5 = vpop.eup %5216  ;;  %8828 = vst [vmem:[#allocation61_spill] sm:$0xff] %v7995_v37  ;;  %5228 = vrcp.f32 %v2896_v47  ;;  %v3822_v17 = vadd.f32 %v7964_v3, %v3821_v30  ;;  %v2454_v57 = vunpack.c.h.bf16 %v2327_v62  ;;  %v2623_v59 = vpack.c.bf16 %v8830_v13, %v8829_v4 }
 0x2ee   : > { %v5219_v27 = vpop.eup %5218  ;;  %5230 = vrcp.f32 %v2897_v18  ;;  %4163 = vst [vmem:[%s8001_s11] sm:$0xff] %v4084_v24  ;;  %v3997_v43 = vadd.f32 %v3996_v9, %v3908_v53  ;;  %v2903_v47 = vunpack.c.h.bf16 %v2621_v60  ;;  %v2904_v45 = vunpack.c.l.bf16 %v2621_v60  ;;  %v8013_v53 = vpop.f32.mrf.mxu2 }
 0x2ef   : > { %v5221_v32 = vpop.eup %5220  ;;  %v2880_v36 = vmul.f32 %v5219_v27, %v6676_v0  ;;  %v8008_v50 = vadd.f32 1.0, %v2453_v23  ;;  %v8010_v62 = vpack.c.bf16 %v5217_v5, %v5215_v33  ;;  %v8015_v9 = vpop.f32.mrf.mxu3  ;;  %v2917_v13 = vunpack.c.h.bf16 %v2623_v59 }
 0x2f0   : > { %v5223_v30 = vpop.eup %5222  ;;  %v2892_v18 = vmul.f32 %v5221_v32, %v6660_v22  ;;  %v4086_v28 = vadd.f32 %v4085_v41, %v3997_v43  ;;  %5232 = vrcp.f32 %v2903_v47  ;;  %v8018_v60 = vpop.f32.mrf.mxu0  ;;  %v8022_v33 = vadd.f32 1.0, %v2454_v57 }
 0x2f1   : > { %8831 = vst [vmem:[#allocation62_spill] sm:$0xff] %v8008_v50  ;;  %v5225_v24 = vpop.eup %5224  ;;  %v2881_v4 = vpack.c.bf16 %v2878_v52, %v2880_v36  ;;  %v2894_v27 = vmul.f32 %v5223_v30, %v6676_v0  ;;  %v8020_v23 = vpop.f32.mrf.mxu1  ;;  %v8026_v41 = vadd.f32 %v3910_v2, %v3822_v17  ;;  %5234 = vrcp.f32 %v2904_v45 }
 0x2f2   : > { %v5227_v8 = vpop.eup %5226  ;;  %8832 = vst [vmem:[#allocation58_spill] sm:$0xff] %v8022_v33  ;;  %v2885_v5 = vmul.f32 %v5225_v24, %v6660_v22  ;;  %v2918_v1 = vunpack.c.l.bf16 %v2623_v59  ;;  %5236 = vrcp.f32 %v2917_v13  ;;  %v8838_v59 = vunpack.c.l.bf16 %v8823_v54 }
 0x2f3   : > { %4164 = vst [vmem:[%s8001_s11 + $0x8] sm:$0xff] %v4086_v28  ;;  %v5229_v43 = vpop.eup %5228  ;;  %v2895_v32 = vpack.c.bf16 %v2892_v18, %v2894_v27  ;;  %v3291_v52 = vunpack.c.l.bf16 %v2881_v4  ;;  %v3292_v36 = vunpack.c.h.bf16 %v2881_v4  ;;  %v2887_v47 = vmul.f32 %v5227_v8, %v6676_v0  ;;  %v8834_v28 = vld [vmem:[#allocation66_spill] sm:$0xff]  ;;  %v8836_v4 = vld [vmem:[#allocation37_spill] sm:$0xff] }
 0x2f4   : > { %v5231_v30 = vpop.eup %5230  ;;  %v2899_v10 = vmul.f32 %v5229_v43, %v6660_v22  ;;  %v8835_v2 = vunpack.c.l.bf16 %v8834_v28  ;;  %5238 = vrcp.f32 %v2918_v1  ;;  %v8837_v8 = vld [vmem:[#allocation38_spill] sm:$0xff]  ;;  %v8839_v43 = vunpack.c.h.bf16 %v8834_v28 }
 0x2f5   : > { %v3295_v24 = vunpack.c.l.bf16 %v2895_v32  ;;  %v3296_v45 = vunpack.c.h.bf16 %v2895_v32  ;;  %v2888_v35 = vpack.c.bf16 %v2885_v5, %v2887_v47  ;;  %v2901_v18 = vmul.f32 %v5231_v30, %v6676_v0 }
 0x2f6   : > { %v3419_v17 = vmul.f32 %v3291_v52, %v8835_v2  ;;  %v2622_v27 = vpack.c.bf16 %v8837_v8, %v8836_v4  ;;  %v5233_v33 = vpop.eup %5232  ;;  %v3420_v57 = vmul.f32 %v3292_v36, %v8839_v43  ;;  %v8840_v37 = vunpack.c.h.bf16 %v8823_v54  ;;  %v8046_v2 = vpop.f32.mrf.mxu2 }
 0x2f7   : > { %v3423_v13 = vmul.f32 %v3295_v24, %v8838_v59  ;;  %v2624_v32 = vpack.c.bf16 %v7578_v34, %v7574_v58  ;;  %v5235_v5 = vpop.eup %5234  ;;  %v2902_v52 = vpack.c.bf16 %v2899_v10, %v2901_v18  ;;  %v3293_v47 = vunpack.c.l.bf16 %v2888_v35  ;;  %v8048_v4 = vpop.f32.mrf.mxu3  ;;  %v8841_v58 = vld [vmem:[#allocation68_spill] sm:$0xff] }
 0x2f8   : > { %v3424_v50 = vmul.f32 %v3296_v45, %v8840_v37  ;;  %v3294_v1 = vunpack.c.h.bf16 %v2888_v35  ;;  %v2906_v30 = vmul.f32 %v5233_v33, %v6660_v22  ;;  %v2908_v36 = vmul.f32 %v5235_v5, %v6676_v0  ;;  %v3826_v54 = vpop.f32.mrf.mxu0  ;;  %v5237_v45 = vpop.eup %5236 }
 0x2f9   : > { %v3515_v24 = vpack.c.bf16 %v3423_v13, %v3419_v17  ;;  %v2910_v28 = vunpack.c.h.bf16 %v2622_v27  ;;  %v3915_v37 = vpop.f32.mrf.mxu1  ;;  %v3297_v59 = vunpack.c.l.bf16 %v2902_v52  ;;  %v8842_v34 = vunpack.c.l.bf16 %v8841_v58 }
 0x2fa   : > { %v3516_v8 = vpack.c.bf16 %v3424_v50, %v3420_v57  ;;  %v3298_v18 = vunpack.c.h.bf16 %v2902_v52  ;;  %v8843_v35 = vunpack.c.h.bf16 %v8841_v58  ;;  %v2909_v43 = vpack.c.bf16 %v2906_v30, %v2908_v36  ;;  %v5239_v57 = vpop.eup %5238 }
 0x2fb   : > { %v3421_v10 = vmul.f32 %v3293_v47, %v8842_v34  ;;  %3855 = vmatmul.bf16.gmra.mxu0 %v3515_v24  ;;  %v2920_v17 = vmul.f32 %v5237_v45, %v6660_v22  ;;  %v2911_v50 = vunpack.c.l.bf16 %v2622_v27  ;;  %5240 = vrcp.f32 %v2910_v28  ;;  %v8846_v45 = vld [vmem:[#allocation18_spill] sm:$0xff] }
 0x2fc   : > { %v3422_v33 = vmul.f32 %v3294_v1, %v8843_v35  ;;  %3944 = vmatmul.bf16.gmra.mxu1 %v3516_v8  ;;  %v8844_v13 = vunpack.c.l.bf16 %v8825_v7  ;;  %v8845_v21 = vunpack.c.h.bf16 %v8825_v7  ;;  %v2924_v14 = vunpack.c.h.bf16 %v2624_v32 }
 0x2fd   : > { %v2925_v47 = vunpack.c.l.bf16 %v2624_v32  ;;  %v2456_v52 = vunpack.c.h.bf16 %v8010_v62  ;;  %v2922_v1 = vmul.f32 %v5239_v57, %v6676_v0  ;;  %v3176_v24 = vunpack.c.h.bf16 %v8833_v29 }
 0x2fe   : > { %v3425_v5 = vmul.f32 %v3297_v59, %v8844_v13  ;;  %v3426_v15 = vmul.f32 %v3298_v18, %v8845_v21  ;;  %5242 = vrcp.f32 %v2911_v50  ;;  %v3299_v27 = vunpack.c.l.bf16 %v2909_v43 }
 0x2ff   : > { %5244 = vrcp.f32 %v2924_v14  ;;  %v2923_v36 = vpack.c.bf16 %v2920_v17, %v2922_v1  ;;  %v3300_v28 = vunpack.c.h.bf16 %v2909_v43  ;;  %v3177_v59 = vunpack.c.l.bf16 %v8846_v45  ;;  %v8070_v34 = vpop.f32.mrf.mxu3 }
 0x300   : > { %v3517_v30 = vpack.c.bf16 %v3425_v5, %v3421_v10  ;;  %v3518_v8 = vpack.c.bf16 %v3426_v15, %v3422_v33  ;;  %5246 = vrcp.f32 %v2925_v47  ;;  %v3178_v21 = vunpack.c.h.bf16 %v8846_v45  ;;  %v4004_v15 = vpop.f32.mrf.mxu2  ;;  %v8076_v43 = vpop.f32.mrf.mxu0 }
 0x301   : > { %v4000_v7 = vadd.f32 %v8013_v53, %v8026_v41  ;;  %v3824_v32 = vadd.f32 %v7964_v3, %v8018_v60  ;;  %v3827_v58 = vadd.f32 %v7964_v3, %v3826_v54  ;;  %v5241_v14 = vpop.eup %5240  ;;  %v3303_v10 = vunpack.c.l.bf16 %v2923_v36  ;;  %v8078_v53 = vpop.f32.mrf.mxu1  ;;  %v8847_v60 = vld [vmem:[#allocation77_spill] sm:$0xff] }
 0x302   : > { %4033 = vmatmul.bf16.gmra.mxu2 %v3517_v30  ;;  %4122 = vmatmul.bf16.gmra.mxu3 %v3518_v8  ;;  %v3304_v18 = vunpack.c.h.bf16 %v2923_v36  ;;  %v2625_v35 = vpack.c.bf16 %v7582_v42, %v7580_v6  ;;  %v2627_v33 = vpack.c.bf16 %v7606_v20, %v7604_v12  ;;  %v8848_v41 = vunpack.c.l.bf16 %v8847_v60 }
 0x303   : > { %v2913_v17 = vmul.f32 %v5241_v14, %v6660_v22  ;;  %v4089_v50 = vadd.f32 %v8015_v9, %v4000_v7  ;;  %v3913_v57 = vadd.f32 %v8020_v23, %v3824_v32  ;;  %v8849_v5 = vunpack.c.l.bf16 %v8833_v29 }
 0x304   : > { %v3427_v54 = vmul.f32 %v3299_v27, %v8848_v41  ;;  %v5243_v13 = vpop.eup %5242  ;;  %v8850_v42 = vunpack.c.h.bf16 %v8847_v60  ;;  %v2931_v20 = vunpack.c.h.bf16 %v2625_v35  ;;  %v2932_v47 = vunpack.c.l.bf16 %v2625_v35 }
 0x305   : > { %v3431_v6 = vmul.f32 %v3303_v10, %v8849_v5  ;;  %v5245_v1 = vpop.eup %5244  ;;  %v2915_v30 = vmul.f32 %v5243_v13, %v6676_v0  ;;  %4165 = vst [vmem:[%s8001_s11 + $0x10] sm:$0xff] %v4089_v50  ;;  %v4002_v8 = vadd.f32 %v8046_v2, %v3913_v57  ;;  %v2945_v27 = vunpack.c.h.bf16 %v2627_v33  ;;  %v8851_v13 = vld [vmem:[#allocation39_spill] sm:$0xff] }
 0x306   : > { %v3428_v12 = vmul.f32 %v3300_v28, %v8850_v42  ;;  %v2946_v36 = vunpack.c.l.bf16 %v2627_v33  ;;  %v5247_v9 = vpop.eup %5246  ;;  %v3432_v23 = vmul.f32 %v3304_v18, %v3176_v24  ;;  %v2927_v7 = vmul.f32 %v5245_v1, %v6660_v22 }
 0x307   : > { %v3916_v29 = vadd.f32 %v3915_v37, %v3827_v58  ;;  %5248 = vrcp.f32 %v2931_v20  ;;  %v2916_v32 = vpack.c.bf16 %v2913_v17, %v2915_v30  ;;  %v2929_v28 = vmul.f32 %v5247_v9, %v6676_v0  ;;  %v8100_v58 = vpop.f32.mrf.mxu3 }
 0x308   : > { %v4091_v14 = vadd.f32 %v8048_v4, %v4002_v8  ;;  %5250 = vrcp.f32 %v2932_v47  ;;  %v3519_v10 = vpack.c.bf16 %v3431_v6, %v3427_v54  ;;  %v2626_v2 = vpack.c.bf16 %v7600_v26, %v7594_v40  ;;  %v4006_v37 = vpop.f32.mrf.mxu2  ;;  %v3831_v54 = vpop.f32.mrf.mxu0 }
 0x309   : > { %5252 = vrcp.f32 %v2945_v27  ;;  %v2628_v35 = vpack.c.bf16 %v7654_v44, %v7652_v39  ;;  %v2930_v33 = vpack.c.bf16 %v2927_v7, %v2929_v28  ;;  %v3301_v24 = vunpack.c.l.bf16 %v2916_v32  ;;  %v8103_v5 = vpop.f32.mrf.mxu1  ;;  %v8852_v44 = vld [vmem:[#allocation27_spill] sm:$0xff] }
 0x30a   : > { %v3302_v18 = vunpack.c.h.bf16 %v2916_v32  ;;  %4166 = vst [vmem:[%s8001_s11 + $0x18] sm:$0xff] %v4091_v14  ;;  %5254 = vrcp.f32 %v2946_v36  ;;  %v3520_v60 = vpack.c.bf16 %v3432_v23, %v3428_v12  ;;  %v2938_v41 = vunpack.c.h.bf16 %v2626_v2 }
 0x30b   : > { %v2939_v4 = vunpack.c.l.bf16 %v2626_v2  ;;  %v2952_v17 = vunpack.c.h.bf16 %v2628_v35  ;;  %v3305_v50 = vunpack.c.l.bf16 %v2930_v33  ;;  %v3306_v57 = vunpack.c.h.bf16 %v2930_v33  ;;  %3860 = vmatmul.bf16.gmra.mxu0 %v3519_v10 }
 0x30c   : > { %v3183_v40 = vunpack.c.l.bf16 %v8851_v13  ;;  %v2953_v26 = vunpack.c.l.bf16 %v2628_v35  ;;  %3949 = vmatmul.bf16.gmra.mxu1 %v3520_v60  ;;  %v8853_v6 = vunpack.c.l.bf16 %v8852_v44  ;;  %v8854_v20 = vunpack.c.h.bf16 %v8852_v44  ;;  %v8857_v44 = vld [vmem:[#allocation19_spill] sm:$0xff] }
 0x30d   : > { %v5249_v39 = vpop.eup %5248  ;;  %5256 = vrcp.f32 %v2938_v41  ;;  %v4005_v47 = vadd.f32 %v4004_v15, %v3916_v29  ;;  %v3433_v30 = vmul.f32 %v3305_v50, %v3177_v59  ;;  %v3434_v8 = vmul.f32 %v3306_v57, %v3178_v21 }
 0x30e   : > { %v3429_v42 = vmul.f32 %v3301_v24, %v8853_v6  ;;  %v3430_v12 = vmul.f32 %v3302_v18, %v8854_v20  ;;  %v5251_v1 = vpop.eup %5250  ;;  %v2934_v27 = vmul.f32 %v5249_v39, %v6660_v22  ;;  %5258 = vrcp.f32 %v2939_v4 }
 0x30f   : > { %v5253_v36 = vpop.eup %5252  ;;  %v2936_v9 = vmul.f32 %v5251_v1, %v6676_v0  ;;  %5260 = vrcp.f32 %v2952_v17  ;;  %v4094_v23 = vadd.f32 %v8070_v34, %v4005_v47  ;;  %v3829_v15 = vadd.f32 %v7964_v3, %v8076_v43  ;;  %v8855_v34 = vld [vmem:[#allocation22_spill] sm:$0xff]  ;;  %v8130_v24 = vpop.f32.mrf.mxu3 }
 0x310   : > { %v5255_v7 = vpop.eup %5254  ;;  %v3521_v29 = vpack.c.bf16 %v3433_v30, %v3429_v42  ;;  %v3522_v32 = vpack.c.bf16 %v3434_v8, %v3430_v12  ;;  %v2948_v59 = vmul.f32 %v5253_v36, %v6660_v22  ;;  %5262 = vrcp.f32 %v2953_v26  ;;  %v8128_v33 = vpop.f32.mrf.mxu2 }
 0x311   : > { %v2937_v45 = vpack.c.bf16 %v2934_v27, %v2936_v9  ;;  %v2950_v21 = vmul.f32 %v5255_v7, %v6676_v0  ;;  %v3184_v28 = vunpack.c.h.bf16 %v8851_v13  ;;  %4167 = vst [vmem:[%s8001_s11 + $0x20] sm:$0xff] %v4094_v23  ;;  %v3918_v14 = vadd.f32 %v8078_v53, %v3829_v15  ;;  %v8132_v17 = vpop.f32.mrf.mxu0  ;;  %v8856_v13 = vld [vmem:[#allocation31_spill] sm:$0xff] }
 0x312   : > { %4038 = vmatmul.bf16.gmra.mxu2 %v3521_v29  ;;  %4127 = vmatmul.bf16.gmra.mxu3 %v3522_v32  ;;  %v3185_v10 = vunpack.c.l.bf16 %v8855_v34  ;;  %v3186_v43 = vunpack.c.h.bf16 %v8855_v34  ;;  %v3832_v2 = vadd.f32 %v7964_v3, %v3831_v54  ;;  %v2629_v35 = vpack.c.bf16 %v7658_v51, %v7656_v61  ;;  %v8860_v29 = vld [vmem:[#allocation32_spill] sm:$0xff]  ;;  %v8861_v32 = vld [vmem:[#allocation35_spill] sm:$0xff] }
 0x313   : > { %v5257_v18 = vpop.eup %5256  ;;  %v2951_v60 = vpack.c.bf16 %v2948_v59, %v2950_v21  ;;  %v3307_v41 = vunpack.c.l.bf16 %v2937_v45  ;;  %v3308_v4 = vunpack.c.h.bf16 %v2937_v45  ;;  %v4007_v53 = vadd.f32 %v4006_v37, %v3918_v14 }
 0x314   : > { %v5259_v50 = vpop.eup %5258  ;;  %v2941_v57 = vmul.f32 %v5257_v18, %v6660_v22  ;;  %v2631_v54 = vpack.c.bf16 %v8856_v13, %v7684_v46  ;;  %v2959_v26 = vunpack.c.h.bf16 %v2629_v35  ;;  %v2960_v39 = vunpack.c.l.bf16 %v2629_v35  ;;  %v8144_v46 = vpop.f32.mrf.mxu1 }
 0x315   : > { %v5261_v61 = vpop.eup %5260  ;;  %v3311_v51 = vunpack.c.l.bf16 %v2951_v60  ;;  %v8858_v6 = vunpack.c.l.bf16 %v8857_v44  ;;  %v3312_v20 = vunpack.c.h.bf16 %v2951_v60  ;;  %v8859_v12 = vunpack.c.h.bf16 %v8857_v44 }
 0x316   : > { %v5263_v47 = vpop.eup %5262  ;;  %v2943_v1 = vmul.f32 %v5259_v50, %v6676_v0  ;;  %v2955_v30 = vmul.f32 %v5261_v61, %v6660_v22  ;;  %v4096_v8 = vadd.f32 %v8100_v58, %v4007_v53  ;;  %5264 = vrcp.f32 %v2959_v26 }
 0x317   : > { %v3435_v42 = vmul.f32 %v3307_v41, %v8858_v6  ;;  %v3436_v37 = vmul.f32 %v3308_v4, %v8859_v12  ;;  %v3439_v27 = vmul.f32 %v3311_v51, %v3183_v40  ;;  %v3440_v36 = vmul.f32 %v3312_v20, %v3184_v28  ;;  %v8152_v18 = vpop.f32.mrf.mxu3 }
 0x318   : > { %v2957_v9 = vmul.f32 %v5263_v47, %v6676_v0  ;;  %5266 = vrcp.f32 %v2960_v39  ;;  %v2944_v23 = vpack.c.bf16 %v2941_v57, %v2943_v1  ;;  %4168 = vst [vmem:[%s8001_s11 + $0x28] sm:$0xff] %v4096_v8  ;;  %v2973_v15 = vunpack.c.h.bf16 %v2631_v54  ;;  %v4011_v28 = vpop.f32.mrf.mxu2  ;;  %v8862_v57 = vld [vmem:[#allocation30_spill] sm:$0xff] }
 0x319   : > { %v2974_v7 = vunpack.c.l.bf16 %v2631_v54  ;;  %v2630_v59 = vpack.c.bf16 %v8861_v32, %v8860_v29  ;;  %v3523_v45 = vpack.c.bf16 %v3439_v27, %v3435_v42  ;;  %v3524_v21 = vpack.c.bf16 %v3440_v36, %v3436_v37  ;;  %v3836_v53 = vpop.f32.mrf.mxu0  ;;  %v8865_v37 = vld [vmem:[#allocation21_spill] sm:$0xff] }
 0x31a   : > { %v2958_v14 = vpack.c.bf16 %v2955_v30, %v2957_v9  ;;  %v2632_v58 = vpack.c.bf16 %v7731_v49, %v7729_v25  ;;  %v3309_v34 = vunpack.c.l.bf16 %v2944_v23  ;;  %v3310_v35 = vunpack.c.h.bf16 %v2944_v23  ;;  %v8866_v23 = vld [vmem:[#allocation44_spill] sm:$0xff] }
 0x31b   : > { %5268 = vrcp.f32 %v2973_v15  ;;  %v2966_v40 = vunpack.c.h.bf16 %v2630_v59  ;;  %v2967_v4 = vunpack.c.l.bf16 %v2630_v59  ;;  %v8863_v13 = vunpack.c.l.bf16 %v8862_v57  ;;  %3865 = vmatmul.bf16.gmra.mxu0 %v3523_v45  ;;  %v8867_v15 = vld [vmem:[#allocation36_spill] sm:$0xff] }
 0x31c   : > { %v3313_v60 = vunpack.c.l.bf16 %v2958_v14  ;;  %v3314_v41 = vunpack.c.h.bf16 %v2958_v14  ;;  %5270 = vrcp.f32 %v2974_v7  ;;  %v5265_v50 = vpop.eup %5264  ;;  %v3921_v26 = vadd.f32 %v8103_v5, %v3832_v2  ;;  %3954 = vmatmul.bf16.gmra.mxu1 %v3524_v21  ;;  %v3925_v8 = vpop.f32.mrf.mxu1 }
 0x31d   : > { %v3437_v54 = vmul.f32 %v3309_v34, %v8863_v13  ;;  %5272 = vrcp.f32 %v2966_v40  ;;  %v2980_v25 = vunpack.c.h.bf16 %v2632_v58  ;;  %v2962_v51 = vmul.f32 %v5265_v50, %v6660_v22 }
 0x31e   : > { %v5267_v49 = vpop.eup %5266  ;;  %v3441_v39 = vmul.f32 %v3313_v60, %v3185_v10  ;;  %v3442_v61 = vmul.f32 %v3314_v41, %v3186_v43  ;;  %5274 = vrcp.f32 %v2967_v4  ;;  %v8864_v44 = vunpack.c.h.bf16 %v8862_v57 }
 0x31f   : > { %v2964_v42 = vmul.f32 %v5267_v49, %v6676_v0  ;;  %v2981_v20 = vunpack.c.l.bf16 %v2632_v58  ;;  %5276 = vrcp.f32 %v2980_v25  ;;  %v3191_v5 = vunpack.c.l.bf16 %v8865_v37 }
 0x320   : > { %v3438_v6 = vmul.f32 %v3310_v35, %v8864_v44  ;;  %v3525_v12 = vpack.c.bf16 %v3441_v39, %v3437_v54  ;;  %v3192_v2 = vunpack.c.h.bf16 %v8865_v37  ;;  %v4010_v47 = vadd.f32 %v8128_v33, %v3921_v26  ;;  %v4014_v35 = vpop.f32.mrf.mxu2 }
 0x321   : > { %v5269_v1 = vpop.eup %5268  ;;  %v2965_v43 = vpack.c.bf16 %v2962_v51, %v2964_v42  ;;  %5278 = vrcp.f32 %v2981_v20  ;;  %v3834_v30 = vadd.f32 %v7964_v3, %v8132_v17  ;;  %v2633_v7 = vpack.c.bf16 %v8867_v15, %v8866_v23  ;;  %v8873_v15 = vld [vmem:[#allocation40_spill] sm:$0xff] }
 0x322   : > { %v3526_v10 = vpack.c.bf16 %v3442_v61, %v3438_v6  ;;  %v5271_v27 = vpop.eup %5270  ;;  %v2976_v36 = vmul.f32 %v5269_v1, %v6660_v22  ;;  %v4099_v9 = vadd.f32 %v8130_v24, %v4010_v47  ;;  %v2635_v33 = vpack.c.bf16 %v7807_v63, %v7803_v55  ;;  %4043 = vmatmul.bf16.gmra.mxu2 %v3525_v12  ;;  %v8868_v63 = vld [vmem:[#allocation25_spill] sm:$0xff] }
 0x323   : > { %v5273_v29 = vpop.eup %5272  ;;  %v2978_v32 = vmul.f32 %v5271_v27, %v6676_v0  ;;  %v3315_v59 = vunpack.c.l.bf16 %v2965_v43  ;;  %v3316_v17 = vunpack.c.h.bf16 %v2965_v43  ;;  %v3837_v45 = vadd.f32 %v7964_v3, %v3836_v53  ;;  %v4103_v53 = vpop.f32.mrf.mxu3 }
 0x324   : > { %4132 = vmatmul.bf16.gmra.mxu3 %v3526_v10  ;;  %v5275_v21 = vpop.eup %5274  ;;  %v2969_v14 = vmul.f32 %v5273_v29, %v6660_v22  ;;  %4169 = vst [vmem:[%s8001_s11 + $0x30] sm:$0xff] %v4099_v9  ;;  %v3923_v24 = vadd.f32 %v8144_v46, %v3834_v30  ;;  %v2987_v58 = vunpack.c.h.bf16 %v2633_v7  ;;  %v2988_v34 = vunpack.c.l.bf16 %v2633_v7  ;;  %v3838_v46 = vpop.f32.mrf.mxu0  ;;  %v8872_v10 = vld [vmem:[#allocation42_spill] sm:$0xff]  ;;  %v8874_v7 = vld [vmem:[#allocation55_spill] sm:$0xff] }
 0x325   : > { %v5277_v40 = vpop.eup %5276  ;;  %v2979_v55 = vpack.c.bf16 %v2976_v36, %v2978_v32  ;;  %v8869_v60 = vunpack.c.l.bf16 %v8868_v63  ;;  %v8870_v4 = vunpack.c.h.bf16 %v8868_v63  ;;  %v2971_v57 = vmul.f32 %v5275_v21, %v6676_v0  ;;  %v3927_v9 = vpop.f32.mrf.mxu1 }
 0x326   : > { %v2983_v13 = vmul.f32 %v5277_v40, %v6660_v22  ;;  %v4012_v54 = vadd.f32 %v4011_v28, %v3923_v24  ;;  %5280 = vrcp.f32 %v2987_v58  ;;  %v3001_v26 = vunpack.c.h.bf16 %v2635_v33 }
 0x327   : > { %v3443_v41 = vmul.f32 %v3315_v59, %v8869_v60  ;;  %v3444_v50 = vmul.f32 %v3316_v17, %v8870_v4  ;;  %v5279_v25 = vpop.eup %5278  ;;  %v3319_v49 = vunpack.c.l.bf16 %v2979_v55  ;;  %v3320_v39 = vunpack.c.h.bf16 %v2979_v55  ;;  %v8875_v17 = vld [vmem:[#allocation20_spill] sm:$0xff] }
 0x328   : > { %v2972_v61 = vpack.c.bf16 %v2969_v14, %v2971_v57  ;;  %5282 = vrcp.f32 %v2988_v34  ;;  %v2985_v51 = vmul.f32 %v5279_v25, %v6676_v0  ;;  %v4101_v44 = vadd.f32 %v8152_v18, %v4012_v54  ;;  %v4016_v32 = vpop.f32.mrf.mxu2 }
 0x329   : > { %v3002_v6 = vunpack.c.l.bf16 %v2635_v33  ;;  %5284 = vrcp.f32 %v3001_v26  ;;  %v3447_v42 = vmul.f32 %v3319_v49, %v3191_v5  ;;  %v3448_v20 = vmul.f32 %v3320_v39, %v3192_v2 }
 0x32a   : > { %v3317_v12 = vunpack.c.l.bf16 %v2972_v61  ;;  %v3318_v37 = vunpack.c.h.bf16 %v2972_v61  ;;  %v8871_v28 = vunpack.c.l.bf16 %v8010_v62  ;;  %v2986_v1 = vpack.c.bf16 %v2983_v13, %v2985_v51  ;;  %4170 = vst [vmem:[%s8001_s11 + $0x38] sm:$0xff] %v4101_v44  ;;  %v8878_v61 = vld [vmem:[#allocation50_spill] sm:$0xff]  ;;  %v8912_v62 = vld [vmem:[#allocation61_spill] sm:$0xff] }
 0x32b   : > { %v3193_v43 = vunpack.c.l.bf16 %v8872_v10  ;;  %5286 = vrcp.f32 %v3002_v6  ;;  %v3527_v30 = vpack.c.bf16 %v3447_v42, %v3443_v41  ;;  %v3528_v27 = vpack.c.bf16 %v3448_v20, %v3444_v50  ;;  %v4105_v50 = vpop.f32.mrf.mxu3 }
 0x32c   : > { %v8187_v47 = vadd.f32 1.0, %v8871_v28  ;;  %v3194_v36 = vunpack.c.h.bf16 %v8872_v10  ;;  %v3926_v18 = vadd.f32 %v3925_v8, %v3837_v45  ;;  %v5281_v23 = vpop.eup %5280  ;;  %v3321_v5 = vunpack.c.l.bf16 %v2986_v1  ;;  %v8881_v10 = vld [vmem:[#allocation51_spill] sm:$0xff] }
 0x32d   : > { %v3322_v2 = vunpack.c.h.bf16 %v2986_v1  ;;  %v2634_v33 = vpack.c.bf16 %v8874_v7, %v8873_v15  ;;  %v2636_v29 = vpack.c.bf16 %v7818_v48, %v7814_v31  ;;  %v8876_v21 = vunpack.c.l.bf16 %v8875_v17  ;;  %3870 = vmatmul.bf16.gmra.mxu0 %v3527_v30  ;;  %3959 = vmatmul.bf16.gmra.mxu1 %v3528_v27 }
 0x32e   : > { %v5283_v59 = vpop.eup %5282  ;;  %v8877_v24 = vunpack.c.h.bf16 %v8875_v17  ;;  %v2990_v8 = vmul.f32 %v5281_v23, %v6660_v22  ;;  %v4015_v45 = vadd.f32 %v4014_v35, %v3926_v18  ;;  %v3449_v40 = vmul.f32 %v3321_v5, %v3193_v43  ;;  %v3841_v35 = vpop.f32.mrf.mxu0  ;;  %v8882_v23 = vld [vmem:[#allocation46_spill] sm:$0xff]  ;;  %v8883_v5 = vld [vmem:[#allocation64_spill] sm:$0xff]  ;;  %v8886_v17 = vld [vmem:[#allocation45_spill] sm:$0xff] }
 0x32f   : > { %v3445_v14 = vmul.f32 %v3317_v12, %v8876_v21  ;;  %v5285_v34 = vpop.eup %5284  ;;  %v3450_v55 = vmul.f32 %v3322_v2, %v3194_v36  ;;  %v2992_v63 = vmul.f32 %v5283_v59, %v6676_v0  ;;  %v2994_v60 = vunpack.c.h.bf16 %v2634_v33  ;;  %v3930_v18 = vpop.f32.mrf.mxu1  ;;  %v8885_v59 = vld [vmem:[#allocation48_spill] sm:$0xff] }
 0x330   : > { %v3446_v58 = vmul.f32 %v3318_v37, %v8877_v24  ;;  %v3004_v31 = vmul.f32 %v5285_v34, %v6660_v22  ;;  %v2995_v48 = vunpack.c.l.bf16 %v2634_v33  ;;  %v3008_v41 = vunpack.c.h.bf16 %v2636_v29  ;;  %v8879_v37 = vld [vmem:[#allocation43_spill] sm:$0xff] }
 0x331   : > { %v3009_v4 = vunpack.c.l.bf16 %v2636_v29  ;;  %v5287_v57 = vpop.eup %5286  ;;  %v3529_v13 = vpack.c.bf16 %v3449_v40, %v3445_v14  ;;  %v2993_v26 = vpack.c.bf16 %v2990_v8, %v2992_v63  ;;  %5288 = vrcp.f32 %v2994_v60  ;;  %v4019_v14 = vpop.f32.mrf.mxu2 }
 0x332   : > { %v3530_v54 = vpack.c.bf16 %v3450_v55, %v3446_v58  ;;  %v3006_v25 = vmul.f32 %v5287_v57, %v6676_v0  ;;  %5290 = vrcp.f32 %v2995_v48  ;;  %v4104_v49 = vadd.f32 %v4103_v53, %v4015_v45 }
 0x333   : > { %v3839_v39 = vadd.f32 %v7964_v3, %v3838_v46  ;;  %v3199_v51 = vunpack.c.l.bf16 %v8878_v61  ;;  %v3323_v44 = vunpack.c.l.bf16 %v2993_v26  ;;  %v3324_v6 = vunpack.c.h.bf16 %v2993_v26  ;;  %4048 = vmatmul.bf16.gmra.mxu2 %v3529_v13  ;;  %v4108_v48 = vpop.f32.mrf.mxu3 }
 0x334   : > { %5292 = vrcp.f32 %v3008_v41  ;;  %4137 = vmatmul.bf16.gmra.mxu3 %v3530_v54  ;;  %v3007_v42 = vpack.c.bf16 %v3004_v31, %v3006_v25  ;;  %v3200_v20 = vunpack.c.h.bf16 %v8878_v61  ;;  %4171 = vst [vmem:[%s8001_s11 + $0x40] sm:$0xff] %v4104_v49  ;;  %v8880_v28 = vunpack.c.l.bf16 %v8879_v37 }
 0x335   : > { %5294 = vrcp.f32 %v3009_v4  ;;  %v3928_v12 = vadd.f32 %v3927_v9, %v3839_v39  ;;  %v3201_v53 = vunpack.c.l.bf16 %v8881_v10  ;;  %v3842_v46 = vadd.f32 %v7964_v3, %v3841_v35 }
 0x336   : > { %v3451_v1 = vmul.f32 %v3323_v44, %v8880_v28  ;;  %v2637_v43 = vpack.c.bf16 %v7828_v11, %v7826_v16  ;;  %v3327_v30 = vunpack.c.l.bf16 %v3007_v42  ;;  %v3328_v27 = vunpack.c.h.bf16 %v3007_v42  ;;  %v3843_v57 = vpop.f32.mrf.mxu0 }
 0x337   : > { %v4017_v36 = vadd.f32 %v4016_v32, %v3928_v12  ;;  %v2639_v2 = vpack.c.bf16 %v8883_v5, %v8882_v23  ;;  %v5289_v15 = vpop.eup %5288  ;;  %v8884_v9 = vunpack.c.h.bf16 %v8879_v37  ;;  %v2638_v21 = vpack.c.bf16 %v8886_v17, %v8885_v59 }
 0x338   : > { %v3015_v33 = vunpack.c.h.bf16 %v2637_v43  ;;  %v3016_v29 = vunpack.c.l.bf16 %v2637_v43  ;;  %v5291_v24 = vpop.eup %5290  ;;  %v3455_v16 = vmul.f32 %v3327_v30, %v3199_v51  ;;  %v3456_v11 = vmul.f32 %v3328_v27, %v3200_v20  ;;  %v8887_v20 = vld [vmem:[#allocation26_spill] sm:$0xff]  ;;  %v3932_v30 = vpop.f32.mrf.mxu1 }
 0x339   : > { %v3452_v7 = vmul.f32 %v3324_v6, %v8884_v9  ;;  %v2997_v32 = vmul.f32 %v5289_v15, %v6660_v22  ;;  %v4106_v58 = vadd.f32 %v4105_v50, %v4017_v36  ;;  %v2999_v45 = vmul.f32 %v5291_v24, %v6676_v0  ;;  %v4021_v5 = vpop.f32.mrf.mxu2 }
 0x33a   : > { %v5293_v8 = vpop.eup %5292  ;;  %5296 = vrcp.f32 %v3015_v33  ;;  %v3029_v34 = vunpack.c.h.bf16 %v2639_v2  ;;  %v3030_v40 = vunpack.c.l.bf16 %v2639_v2  ;;  %v3531_v63 = vpack.c.bf16 %v3455_v16, %v3451_v1 }
 0x33b   : > { %v5295_v55 = vpop.eup %5294  ;;  %v3011_v60 = vmul.f32 %v5293_v8, %v6660_v22  ;;  %4172 = vst [vmem:[%s8001_s11 + $0x48] sm:$0xff] %v4106_v58  ;;  %v3931_v31 = vadd.f32 %v3930_v18, %v3842_v46  ;;  %5298 = vrcp.f32 %v3016_v29  ;;  %v3000_v41 = vpack.c.bf16 %v2997_v32, %v2999_v45  ;;  %v4110_v16 = vpop.f32.mrf.mxu3  ;;  %v8893_v32 = vld [vmem:[#allocation72_spill] sm:$0xff] }
 0x33c   : > { %v3013_v4 = vmul.f32 %v5295_v55, %v6676_v0  ;;  %5300 = vrcp.f32 %v3029_v34  ;;  %v2640_v50 = vpack.c.bf16 %v7900_v19, %v7898_v38  ;;  %v3532_v13 = vpack.c.bf16 %v3456_v11, %v3452_v7  ;;  %v8890_v7 = vld [vmem:[#allocation71_spill] sm:$0xff]  ;;  %v8892_v11 = vld [vmem:[#allocation52_spill] sm:$0xff] }
 0x33d   : > { %5302 = vrcp.f32 %v3030_v40  ;;  %v3022_v54 = vunpack.c.h.bf16 %v2638_v21  ;;  %v3023_v26 = vunpack.c.l.bf16 %v2638_v21  ;;  %v3325_v25 = vunpack.c.l.bf16 %v3000_v41  ;;  %3875 = vmatmul.bf16.gmra.mxu0 %v3531_v63  ;;  %v8891_v21 = vld [vmem:[#allocation57_spill] sm:$0xff] }
 0x33e   : > { %v3014_v35 = vpack.c.bf16 %v3011_v60, %v3013_v4  ;;  %v3326_v49 = vunpack.c.h.bf16 %v3000_v41  ;;  %v3036_v39 = vunpack.c.h.bf16 %v2640_v50  ;;  %v3202_v61 = vunpack.c.h.bf16 %v8881_v10  ;;  %3964 = vmatmul.bf16.gmra.mxu1 %v3532_v13  ;;  %v3846_v55 = vpop.f32.mrf.mxu0 }
 0x33f   : > { %5304 = vrcp.f32 %v3022_v54  ;;  %v3037_v51 = vunpack.c.l.bf16 %v2640_v50  ;;  %v4020_v44 = vadd.f32 %v4019_v14, %v3931_v31  ;;  %v8888_v38 = vunpack.c.l.bf16 %v8887_v20  ;;  %v8894_v50 = vld [vmem:[#allocation41_spill] sm:$0xff] }
 0x340   : > { %v5297_v6 = vpop.eup %5296  ;;  %v3329_v42 = vunpack.c.l.bf16 %v3014_v35  ;;  %v3330_v12 = vunpack.c.h.bf16 %v3014_v35  ;;  %v8889_v37 = vunpack.c.h.bf16 %v8887_v20  ;;  %5306 = vrcp.f32 %v3023_v26  ;;  %v8896_v26 = vld [vmem:[#allocation59_spill] sm:$0xff] }
 0x341   : > { %v3453_v19 = vmul.f32 %v3325_v25, %v8888_v38  ;;  %v5299_v1 = vpop.eup %5298  ;;  %v3018_v46 = vmul.f32 %v5297_v6, %v6660_v22  ;;  %v4109_v10 = vadd.f32 %v4108_v48, %v4020_v44  ;;  %v3844_v43 = vadd.f32 %v7964_v3, %v3843_v57 }
 0x342   : > { %v3454_v28 = vmul.f32 %v3326_v49, %v8889_v37  ;;  %v5301_v27 = vpop.eup %5300  ;;  %v3457_v36 = vmul.f32 %v3329_v42, %v3201_v53  ;;  %v3458_v18 = vmul.f32 %v3330_v12, %v3202_v61  ;;  %v3020_v23 = vmul.f32 %v5299_v1, %v6676_v0  ;;  %v8257_v12 = vld [vmem:[%s8392_s6] ss:$0 sm:$0xff] }
 0x343   : > { %5308 = vrcp.f32 %v3036_v39  ;;  %v5303_v2 = vpop.eup %5302  ;;  %v3032_v15 = vmul.f32 %v5301_v27, %v6660_v22  ;;  %4173 = vst [vmem:[%s8001_s11 + $0x50] sm:$0xff] %v4109_v10  ;;  %v3933_v9 = vadd.f32 %v3932_v30, %v3844_v43  ;;  %v2641_v33 = vpack.c.bf16 %v8890_v7, %v7902_v56 }
 0x344   : > { %5310 = vrcp.f32 %v3037_v51  ;;  %v3533_v29 = vpack.c.bf16 %v3457_v36, %v3453_v19  ;;  %v3534_v59 = vpack.c.bf16 %v3458_v18, %v3454_v28  ;;  %v3021_v3 = vpack.c.bf16 %v3018_v46, %v3020_v23  ;;  %v3935_v28 = vpop.f32.mrf.mxu1  ;;  %v8898_v36 = vld [vmem:[#allocation54_spill] sm:$0xff]  ;;  %v8899_v18 = vld [vmem:[#allocation56_spill] sm:$0xff] }
 0x345   : > { %v3034_v17 = vmul.f32 %v5303_v2, %v6676_v0  ;;  %v5305_v53 = vpop.eup %5304  ;;  %v3207_v14 = vunpack.c.l.bf16 %v8891_v21  ;;  %v4022_v24 = vadd.f32 %v4021_v5, %v3933_v9  ;;  %v2643_v58 = vpack.c.bf16 %v8893_v32, %v8892_v11  ;;  %v8900_v5 = vld [vmem:[#allocation78_spill] sm:$0xff] }
 0x346   : > { %v3043_v8 = vunpack.c.h.bf16 %v2641_v33  ;;  %4053 = vmatmul.bf16.gmra.mxu2 %v3533_v29  ;;  %4142 = vmatmul.bf16.gmra.mxu3 %v3534_v59  ;;  %v3331_v34 = vunpack.c.l.bf16 %v3021_v3  ;;  %v3208_v56 = vunpack.c.h.bf16 %v8891_v21  ;;  %v3332_v40 = vunpack.c.h.bf16 %v3021_v3  ;;  %v5307_v63 = vpop.eup %5306  ;;  %v8901_v2 = vld [vmem:[#allocation74_spill] sm:$0xff] }
 0x347   : > { %v3035_v45 = vpack.c.bf16 %v3032_v15, %v3034_v17  ;;  %v3025_v60 = vmul.f32 %v5305_v53, %v6660_v22  ;;  %v4111_v31 = vadd.f32 %v4110_v16, %v4022_v24  ;;  %v3044_v48 = vunpack.c.l.bf16 %v2641_v33  ;;  %v8902_v17 = vld [vmem:[#allocation65_spill] sm:$0xff] }
 0x348   : > { %5312 = vrcp.f32 %v3043_v8  ;;  %v8895_v57 = vunpack.c.l.bf16 %v8894_v50  ;;  %v3209_v35 = vunpack.c.l.bf16 %v8896_v26  ;;  %v3027_v49 = vmul.f32 %v5307_v63, %v6676_v0 }
 0x349   : > { %v5309_v41 = vpop.eup %5308  ;;  %v3335_v4 = vunpack.c.l.bf16 %v3035_v45  ;;  %v3336_v54 = vunpack.c.h.bf16 %v3035_v45  ;;  %4174 = vst [vmem:[%s8001_s11 + $0x58] sm:$0xff] %v4111_v31  ;;  %5314 = vrcp.f32 %v3044_v48  ;;  %v3057_v61 = vunpack.c.h.bf16 %v2643_v58  ;;  %v4113_v16 = vpop.f32.mrf.mxu3 }
 0x34a   : > { %v3459_v13 = vmul.f32 %v3331_v34, %v8895_v57  ;;  %v5311_v25 = vpop.eup %5310  ;;  %v3039_v39 = vmul.f32 %v5309_v41, %v6660_v22  ;;  %v3058_v42 = vunpack.c.l.bf16 %v2643_v58  ;;  %v8897_v20 = vunpack.c.h.bf16 %v8894_v50  ;;  %v3848_v45 = vpop.f32.mrf.mxu0 }
 0x34b   : > { %v3463_v51 = vmul.f32 %v3335_v4, %v3207_v14  ;;  %v3464_v44 = vmul.f32 %v3336_v54, %v3208_v56  ;;  %v3041_v6 = vmul.f32 %v5311_v25, %v6676_v0  ;;  %v3028_v19 = vpack.c.bf16 %v3025_v60, %v3027_v49  ;;  %v4024_v24 = vpop.f32.mrf.mxu2  ;;  %v8903_v60 = vld [vmem:[#allocation53_spill] sm:$0xff]  ;;  %v8906_v49 = vld [vmem:[#allocation75_spill] sm:$0xff] }
 0x34c   : > { %v3460_v38 = vmul.f32 %v3332_v40, %v8897_v20  ;;  %v3847_v37 = vadd.f32 %v8257_v12, %v3846_v55  ;;  %5316 = vrcp.f32 %v3057_v61  ;;  %v3210_v10 = vunpack.c.h.bf16 %v8896_v26  ;;  %v8909_v20 = vld [vmem:[#allocation58_spill] sm:$0xff] }
 0x34d   : > { %v3535_v1 = vpack.c.bf16 %v3463_v51, %v3459_v13  ;;  %v3042_v46 = vpack.c.bf16 %v3039_v39, %v3041_v6  ;;  %5318 = vrcp.f32 %v3058_v42  ;;  %v3333_v27 = vunpack.c.l.bf16 %v3028_v19  ;;  %v8907_v39 = vld [vmem:[#allocation80_spill] sm:$0xff]  ;;  %v3937_v6 = vpop.f32.mrf.mxu1  ;;  %v8908_v42 = vld [vmem:[#allocation62_spill] sm:$0xff] }
 0x34e   : > { %v5313_v43 = vpop.eup %5312  ;;  %v3536_v30 = vpack.c.bf16 %v3464_v44, %v3460_v38  ;;  %v2642_v23 = vpack.c.bf16 %v8899_v18, %v8898_v36  ;;  %v2644_v15 = vpack.c.bf16 %v8901_v2, %v8900_v5  ;;  %v3334_v7 = vunpack.c.h.bf16 %v3028_v19 }
 0x34f   : > { %v3337_v9 = vunpack.c.l.bf16 %v3042_v46  ;;  %v3338_v33 = vunpack.c.h.bf16 %v3042_v46  ;;  %v3046_v29 = vmul.f32 %v5313_v43, %v6660_v22  ;;  %v5315_v59 = vpop.eup %5314  ;;  %v3936_v3 = vadd.f32 %v3935_v28, %v3847_v37  ;;  %3880 = vmatmul.bf16.gmra.mxu0 %v3535_v1 }
 0x350   : > { %v3215_v53 = vunpack.c.l.bf16 %v8902_v17  ;;  %v3050_v21 = vunpack.c.h.bf16 %v2642_v23  ;;  %v3051_v14 = vunpack.c.l.bf16 %v2642_v23  ;;  %3969 = vmatmul.bf16.gmra.mxu1 %v3536_v30  ;;  %v3048_v58 = vmul.f32 %v5315_v59, %v6676_v0 }
 0x351   : > { %v3465_v11 = vmul.f32 %v3337_v9, %v3209_v35  ;;  %v3466_v32 = vmul.f32 %v3338_v33, %v3210_v10  ;;  %v3064_v8 = vunpack.c.h.bf16 %v2644_v15  ;;  %v3216_v56 = vunpack.c.h.bf16 %v8902_v17 }
 0x352   : > { %v5317_v34 = vpop.eup %5316  ;;  %5320 = vrcp.f32 %v3050_v21  ;;  %v3065_v40 = vunpack.c.l.bf16 %v2644_v15  ;;  %v4025_v55 = vadd.f32 %v4024_v24, %v3936_v3  ;;  %v8904_v31 = vunpack.c.l.bf16 %v8903_v60  ;;  %v8910_v15 = vld [vmem:[#allocation47_spill] sm:$0xff]  ;;  %v8911_v21 = vld [vmem:[#allocation81_spill] sm:$0xff] }
 0x353   : > { %v5319_v63 = vpop.eup %5318  ;;  %v8905_v41 = vunpack.c.h.bf16 %v8903_v60  ;;  %v3049_v50 = vpack.c.bf16 %v3046_v29, %v3048_v58  ;;  %v3060_v57 = vmul.f32 %v5317_v34, %v6660_v22  ;;  %5322 = vrcp.f32 %v3051_v14  ;;  %v4026_v30 = vpop.f32.mrf.mxu2  ;;  %v8913_v24 = vld [vmem:[#allocation63_spill] sm:$0xff] }
 0x354   : > { %v3461_v48 = vmul.f32 %v3333_v27, %v8904_v31  ;;  %v3062_v13 = vmul.f32 %v5319_v63, %v6676_v0  ;;  %v4114_v54 = vadd.f32 %v4113_v16, %v4025_v55  ;;  %v3849_v26 = vadd.f32 %v8257_v12, %v3848_v45  ;;  %v4115_v29 = vpop.f32.mrf.mxu3  ;;  %v8916_v63 = vld [vmem:[#allocation67_spill] sm:$0xff] }
 0x355   : > { %v3462_v4 = vmul.f32 %v3334_v7, %v8905_v41  ;;  %5324 = vrcp.f32 %v3064_v8  ;;  %v2645_v61 = vpack.c.bf16 %v8907_v39, %v8906_v49  ;;  %v3339_v44 = vunpack.c.l.bf16 %v3049_v50 }
 0x356   : > { %v3537_v35 = vpack.c.bf16 %v3465_v11, %v3461_v48  ;;  %v3063_v51 = vpack.c.bf16 %v3060_v57, %v3062_v13  ;;  %5326 = vrcp.f32 %v3065_v40  ;;  %4175 = vst [vmem:[%s8001_s11 + $0x60] sm:$0xff] %v4114_v54  ;;  %v2647_v38 = vpack.c.bf16 %v8909_v20, %v8908_v42 }
 0x357   : > { %v3538_v25 = vpack.c.bf16 %v3466_v32, %v3462_v4  ;;  %v3340_v19 = vunpack.c.h.bf16 %v3049_v50  ;;  %v3938_v37 = vadd.f32 %v3937_v6, %v3849_v26  ;;  %v3071_v28 = vunpack.c.h.bf16 %v2645_v61 }
 0x358   : > { %4058 = vmatmul.bf16.gmra.mxu2 %v3537_v35  ;;  %v3072_v1 = vunpack.c.l.bf16 %v2645_v61  ;;  %v5321_v46 = vpop.eup %5320  ;;  %v3343_v10 = vunpack.c.l.bf16 %v3063_v51  ;;  %v3344_v43 = vunpack.c.h.bf16 %v3063_v51  ;;  %v3085_v27 = vunpack.c.h.bf16 %v2647_v38 }
 0x359   : > { %4147 = vmatmul.bf16.gmra.mxu3 %v3538_v25  ;;  %v3086_v36 = vunpack.c.l.bf16 %v2647_v38  ;;  %v2584_v18 = vadd.f32 1.0, %v2456_v52  ;;  %v3053_v23 = vmul.f32 %v5321_v46, %v6660_v22  ;;  %v4027_v5 = vadd.f32 %v4026_v30, %v3938_v37  ;;  %v5323_v2 = vpop.eup %5322 }
 0x35a   : > { %5328 = vrcp.f32 %v3071_v28  ;;  %v3214_v9 = vunpack.c.h.bf16 %v8910_v15  ;;  %v3471_v7 = vmul.f32 %v3343_v10, %v3215_v53  ;;  %v3472_v33 = vmul.f32 %v3344_v43, %v3216_v56 }
 0x35b   : > { %5330 = vrcp.f32 %v3072_v1  ;;  %v5325_v59 = vpop.eup %5324  ;;  %v3055_v3 = vmul.f32 %v5323_v2, %v6676_v0  ;;  %v4116_v17 = vadd.f32 %v4115_v29, %v4027_v5  ;;  %v2646_v52 = vpack.c.bf16 %v8912_v62, %v8911_v21  ;;  %v8919_v21 = vld [vmem:[#allocation69_spill] sm:$0xff] }
 0x35c   : > { %5332 = vrcp.f32 %v3085_v27  ;;  %v5327_v14 = vpop.eup %5326  ;;  %v8914_v16 = vunpack.c.l.bf16 %v8913_v24  ;;  %v8915_v32 = vunpack.c.h.bf16 %v8913_v24  ;;  %v3067_v53 = vmul.f32 %v5325_v59, %v6660_v22 }
 0x35d   : > { %5334 = vrcp.f32 %v3086_v36  ;;  %v3056_v8 = vpack.c.bf16 %v3053_v23, %v3055_v3  ;;  %v3069_v45 = vmul.f32 %v5327_v14, %v6676_v0  ;;  %4176 = vst [vmem:[%s8001_s11 + $0x68] sm:$0xff] %v4116_v17  ;;  %v2648_v34 = vpack.c.bf16 %v2584_v18, %v8187_v47 }
 0x35e   : > { %v3467_v11 = vmul.f32 %v3339_v44, %v8914_v16  ;;  %v3468_v58 = vmul.f32 %v3340_v19, %v8915_v32  ;;  %v3078_v56 = vunpack.c.h.bf16 %v2646_v52  ;;  %v3217_v60 = vunpack.c.l.bf16 %v8916_v63  ;;  %v3851_v19 = vpop.f32.mrf.mxu0 }
 0x35f   : > { %v3079_v31 = vunpack.c.l.bf16 %v2646_v52  ;;  %v3070_v41 = vpack.c.bf16 %v3067_v53, %v3069_v45  ;;  %v3341_v4 = vunpack.c.l.bf16 %v3056_v8  ;;  %v3342_v50 = vunpack.c.h.bf16 %v3056_v8  ;;  %v8920_v45 = vld [vmem:[#allocation79_spill] sm:$0xff] }
 0x360   : > { %v3539_v40 = vpack.c.bf16 %v3471_v7, %v3467_v11  ;;  %v3540_v55 = vpack.c.bf16 %v3472_v33, %v3468_v58  ;;  %v5329_v48 = vpop.eup %5328  ;;  %5336 = vrcp.f32 %v3078_v56  ;;  %v3218_v13 = vunpack.c.h.bf16 %v8916_v63  ;;  %v3940_v33 = vpop.f32.mrf.mxu1 }
 0x361   : > { %v5331_v57 = vpop.eup %5330  ;;  %5338 = vrcp.f32 %v3079_v31  ;;  %v3092_v54 = vunpack.c.h.bf16 %v2648_v34  ;;  %v3093_v26 = vunpack.c.l.bf16 %v2648_v34  ;;  %v3345_v47 = vunpack.c.l.bf16 %v3070_v41 }
 0x362   : > { %v5333_v35 = vpop.eup %5332  ;;  %3885 = vmatmul.bf16.gmra.mxu0 %v3539_v40  ;;  %3974 = vmatmul.bf16.gmra.mxu1 %v3540_v55  ;;  %v8917_v25 = vunpack.c.l.bf16 %v8910_v15  ;;  %v3346_v39 = vunpack.c.h.bf16 %v3070_v41  ;;  %v3074_v61 = vmul.f32 %v5329_v48, %v6660_v22  ;;  %v3470_v44 = vmul.f32 %v3342_v50, %v3214_v9  ;;  %v8918_v15 = vld [vmem:[#allocation73_spill] sm:$0xff] }
 0x363   : > { %v5335_v51 = vpop.eup %5334  ;;  %v3076_v6 = vmul.f32 %v5331_v57, %v6676_v0  ;;  %v3088_v42 = vmul.f32 %v5333_v35, %v6660_v22  ;;  %5340 = vrcp.f32 %v3092_v54  ;;  %v3473_v20 = vmul.f32 %v3345_v47, %v3217_v60 }
 0x364   : > { %v3469_v49 = vmul.f32 %v3341_v4, %v8917_v25  ;;  %v3474_v38 = vmul.f32 %v3346_v39, %v3218_v13  ;;  %v3090_v37 = vmul.f32 %v5335_v51, %v6676_v0  ;;  %5342 = vrcp.f32 %v3093_v26  ;;  %v8921_v13 = vld [vmem:[#allocation49_spill] sm:$0xff] }
 0x365   : > { %v3077_v10 = vpack.c.bf16 %v3074_v61, %v3076_v6  ;;  %v3852_v2 = vadd.f32 %v8257_v12, %v3851_v19  ;;  %v3223_v9 = vunpack.c.l.bf16 %v8918_v15  ;;  %v3224_v59 = vunpack.c.h.bf16 %v8918_v15 }
 0x366   : > { %v5337_v28 = vpop.eup %5336  ;;  %v3541_v1 = vpack.c.bf16 %v3473_v20, %v3469_v49  ;;  %v3542_v46 = vpack.c.bf16 %v3474_v38, %v3470_v44  ;;  %v3091_v43 = vpack.c.bf16 %v3088_v42, %v3090_v37  ;;  %v3219_v62 = vunpack.c.l.bf16 %v8919_v21  ;;  %v3853_v40 = vpop.f32.mrf.mxu0 }
 0x367   : > { %v5339_v30 = vpop.eup %5338  ;;  %v3081_v18 = vmul.f32 %v5337_v28, %v6660_v22  ;;  %v3347_v29 = vunpack.c.l.bf16 %v3077_v10  ;;  %v3348_v3 = vunpack.c.h.bf16 %v3077_v10  ;;  %v3220_v14 = vunpack.c.h.bf16 %v8919_v21 }
 0x368   : > { %4063 = vmatmul.bf16.gmra.mxu2 %v3541_v1  ;;  %v3351_v27 = vunpack.c.l.bf16 %v3091_v43  ;;  %v3352_v36 = vunpack.c.h.bf16 %v3091_v43  ;;  %v3083_v23 = vmul.f32 %v5339_v30, %v6676_v0  ;;  %v3941_v32 = vadd.f32 %v3940_v33, %v3852_v2  ;;  %v4029_v56 = vpop.f32.mrf.mxu2  ;;  %v3942_v39 = vpop.f32.mrf.mxu1 }
 0x369   : > { %4152 = vmatmul.bf16.gmra.mxu3 %v3542_v46  ;;  %v5341_v5 = vpop.eup %5340  ;;  %v3475_v53 = vmul.f32 %v3347_v29, %v3219_v62  ;;  %v3476_v8 = vmul.f32 %v3348_v3, %v3220_v14  ;;  %v3225_v34 = vunpack.c.l.bf16 %v8920_v45  ;;  %v3854_v57 = vadd.f32 %v8257_v12, %v3853_v40 }
 0x36a   : > { %v5343_v7 = vpop.eup %5342  ;;  %v3095_v17 = vmul.f32 %v5341_v5, %v6660_v22  ;;  %v3479_v24 = vmul.f32 %v3351_v27, %v3223_v9  ;;  %v3480_v16 = vmul.f32 %v3352_v36, %v3224_v59  ;;  %v3084_v11 = vpack.c.bf16 %v3081_v18, %v3083_v23 }
 0x36b   : > { %v3097_v52 = vmul.f32 %v5343_v7, %v6676_v0  ;;  %v3226_v22 = vunpack.c.h.bf16 %v8920_v45  ;;  %v4030_v60 = vadd.f32 %v4029_v56, %v3941_v32  ;;  %v4118_v0 = vpop.f32.mrf.mxu3  ;;  %v3221_v54 = vunpack.c.l.bf16 %v8921_v13 }
 0x36c   : > { %v3543_v31 = vpack.c.bf16 %v3479_v24, %v3475_v53  ;;  %v3544_v48 = vpack.c.bf16 %v3480_v16, %v3476_v8  ;;  %v3349_v41 = vunpack.c.l.bf16 %v3084_v11  ;;  %v3350_v4 = vunpack.c.h.bf16 %v3084_v11 }
 0x36d   : > { %v3098_v58 = vpack.c.bf16 %v3095_v17, %v3097_v52  ;;  %v4119_v50 = vadd.f32 %v4118_v0, %v4030_v60  ;;  %v3222_v26 = vunpack.c.h.bf16 %v8921_v13  ;;  %v3943_v61 = vadd.f32 %v3942_v39, %v3854_v57 }
 0x36e   : > { %v3477_v25 = vmul.f32 %v3349_v41, %v3221_v54 }
 0x36f   : > { %v3353_v55 = vunpack.c.l.bf16 %v3098_v58  ;;  %v3354_v63 = vunpack.c.h.bf16 %v3098_v58  ;;  %4177 = vst [vmem:[%s8001_s11 + $0x70] sm:$0xff] %v4119_v50  ;;  %v3478_v49 = vmul.f32 %v3350_v4, %v3222_v26 }
 0x370   : > { %v4031_v6 = vpop.f32.mrf.mxu2 }
 0x371   : > { %v3481_v35 = vmul.f32 %v3353_v55, %v3225_v34  ;;  %v3482_v47 = vmul.f32 %v3354_v63, %v3226_v22  ;;  %v4032_v42 = vadd.f32 %v4031_v6, %v3943_v61 }
 0x372   : > { %3890 = vmatmul.bf16.gmra.mxu0 %v3543_v31  ;;  %3979 = vmatmul.bf16.gmra.mxu1 %v3544_v48 }
 0x373   : > { %v3545_v51 = vpack.c.bf16 %v3481_v35, %v3477_v25  ;;  %v3546_v44 = vpack.c.bf16 %v3482_v47, %v3478_v49  ;;  %v4120_v20 = vpop.f32.mrf.mxu3 }
 0x374   : > { %v4121_v38 = vadd.f32 %v4120_v20, %v4032_v42 }
 0x376   : > { %4178 = vst [vmem:[%s8001_s11 + $0x78] sm:$0xff] %v4121_v38 }
 0x378   : > { %4068 = vmatmul.bf16.gmra.mxu2 %v3545_v51  ;;  %v3856_v19 = vpop.f32.mrf.mxu0 }
 0x379   : > { %4157 = vmatmul.bf16.gmra.mxu3 %v3546_v44  ;;  %v3945_v37 = vpop.f32.mrf.mxu1  ;;  %v3857_v28 = vadd.f32 %v8257_v12, %v3856_v19 }
 0x37b   : > { %v3946_v10 = vadd.f32 %v3945_v37, %v3857_v28 }
 0x380   : > { %v3858_v1 = vpop.f32.mrf.mxu0 }
 0x381   : > { %v3947_v46 = vpop.f32.mrf.mxu1  ;;  %v3859_v18 = vadd.f32 %v8257_v12, %v3858_v1 }
 0x383   : > { %v3948_v2 = vadd.f32 %v3947_v46, %v3859_v18 }
 0x385   : > { %v4034_v43 = vpop.f32.mrf.mxu2  ;;  %v4123_v30 = vpop.f32.mrf.mxu3 }
 0x386   : > { %v4035_v27 = vadd.f32 %v4034_v43, %v3946_v10 }
 0x388   : > { %v4124_v36 = vadd.f32 %v4123_v30, %v4035_v27  ;;  %v3861_v23 = vpop.f32.mrf.mxu0 }
 0x389   : > { %v3950_v5 = vpop.f32.mrf.mxu1  ;;  %v3862_v29 = vadd.f32 %v8257_v12, %v3861_v23 }
 0x38a   : > { %4179 = vst [vmem:[%s8001_s11 + $0x80] sm:$0xff] %v4124_v36 }
 0x38b   : > { %v3951_v17 = vadd.f32 %v3950_v5, %v3862_v29 }
 0x38d   : > { %v4036_v15 = vpop.f32.mrf.mxu2  ;;  %v4125_v9 = vpop.f32.mrf.mxu3 }
 0x38e   : > { %v4037_v7 = vadd.f32 %v4036_v15, %v3948_v2 }
 0x390   : > { %v4126_v33 = vadd.f32 %v4125_v9, %v4037_v7  ;;  %v3863_v59 = vpop.f32.mrf.mxu0 }
 0x391   : > { %v3952_v3 = vpop.f32.mrf.mxu1  ;;  %v3864_v24 = vadd.f32 %v8257_v12, %v3863_v59 }
 0x392   : > { %4180 = vst [vmem:[%s8001_s11 + $0x88] sm:$0xff] %v4126_v33 }
 0x393   : > { %v3953_v32 = vadd.f32 %v3952_v3, %v3864_v24 }
 0x395   : > { %v4039_v21 = vpop.f32.mrf.mxu2  ;;  %v4128_v62 = vpop.f32.mrf.mxu3 }
 0x396   : > { %v4040_v52 = vadd.f32 %v4039_v21, %v3951_v17 }
 0x398   : > { %v4129_v14 = vadd.f32 %v4128_v62, %v4040_v52  ;;  %v3866_v16 = vpop.f32.mrf.mxu0 }
 0x399   : > { %v3955_v11 = vpop.f32.mrf.mxu1  ;;  %v3867_v34 = vadd.f32 %v8257_v12, %v3866_v16 }
 0x39a   : > { %4181 = vst [vmem:[%s8001_s11 + $0x90] sm:$0xff] %v4129_v14 }
 0x39b   : > { %v3956_v55 = vadd.f32 %v3955_v11, %v3867_v34 }
 0x39d   : > { %v4041_v58 = vpop.f32.mrf.mxu2  ;;  %v4130_v53 = vpop.f32.mrf.mxu3 }
 0x39e   : > { %v4042_v8 = vadd.f32 %v4041_v58, %v3953_v32 }
 0x3a0   : > { %v4131_v45 = vadd.f32 %v4130_v53, %v4042_v8  ;;  %v3868_v56 = vpop.f32.mrf.mxu0 }
 0x3a1   : > { %v3957_v40 = vpop.f32.mrf.mxu1  ;;  %v3869_v31 = vadd.f32 %v8257_v12, %v3868_v56 }
 0x3a2   : > { %4182 = vst [vmem:[%s8001_s11 + $0x98] sm:$0xff] %v4131_v45 }
 0x3a3   : > { %v3958_v4 = vadd.f32 %v3957_v40, %v3869_v31 }
 0x3a5   : > { %v4044_v22 = vpop.f32.mrf.mxu2 }
 0x3a6   : > { %v4045_v60 = vadd.f32 %v4044_v22, %v3956_v55 }
 0x3a7   : > { %v4133_v63 = vpop.f32.mrf.mxu3 }
 0x3a8   : > { %v4134_v0 = vadd.f32 %v4133_v63, %v4045_v60 }
 0x3aa   : > { %4183 = vst [vmem:[%s8001_s11 + $0xa0] sm:$0xff] %v4134_v0  ;;  %v3871_v48 = vpop.f32.mrf.mxu0  ;;  %v3960_v41 = vpop.f32.mrf.mxu1 }
 0x3ab   : > { %v3872_v26 = vadd.f32 %v8257_v12, %v3871_v48 }
 0x3ad   : > { %v4046_v50 = vpop.f32.mrf.mxu2  ;;  %v3961_v25 = vadd.f32 %v3960_v41, %v3872_v26 }
 0x3ae   : > { %v4047_v13 = vadd.f32 %v4046_v50, %v3958_v4 }
 0x3af   : > { %v4135_v57 = vpop.f32.mrf.mxu3 }
 0x3b0   : > { %v4136_v54 = vadd.f32 %v4135_v57, %v4047_v13 }
 0x3b2   : > { %4184 = vst [vmem:[%s8001_s11 + $0xa8] sm:$0xff] %v4136_v54  ;;  %v3873_v35 = vpop.f32.mrf.mxu0  ;;  %v3962_v47 = vpop.f32.mrf.mxu1 }
 0x3b3   : > { %v3874_v44 = vadd.f32 %v8257_v12, %v3873_v35 }
 0x3b5   : > { %v3963_v20 = vadd.f32 %v3962_v47, %v3874_v44 }
 0x3b6   : > { %v4049_v49 = vpop.f32.mrf.mxu2 }
 0x3b7   : > { %v4138_v39 = vpop.f32.mrf.mxu3  ;;  %v4050_v61 = vadd.f32 %v4049_v49, %v3961_v25 }
 0x3b9   : > { %v4139_v51 = vadd.f32 %v4138_v39, %v4050_v61 }
 0x3ba   : > { %v3876_v6 = vpop.f32.mrf.mxu0 }
 0x3bb   : > { %4185 = vst [vmem:[%s8001_s11 + $0xb0] sm:$0xff] %v4139_v51  ;;  %v3965_v42 = vpop.f32.mrf.mxu1  ;;  %v3877_v1 = vadd.f32 %v8257_v12, %v3876_v6 }
 0x3bd   : > { %v3966_v43 = vadd.f32 %v3965_v42, %v3877_v1 }
 0x3be   : > { %v4051_v38 = vpop.f32.mrf.mxu2 }
 0x3bf   : > { %v4140_v19 = vpop.f32.mrf.mxu3  ;;  %v4052_v37 = vadd.f32 %v4051_v38, %v3963_v20 }
 0x3c1   : > { %v4141_v28 = vadd.f32 %v4140_v19, %v4052_v37 }
 0x3c2   : > { %v3878_v46 = vpop.f32.mrf.mxu0 }
 0x3c3   : > { %4186 = vst [vmem:[%s8001_s11 + $0xb8] sm:$0xff] %v4141_v28  ;;  %v3967_v10 = vpop.f32.mrf.mxu1  ;;  %v3879_v23 = vadd.f32 %v8257_v12, %v3878_v46 }
 0x3c5   : > { %v3968_v15 = vadd.f32 %v3967_v10, %v3879_v23 }
 0x3c9   : > { %v4054_v30 = vpop.f32.mrf.mxu2  ;;  %v4143_v27 = vpop.f32.mrf.mxu3 }
 0x3ca   : > { %v4055_v36 = vadd.f32 %v4054_v30, %v3966_v43 }
 0x3cc   : > { %v4144_v18 = vadd.f32 %v4143_v27, %v4055_v36  ;;  %v3881_v5 = vpop.f32.mrf.mxu0 }
 0x3cd   : > { %v3970_v2 = vpop.f32.mrf.mxu1  ;;  %v3882_v59 = vadd.f32 %v8257_v12, %v3881_v5 }
 0x3ce   : > { %4187 = vst [vmem:[%s8001_s11 + $0xc0] sm:$0xff] %v4144_v18 }
 0x3cf   : > { %v3971_v21 = vadd.f32 %v3970_v2, %v3882_v59 }
 0x3d1   : > { %v4056_v9 = vpop.f32.mrf.mxu2  ;;  %v4145_v7 = vpop.f32.mrf.mxu3 }
 0x3d2   : > { %v4057_v33 = vadd.f32 %v4056_v9, %v3968_v15 }
 0x3d4   : > { %v4146_v29 = vadd.f32 %v4145_v7, %v4057_v33  ;;  %v3883_v3 = vpop.f32.mrf.mxu0 }
 0x3d5   : > { %v3972_v17 = vpop.f32.mrf.mxu1  ;;  %v3884_v16 = vadd.f32 %v8257_v12, %v3883_v3 }
 0x3d6   : > { %4188 = vst [vmem:[%s8001_s11 + $0xc8] sm:$0xff] %v4146_v29 }
 0x3d7   : > { %v3973_v32 = vadd.f32 %v3972_v17, %v3884_v16 }
 0x3db   : > { %v4059_v62 = vpop.f32.mrf.mxu2 }
 0x3dc   : > { %v4148_v52 = vpop.f32.mrf.mxu3  ;;  %v4060_v14 = vadd.f32 %v4059_v62, %v3971_v21 }
 0x3de   : > { %v4149_v24 = vadd.f32 %v4148_v52, %v4060_v14 }
 0x3df   : > { %v3886_v11 = vpop.f32.mrf.mxu0  ;;  %v3975_v58 = vpop.f32.mrf.mxu1 }
 0x3e0   : > { %4189 = vst [vmem:[%s8001_s11 + $0xd0] sm:$0xff] %v4149_v24  ;;  %v3887_v56 = vadd.f32 %v8257_v12, %v3886_v11 }
 0x3e2   : > { %v3976_v55 = vadd.f32 %v3975_v58, %v3887_v56 }
 0x3e3   : > { %v4061_v53 = vpop.f32.mrf.mxu2 }
 0x3e4   : > { %v4150_v8 = vpop.f32.mrf.mxu3  ;;  %v4062_v45 = vadd.f32 %v4061_v53, %v3973_v32 }
 0x3e6   : > { %v4151_v34 = vadd.f32 %v4150_v8, %v4062_v45 }
 0x3e7   : > { %v3888_v40 = vpop.f32.mrf.mxu0  ;;  %v3977_v0 = vpop.f32.mrf.mxu1 }
 0x3e8   : > { %4190 = vst [vmem:[%s8001_s11 + $0xd8] sm:$0xff] %v4151_v34  ;;  %v3889_v48 = vadd.f32 %v8257_v12, %v3888_v40 }
 0x3ea   : > { %v3978_v4 = vadd.f32 %v3977_v0, %v3889_v48 }
 0x3eb   : > { %v4064_v22 = vpop.f32.mrf.mxu2 }
 0x3ec   : > { %v4153_v63 = vpop.f32.mrf.mxu3  ;;  %v4065_v60 = vadd.f32 %v4064_v22, %v3976_v55 }
 0x3ee   : > { %v4154_v31 = vadd.f32 %v4153_v63, %v4065_v60 }
 0x3ef   : > { %v3891_v41 = vpop.f32.mrf.mxu0  ;;  %v3980_v35 = vpop.f32.mrf.mxu1 }
 0x3f0   : > { %4191 = vst [vmem:[%s8001_s11 + $0xe0] sm:$0xff] %v4154_v31  ;;  %v3892_v26 = vadd.f32 %v8257_v12, %v3891_v41 }
 0x3f2   : > { %v3981_v47 = vadd.f32 %v3980_v35, %v3892_v26 }
 0x3f3   : > { %v4066_v50 = vpop.f32.mrf.mxu2 }
 0x3f4   : > { %v4155_v57 = vpop.f32.mrf.mxu3  ;;  %v4067_v13 = vadd.f32 %v4066_v50, %v3978_v4 }
 0x3f6   : > { %v4156_v54 = vadd.f32 %v4155_v57, %v4067_v13 }
 0x3f7   : > { %v3893_v25 = vpop.f32.mrf.mxu0  ;;  %v3982_v6 = vpop.f32.mrf.mxu1 }
 0x3f8   : > { %4192 = vst [vmem:[%s8001_s11 + $0xe8] sm:$0xff] %v4156_v54  ;;  %v3894_v44 = vadd.f32 %v8257_v12, %v3893_v25 }
 0x3fa   : > { %v3983_v42 = vadd.f32 %v3982_v6, %v3894_v44 }
 0x3fb   : > { %v4069_v49 = vpop.f32.mrf.mxu2 }
 0x3fc   : > { %v4158_v39 = vpop.f32.mrf.mxu3  ;;  %v4070_v61 = vadd.f32 %v4069_v49, %v3981_v47 }
 0x3fe   : > { %v4159_v51 = vadd.f32 %v4158_v39, %v4070_v61 }
 0x400   : > { %4193 = vst [vmem:[%s8001_s11 + $0xf0] sm:$0xff] %v4159_v51 }
 0x403   : > { %v4071_v20 = vpop.f32.mrf.mxu2 }
 0x404   : > { %v4072_v38 = vadd.f32 %v4071_v20, %v3983_v42  ;;  %v4160_v19 = vpop.f32.mrf.mxu3 }
 0x406   : > { %v4161_v37 = vadd.f32 %v4160_v19, %v4072_v38 }
 0x408   : > { %4194 = vst [vmem:[%s8001_s11 + $0xf8] sm:$0xff] %v4161_v37 }
 0x409   : > { %5550 = shalt.err (!%p5547_p11)
}
 0x40a   : > { %s5611_s13 = smov 128   ;;  %s5612_s11 = smov 8  }
 0x40b   : > { %4684 = dma.vmem_to_hbm [thread:$0]  (%p5740_p5), %s4209_s12, 4096, %s4211_s17, %s4196_s28, %s5611_s13, %s5611_s13, %s5612_s11  }
 0x40c PF: > { %s4225_s29 = sand.u32 1, %s5585_s24   ;;  %p8922_p12 = scmp.ge.s32.totalorder %s5597_s27, 2 }
 0x40d   : > { %s4226_s1 = scalar_lea.sflag [#allocation4], %s4225_s29 }
 0x40e   : > { %p4704_p13 = pnand %p8922_p12, %p5688_p6 }
 0x410   : > { %p4705_p0 = pneg %p4704_p13 }
 0x412   : > { %5580 = dma.done.wait (%p4705_p0), %s4226_s1, 4096  }
 0x413   : > { %5582 = vsyncadd (%p4705_p0), %s4226_s1, 4294963200  ;;  %p22_p3 = scmp.ge.s32.totalorder %s5727_s22, 4   ;;  %s8923_s24 = smov %s5589_s25 }
 0x414   : > { %s8924_s25 = smov %s5593_s26  ;;  %s8925_s26 = smov %s5736_s21 }
 0x415   : > { %s8926_s27 = smov %s5727_s22  ;;  %24 = sbr.rel (!%p22_p3) target bundleno = 9 (0x9), region = 109 }
 0x41a   :  { %4232 = vsyncpa [#allocation3], 1 }
 0x41b   :  { %4234 = vsyncpa [#allocation3 + $0x1], 1 }
 0x41c   :  { %4235 = vsyncpa [#allocation6], 1 }
 0x41d   :  { %4236 = vsyncpa [#allocation9], 1 }
 0x41e   :  { %4237 = vsyncpa [#allocation4], 1 }
 0x41f   :  { %4239 = vsyncpa [#allocation4 + $0x1], 1 }

</bundles_post_ra>
